<compile_context>
chip_gen: v6e
topology: v6e:2x2x1
jax: 0.10.0
libtpu: 0.0.40
codegen_flags: <defaults>
</compile_context>

<pallas_src>
import functools

import jax
import jax.numpy as jnp
import numpy as np
from jax.experimental import pallas as pl
from jax.experimental.pallas import tpu as pltpu

_LANE = 128


def _round_up(x, m):
    return (x + m - 1) // m * m


def _largest_divisor_leq(n, cap):
    cap = max(1, min(n, cap))
    for d in range(cap, 0, -1):
        if n % d == 0:
            return d
    return 1


def _make_conv_kernel(kh, kw, stride, toh, batch_normalize, activation, slope):
    """Pass-1 kernel: direct conv (fused im2col) for one (image, row-tile)."""

    def _row_acc(x_ref, w_ref, row0, r, ow, o_pad):
        # One output row: sum over kh*kw taps of [OW, C] @ [C, O_pad] (bf16 in,
        # f32 accumulate on the MXU).
        acc = jnp.zeros((ow, o_pad), jnp.float32)
        for ki in range(kh):
            ih = row0 + r * stride + ki
            if stride == 1:
                xrow = x_ref[0, ih]                       # [W_pad, C] bf16
            for kj in range(kw):
                if stride == 1:
                    patch = xrow[kj:kj + ow, :]           # [OW, C]
                else:
                    patch = x_ref[0, ih, pl.ds(kj, ow, stride=stride), :]
                acc = acc + jnp.dot(patch, w_ref[ki * kw + kj],
                                    preferred_element_type=jnp.float32)
        return acc

    if batch_normalize:
        def kernel(x_ref, w_ref, y_ref, stats_ref):
            t = pl.program_id(1)
            row0 = t * (toh * stride)
            ow = y_ref.shape[2]
            o_pad = y_ref.shape[3]
            s = jnp.zeros((1, o_pad), jnp.float32)
            sq = jnp.zeros((1, o_pad), jnp.float32)
            for r in range(toh):
                acc = _row_acc(x_ref, w_ref, row0, r, ow, o_pad)
                y_ref[0, r] = acc                          # raw conv out (f32)
                s = s + jnp.sum(acc, axis=0, keepdims=True)
                sq = sq + jnp.sum(acc * acc, axis=0, keepdims=True)
            stats_ref[0, 0, 0:1, :] = s
            stats_ref[0, 0, 1:2, :] = sq
        return kernel

    def kernel(x_ref, w_ref, bias_ref, y_ref):
        t = pl.program_id(1)
        row0 = t * (toh * stride)
        ow = y_ref.shape[2]
        o_pad = y_ref.shape[3]
        for r in range(toh):
            acc = _row_acc(x_ref, w_ref, row0, r, ow, o_pad)
            out = acc + bias_ref[...]
            if activation:
                out = jnp.where(out > 0, out, slope * out)
            y_ref[0, r] = out
    return kernel


def _make_affine_act_kernel(activation, slope):
    """Pass-2 kernel: per-channel affine (folded BN) + LeakyReLU, lane-dense."""
    def kernel(y_ref, scale_ref, shift_ref, o_ref):
        out = y_ref[...] * scale_ref[...] + shift_ref[...]
        if activation:
            out = jnp.where(out > 0, out, slope * out)
        o_ref[...] = out
    return kernel


class ConvolutionalLayer:
    """JAX/Pallas port of networks/darknet/layers.py::ConvolutionalLayer."""

    def __init__(self, in_channels, out_channels, kernel_size, stride=1,
                 padding=0, batch_normalize=True, activation=True, *, key):
        self.in_channels = in_channels
        self.out_channels = out_channels
        self.kernel_size = kernel_size
        self.stride = stride
        self.padding = padding
        self.batch_normalize = batch_normalize
        self.activation = activation
        self.eps = 1e-6          # matches the module spec (BatchNorm2d(eps=1e-06))
        self.slope = 0.1
        self.o_pad = _round_up(out_channels, _LANE)

        k_w, k_b = jax.random.split(key)
        fan_in = in_channels * kernel_size * kernel_size
        bound = 1.0 / np.sqrt(fan_in)
        # Deterministic synthetic init (PyTorch-style uniform bounds).
        self.weight = jax.random.uniform(
            k_w, (out_channels, in_channels, kernel_size, kernel_size),
            dtype=jnp.float32, minval=-bound, maxval=bound)

        # Precompute the MXU-layout weight once: [O,C,kh,kw] -> [kh*kw, C, O_pad], bf16.
        w = jnp.transpose(self.weight, (2, 3, 1, 0)).reshape(
            kernel_size * kernel_size, in_channels, out_channels)
        w = jnp.pad(w, ((0, 0), (0, 0), (0, self.o_pad - out_channels)))
        self.w_taps = w.astype(jnp.bfloat16)

        if batch_normalize:
            self.gamma = jnp.ones((out_channels,), jnp.float32)
            self.beta = jnp.zeros((out_channels,), jnp.float32)
            self.bias = None
            self._gamma_pad = jnp.pad(self.gamma, (0, self.o_pad - out_channels))
            self._beta_pad = jnp.pad(self.beta, (0, self.o_pad - out_channels))
        else:
            self.gamma = None
            self.beta = None
            self.bias = jax.random.uniform(k_b, (out_channels,), dtype=jnp.float32,
                                           minval=-bound, maxval=bound)
            self._bias_pad = jnp.pad(self.bias, (0, self.o_pad - out_channels)
                                     ).reshape(1, self.o_pad)

    @functools.partial(jax.jit, static_argnums=0)
    def __call__(self, x):
        # x: [N, C, H, W] float32 (NCHW, like PyTorch)
        N, C, H, W = x.shape
        kh = kw = self.kernel_size
        s, p = self.stride, self.padding
        OH = (H + 2 * p - kh) // s + 1
        OW = (W + 2 * p - kw) // s + 1
        O, O_pad = self.out_channels, self.o_pad

        # NCHW -> NHWC, spatial zero-pad, bf16 matmul operand (no im2col in HBM).
        x_nhwc = jnp.transpose(x, (0, 2, 3, 1))
        x_pad = jnp.pad(x_nhwc, ((0, 0), (p, p), (p, p), (0, 0))).astype(jnp.bfloat16)
        H_pad, W_pad = H + 2 * p, W + 2 * p

        TOH = _largest_divisor_leq(OH, 8)      # row-tile; TOH | OH keeps stats exact
        T = OH // TOH
        grid = (N, T)

        # VMEM budget for double-buffered blocks (clamped so it stays legal on v7x).
        x_blk = H_pad * W_pad * C * 2
        w_bytes = kh * kw * C * O_pad * 2
        y_blk = TOH * OW * O_pad * 4
        need = 2 * (x_blk + w_bytes + y_blk) + (2 << 20)
        vmem_limit = int(min(64 * 2 ** 20, max(32 * 2 ** 20, need)))

        conv_kernel = _make_conv_kernel(kh, kw, s, TOH, self.batch_normalize,
                                        self.activation, self.slope)

        x_spec = pl.BlockSpec((1, H_pad, W_pad, C), lambda n, t: (n, 0, 0, 0))
        w_spec = pl.BlockSpec((kh * kw, C, O_pad), lambda n, t: (0, 0, 0))
        y_spec = pl.BlockSpec((1, TOH, OW, O_pad), lambda n, t: (n, t, 0, 0))
        cparams = pltpu.CompilerParams(
            dimension_semantics=("parallel", "parallel"),
            vmem_limit_bytes=vmem_limit)

        if self.batch_normalize:
            stats_spec = pl.BlockSpec((1, 1, 2, O_pad), lambda n, t: (n, t, 0, 0))
            y, stats = pl.pallas_call(
                conv_kernel,
                grid=grid,
                in_specs=[x_spec, w_spec],
                out_specs=[y_spec, stats_spec],
                out_shape=[jax.ShapeDtypeStruct((N, OH, OW, O_pad), jnp.float32),
                           jax.ShapeDtypeStruct((N, T, 2, O_pad), jnp.float32)],
                compiler_params=cparams,
            )(x_pad, self.w_taps)

            # Fold training-mode batch stats (biased variance) into one affine.
            M = N * OH * OW
            tot = jnp.sum(stats, axis=(0, 1))                      # [2, O_pad]
            mean = tot[0] / M
            var = jnp.maximum(tot[1] / M - mean * mean, 0.0)       # guard cancellation
            inv = jax.lax.rsqrt(var + self.eps)
            scale_eff = (self._gamma_pad * inv).reshape(1, O_pad)
            shift_eff = (self._beta_pad - self._gamma_pad * inv * mean).reshape(1, O_pad)

            y_flat = y.reshape(M, O_pad)
            TM = M if M <= 1024 else 1024
            out_flat = pl.pallas_call(
                _make_affine_act_kernel(self.activation, self.slope),
                grid=(pl.cdiv(M, TM),),
                in_specs=[pl.BlockSpec((TM, O_pad), lambda i: (i, 0)),
                          pl.BlockSpec((1, O_pad), lambda i: (0, 0)),
                          pl.BlockSpec((1, O_pad), lambda i: (0, 0))],
                out_specs=pl.BlockSpec((TM, O_pad), lambda i: (i, 0)),
                out_shape=jax.ShapeDtypeStruct((M, O_pad), jnp.float32),
                compiler_params=pltpu.CompilerParams(
                    dimension_semantics=("parallel",),
                    vmem_limit_bytes=vmem_limit),
            )(y_flat, scale_eff, shift_eff)
            out_nhwc = out_flat.reshape(N, OH, OW, O_pad)
        else:
            bias_spec = pl.BlockSpec((1, O_pad), lambda n, t: (0, 0))
            out_nhwc = pl.pallas_call(
                conv_kernel,
                grid=grid,
                in_specs=[x_spec, w_spec, bias_spec],
                out_specs=y_spec,
                out_shape=jax.ShapeDtypeStruct((N, OH, OW, O_pad), jnp.float32),
                compiler_params=cparams,
            )(x_pad, self.w_taps, self._bias_pad)

        # [N, OH, OW, O_pad] -> drop channel padding -> NCHW
        return jnp.transpose(out_nhwc[..., :O], (0, 3, 1, 2))


def _reference_forward(layer, x):
    """Pure-JAX f32 reference mirroring the PyTorch forward."""
    y = jax.lax.conv_general_dilated(
        x, layer.weight,
        window_strides=(layer.stride, layer.stride),
        padding=[(layer.padding, layer.padding)] * 2,
        dimension_numbers=("NCHW", "OIHW", "NCHW"))
    if layer.batch_normalize:
        mean = jnp.mean(y, axis=(0, 2, 3), keepdims=True)
        var = jnp.mean(jnp.square(y - mean), axis=(0, 2, 3), keepdims=True)
        y = (y - mean) * jax.lax.rsqrt(var + layer.eps)
        y = y * layer.gamma.reshape(1, -1, 1, 1) + layer.beta.reshape(1, -1, 1, 1)
    else:
        y = y + layer.bias.reshape(1, -1, 1, 1)
    if layer.activation:
        y = jnp.where(y > 0, y, layer.slope * y)
    return y


if __name__ == "__main__":
    key = jax.random.PRNGKey(0)
    k_x, k_l1, k_l2 = jax.random.split(key, 3)

    # Small shapes: batch=2, in_channels=4, out_channels=8, spatial=16, 3x3, pad=1
    x = jax.random.normal(k_x, (2, 4, 16, 16), dtype=jnp.float32)

    # BN + LeakyReLU path (the standard Darknet conv block); exercises two row
    # tiles per image so the cross-tile BN stat accumulation is validated.
    layer = ConvolutionalLayer(in_channels=4, out_channels=8, kernel_size=3,
                               stride=1, padding=1, batch_normalize=True,
                               activation=True, key=k_l1)
    out = jax.block_until_ready(layer(x))
    ref = jax.block_until_ready(_reference_forward(layer, x))
    assert out.shape == ref.shape == (2, 8, 16, 16)
    # Tolerance sized for bf16 matmul operands (f32 accumulation) vs f32 reference.
    np.testing.assert_allclose(np.asarray(out), np.asarray(ref), atol=2e-2, rtol=2e-2)

    # Conv + bias + LeakyReLU path (batch_normalize=False).
    layer2 = ConvolutionalLayer(in_channels=4, out_channels=8, kernel_size=3,
                                stride=1, padding=1, batch_normalize=False,
                                activation=True, key=k_l2)
    out2 = jax.block_until_ready(layer2(x))
    ref2 = jax.block_until_ready(_reference_forward(layer2, x))
    np.testing.assert_allclose(np.asarray(out2), np.asarray(ref2), atol=2e-2, rtol=2e-2)

    print("KERNEL_OK")
</pallas_src>

<mosaic_0001>
module attributes {stable_mosaic.version = 11 : i64} {
  func.func @kernel(%arg0: i32, %arg1: i32, %arg2: memref<1x18x18x4xbf16, #tpu.memory_space<vmem>>, %arg3: memref<9x4x128xbf16, #tpu.memory_space<vmem>>, %arg4: memref<1x8x16x128xf32, #tpu.memory_space<vmem>>, %arg5: memref<1x1x2x128xf32, #tpu.memory_space<vmem>>) attributes {dimension_semantics = [#tpu.dimension_semantics<parallel>, #tpu.dimension_semantics<parallel>], iteration_bounds = array<i64: 2, 2>, scalar_prefetch = 0 : i64, scratch_operands = 0 : i64, tpu.core_type = #tpu.core_type<tc>, window_params = [{transform_indices = @transform_0, window_bounds = array<i64: 1, 18, 18, 4>}, {pipeline_mode = #tpu.pipeline_mode<synchronous>, transform_indices = @transform_1, window_bounds = array<i64: 9, 4, 128>}, {transform_indices = @transform_2, window_bounds = array<i64: 1, 8, 16, 128>}, {transform_indices = @transform_3, window_bounds = array<i64: 1, 1, 2, 128>}]} {
    %c8_i32 = arith.constant 8 : i32
    %0 = arith.muli %arg1, %c8_i32 : i32
    %cst = arith.constant 0.000000e+00 : f32
    %1 = vector.broadcast %cst : f32 to vector<1x128xf32>
    %cst_0 = arith.constant 0.000000e+00 : f32
    %2 = vector.broadcast %cst_0 : f32 to vector<1x128xf32>
    %cst_1 = arith.constant 0.000000e+00 : f32
    %3 = vector.broadcast %cst_1 : f32 to vector<16x128xf32>
    %c0_i32 = arith.constant 0 : i32
    %4 = arith.addi %0, %c0_i32 : i32
    %c0_i32_2 = arith.constant 0 : i32
    %5 = arith.addi %4, %c0_i32_2 : i32
    %c0 = arith.constant 0 : index
    %6 = arith.index_cast %5 : i32 to index
    %c0_3 = arith.constant 0 : index
    %c0_4 = arith.constant 0 : index
    %7 = vector.load %arg2[%c0, %6, %c0_3, %c0_4] : memref<1x18x18x4xbf16, #tpu.memory_space<vmem>>, vector<1x1x18x4xbf16>
    %8 = vector.shape_cast %7 : vector<1x1x18x4xbf16> to vector<18x4xbf16>
    %9 = vector.extract_strided_slice %8 {offsets = [0, 0], sizes = [16, 4], strides = [1, 1]} : vector<18x4xbf16> to vector<16x4xbf16>
    %c0_5 = arith.constant 0 : index
    %c0_6 = arith.constant 0 : index
    %c0_7 = arith.constant 0 : index
    %10 = vector.load %arg3[%c0_5, %c0_6, %c0_7] : memref<9x4x128xbf16, #tpu.memory_space<vmem>>, vector<1x4x128xbf16>
    %11 = vector.shape_cast %10 : vector<1x4x128xbf16> to vector<4x128xbf16>
    %cst_8 = arith.constant dense<0.000000e+00> : vector<16x128xf32>
    %12 = tpu.matmul %9, %11, %cst_8 {dimension_numbers = #tpu.dot_dimension_numbers<[1], [0], [0], [1], [0, 0, 1, 1], [], []>} : vector<16x4xbf16>, vector<4x128xbf16>, vector<16x128xf32> -> vector<16x128xf32>
    %13 = arith.addf %3, %12 : vector<16x128xf32>
    %14 = vector.extract_strided_slice %8 {offsets = [1, 0], sizes = [16, 4], strides = [1, 1]} : vector<18x4xbf16> to vector<16x4xbf16>
    %c1 = arith.constant 1 : index
    %c0_9 = arith.constant 0 : index
    %c0_10 = arith.constant 0 : index
    %15 = vector.load %arg3[%c1, %c0_9, %c0_10] : memref<9x4x128xbf16, #tpu.memory_space<vmem>>, vector<1x4x128xbf16>
    %16 = vector.shape_cast %15 : vector<1x4x128xbf16> to vector<4x128xbf16>
    %cst_11 = arith.constant dense<0.000000e+00> : vector<16x128xf32>
    %17 = tpu.matmul %14, %16, %cst_11 {dimension_numbers = #tpu.dot_dimension_numbers<[1], [0], [0], [1], [0, 0, 1, 1], [], []>} : vector<16x4xbf16>, vector<4x128xbf16>, vector<16x128xf32> -> vector<16x128xf32>
    %18 = arith.addf %13, %17 : vector<16x128xf32>
    %19 = vector.extract_strided_slice %8 {offsets = [2, 0], sizes = [16, 4], strides = [1, 1]} : vector<18x4xbf16> to vector<16x4xbf16>
    %c2 = arith.constant 2 : index
    %c0_12 = arith.constant 0 : index
    %c0_13 = arith.constant 0 : index
    %20 = vector.load %arg3[%c2, %c0_12, %c0_13] : memref<9x4x128xbf16, #tpu.memory_space<vmem>>, vector<1x4x128xbf16>
    %21 = vector.shape_cast %20 : vector<1x4x128xbf16> to vector<4x128xbf16>
    %cst_14 = arith.constant dense<0.000000e+00> : vector<16x128xf32>
    %22 = tpu.matmul %19, %21, %cst_14 {dimension_numbers = #tpu.dot_dimension_numbers<[1], [0], [0], [1], [0, 0, 1, 1], [], []>} : vector<16x4xbf16>, vector<4x128xbf16>, vector<16x128xf32> -> vector<16x128xf32>
    %23 = arith.addf %18, %22 : vector<16x128xf32>
    %c0_i32_15 = arith.constant 0 : i32
    %24 = arith.addi %0, %c0_i32_15 : i32
    %c1_i32 = arith.constant 1 : i32
    %25 = arith.addi %24, %c1_i32 : i32
    %c0_16 = arith.constant 0 : index
    %26 = arith.index_cast %25 : i32 to index
    %c0_17 = arith.constant 0 : index
    %c0_18 = arith.constant 0 : index
    %27 = vector.load %arg2[%c0_16, %26, %c0_17, %c0_18] : memref<1x18x18x4xbf16, #tpu.memory_space<vmem>>, vector<1x1x18x4xbf16>
    %28 = vector.shape_cast %27 : vector<1x1x18x4xbf16> to vector<18x4xbf16>
    %29 = vector.extract_strided_slice %28 {offsets = [0, 0], sizes = [16, 4], strides = [1, 1]} : vector<18x4xbf16> to vector<16x4xbf16>
    %c3 = arith.constant 3 : index
    %c0_19 = arith.constant 0 : index
    %c0_20 = arith.constant 0 : index
    %30 = vector.load %arg3[%c3, %c0_19, %c0_20] : memref<9x4x128xbf16, #tpu.memory_space<vmem>>, vector<1x4x128xbf16>
    %31 = vector.shape_cast %30 : vector<1x4x128xbf16> to vector<4x128xbf16>
    %cst_21 = arith.constant dense<0.000000e+00> : vector<16x128xf32>
    %32 = tpu.matmul %29, %31, %cst_21 {dimension_numbers = #tpu.dot_dimension_numbers<[1], [0], [0], [1], [0, 0, 1, 1], [], []>} : vector<16x4xbf16>, vector<4x128xbf16>, vector<16x128xf32> -> vector<16x128xf32>
    %33 = arith.addf %23, %32 : vector<16x128xf32>
    %34 = vector.extract_strided_slice %28 {offsets = [1, 0], sizes = [16, 4], strides = [1, 1]} : vector<18x4xbf16> to vector<16x4xbf16>
    %c4 = arith.constant 4 : index
    %c0_22 = arith.constant 0 : index
    %c0_23 = arith.constant 0 : index
    %35 = vector.load %arg3[%c4, %c0_22, %c0_23] : memref<9x4x128xbf16, #tpu.memory_space<vmem>>, vector<1x4x128xbf16>
    %36 = vector.shape_cast %35 : vector<1x4x128xbf16> to vector<4x128xbf16>
    %cst_24 = arith.constant dense<0.000000e+00> : vector<16x128xf32>
    %37 = tpu.matmul %34, %36, %cst_24 {dimension_numbers = #tpu.dot_dimension_numbers<[1], [0], [0], [1], [0, 0, 1, 1], [], []>} : vector<16x4xbf16>, vector<4x128xbf16>, vector<16x128xf32> -> vector<16x128xf32>
    %38 = arith.addf %33, %37 : vector<16x128xf32>
    %39 = vector.extract_strided_slice %28 {offsets = [2, 0], sizes = [16, 4], strides = [1, 1]} : vector<18x4xbf16> to vector<16x4xbf16>
    %c5 = arith.constant 5 : index
    %c0_25 = arith.constant 0 : index
    %c0_26 = arith.constant 0 : index
    %40 = vector.load %arg3[%c5, %c0_25, %c0_26] : memref<9x4x128xbf16, #tpu.memory_space<vmem>>, vector<1x4x128xbf16>
    %41 = vector.shape_cast %40 : vector<1x4x128xbf16> to vector<4x128xbf16>
    %cst_27 = arith.constant dense<0.000000e+00> : vector<16x128xf32>
    %42 = tpu.matmul %39, %41, %cst_27 {dimension_numbers = #tpu.dot_dimension_numbers<[1], [0], [0], [1], [0, 0, 1, 1], [], []>} : vector<16x4xbf16>, vector<4x128xbf16>, vector<16x128xf32> -> vector<16x128xf32>
    %43 = arith.addf %38, %42 : vector<16x128xf32>
    %c0_i32_28 = arith.constant 0 : i32
    %44 = arith.addi %0, %c0_i32_28 : i32
    %c2_i32 = arith.constant 2 : i32
    %45 = arith.addi %44, %c2_i32 : i32
    %c0_29 = arith.constant 0 : index
    %46 = arith.index_cast %45 : i32 to index
    %c0_30 = arith.constant 0 : index
    %c0_31 = arith.constant 0 : index
    %47 = vector.load %arg2[%c0_29, %46, %c0_30, %c0_31] : memref<1x18x18x4xbf16, #tpu.memory_space<vmem>>, vector<1x1x18x4xbf16>
    %48 = vector.shape_cast %47 : vector<1x1x18x4xbf16> to vector<18x4xbf16>
    %49 = vector.extract_strided_slice %48 {offsets = [0, 0], sizes = [16, 4], strides = [1, 1]} : vector<18x4xbf16> to vector<16x4xbf16>
    %c6 = arith.constant 6 : index
    %c0_32 = arith.constant 0 : index
    %c0_33 = arith.constant 0 : index
    %50 = vector.load %arg3[%c6, %c0_32, %c0_33] : memref<9x4x128xbf16, #tpu.memory_space<vmem>>, vector<1x4x128xbf16>
    %51 = vector.shape_cast %50 : vector<1x4x128xbf16> to vector<4x128xbf16>
    %cst_34 = arith.constant dense<0.000000e+00> : vector<16x128xf32>
    %52 = tpu.matmul %49, %51, %cst_34 {dimension_numbers = #tpu.dot_dimension_numbers<[1], [0], [0], [1], [0, 0, 1, 1], [], []>} : vector<16x4xbf16>, vector<4x128xbf16>, vector<16x128xf32> -> vector<16x128xf32>
    %53 = arith.addf %43, %52 : vector<16x128xf32>
    %54 = vector.extract_strided_slice %48 {offsets = [1, 0], sizes = [16, 4], strides = [1, 1]} : vector<18x4xbf16> to vector<16x4xbf16>
    %c7 = arith.constant 7 : index
    %c0_35 = arith.constant 0 : index
    %c0_36 = arith.constant 0 : index
    %55 = vector.load %arg3[%c7, %c0_35, %c0_36] : memref<9x4x128xbf16, #tpu.memory_space<vmem>>, vector<1x4x128xbf16>
    %56 = vector.shape_cast %55 : vector<1x4x128xbf16> to vector<4x128xbf16>
    %cst_37 = arith.constant dense<0.000000e+00> : vector<16x128xf32>
    %57 = tpu.matmul %54, %56, %cst_37 {dimension_numbers = #tpu.dot_dimension_numbers<[1], [0], [0], [1], [0, 0, 1, 1], [], []>} : vector<16x4xbf16>, vector<4x128xbf16>, vector<16x128xf32> -> vector<16x128xf32>
    %58 = arith.addf %53, %57 : vector<16x128xf32>
    %59 = vector.extract_strided_slice %48 {offsets = [2, 0], sizes = [16, 4], strides = [1, 1]} : vector<18x4xbf16> to vector<16x4xbf16>
    %c8 = arith.constant 8 : index
    %c0_38 = arith.constant 0 : index
    %c0_39 = arith.constant 0 : index
    %60 = vector.load %arg3[%c8, %c0_38, %c0_39] : memref<9x4x128xbf16, #tpu.memory_space<vmem>>, vector<1x4x128xbf16>
    %61 = vector.shape_cast %60 : vector<1x4x128xbf16> to vector<4x128xbf16>
    %cst_40 = arith.constant dense<0.000000e+00> : vector<16x128xf32>
    %62 = tpu.matmul %59, %61, %cst_40 {dimension_numbers = #tpu.dot_dimension_numbers<[1], [0], [0], [1], [0, 0, 1, 1], [], []>} : vector<16x4xbf16>, vector<4x128xbf16>, vector<16x128xf32> -> vector<16x128xf32>
    %63 = arith.addf %58, %62 : vector<16x128xf32>
    %c0_41 = arith.constant 0 : index
    %c0_42 = arith.constant 0 : index
    %c0_43 = arith.constant 0 : index
    %c0_44 = arith.constant 0 : index
    %64 = vector.load %arg4[%c0_41, %c0_42, %c0_43, %c0_44] : memref<1x8x16x128xf32, #tpu.memory_space<vmem>>, vector<1x1x16x128xf32>
    %65 = vector.shape_cast %64 : vector<1x1x16x128xf32> to vector<16x128xf32>
    %66 = vector.shape_cast %63 : vector<16x128xf32> to vector<1x1x16x128xf32>
    tpu.vector_store %arg4[%c0_41, %c0_42, %c0_43, %c0_44], %66 {strides = array<i32>} : memref<1x8x16x128xf32, #tpu.memory_space<vmem>>, vector<1x1x16x128xf32>,
    %cst_45 = arith.constant dense<0.000000e+00> : vector<128xf32>
    %67 = vector.multi_reduction <add>, %63, %cst_45 [0] : vector<16x128xf32> to vector<128xf32>
    %68 = vector.shape_cast %67 : vector<128xf32> to vector<1x128xf32>
    %69 = arith.addf %1, %68 : vector<1x128xf32>
    %70 = arith.mulf %63, %63 : vector<16x128xf32>
    %cst_46 = arith.constant dense<0.000000e+00> : vector<128xf32>
    %71 = vector.multi_reduction <add>, %70, %cst_46 [0] : vector<16x128xf32> to vector<128xf32>
    %72 = vector.shape_cast %71 : vector<128xf32> to vector<1x128xf32>
    %73 = arith.addf %2, %72 : vector<1x128xf32>
    %cst_47 = arith.constant 0.000000e+00 : f32
    %74 = vector.broadcast %cst_47 : f32 to vector<16x128xf32>
    %c1_i32_48 = arith.constant 1 : i32
    %75 = arith.addi %0, %c1_i32_48 : i32
    %c0_i32_49 = arith.constant 0 : i32
    %76 = arith.addi %75, %c0_i32_49 : i32
    %c0_50 = arith.constant 0 : index
    %77 = arith.index_cast %76 : i32 to index
    %c0_51 = arith.constant 0 : index
    %c0_52 = arith.constant 0 : index
    %78 = vector.load %arg2[%c0_50, %77, %c0_51, %c0_52] : memref<1x18x18x4xbf16, #tpu.memory_space<vmem>>, vector<1x1x18x4xbf16>
    %79 = vector.shape_cast %78 : vector<1x1x18x4xbf16> to vector<18x4xbf16>
    %80 = vector.extract_strided_slice %79 {offsets = [0, 0], sizes = [16, 4], strides = [1, 1]} : vector<18x4xbf16> to vector<16x4xbf16>
    %c0_53 = arith.constant 0 : index
    %c0_54 = arith.constant 0 : index
    %c0_55 = arith.constant 0 : index
    %81 = vector.load %arg3[%c0_53, %c0_54, %c0_55] : memref<9x4x128xbf16, #tpu.memory_space<vmem>>, vector<1x4x128xbf16>
    %82 = vector.shape_cast %81 : vector<1x4x128xbf16> to vector<4x128xbf16>
    %cst_56 = arith.constant dense<0.000000e+00> : vector<16x128xf32>
    %83 = tpu.matmul %80, %82, %cst_56 {dimension_numbers = #tpu.dot_dimension_numbers<[1], [0], [0], [1], [0, 0, 1, 1], [], []>} : vector<16x4xbf16>, vector<4x128xbf16>, vector<16x128xf32> -> vector<16x128xf32>
    %84 = arith.addf %74, %83 : vector<16x128xf32>
    %85 = vector.extract_strided_slice %79 {offsets = [1, 0], sizes = [16, 4], strides = [1, 1]} : vector<18x4xbf16> to vector<16x4xbf16>
    %c1_57 = arith.constant 1 : index
    %c0_58 = arith.constant 0 : index
    %c0_59 = arith.constant 0 : index
    %86 = vector.load %arg3[%c1_57, %c0_58, %c0_59] : memref<9x4x128xbf16, #tpu.memory_space<vmem>>, vector<1x4x128xbf16>
    %87 = vector.shape_cast %86 : vector<1x4x128xbf16> to vector<4x128xbf16>
    %cst_60 = arith.constant dense<0.000000e+00> : vector<16x128xf32>
    %88 = tpu.matmul %85, %87, %cst_60 {dimension_numbers = #tpu.dot_dimension_numbers<[1], [0], [0], [1], [0, 0, 1, 1], [], []>} : vector<16x4xbf16>, vector<4x128xbf16>, vector<16x128xf32> -> vector<16x128xf32>
    %89 = arith.addf %84, %88 : vector<16x128xf32>
    %90 = vector.extract_strided_slice %79 {offsets = [2, 0], sizes = [16, 4], strides = [1, 1]} : vector<18x4xbf16> to vector<16x4xbf16>
    %c2_61 = arith.constant 2 : index
    %c0_62 = arith.constant 0 : index
    %c0_63 = arith.constant 0 : index
    %91 = vector.load %arg3[%c2_61, %c0_62, %c0_63] : memref<9x4x128xbf16, #tpu.memory_space<vmem>>, vector<1x4x128xbf16>
    %92 = vector.shape_cast %91 : vector<1x4x128xbf16> to vector<4x128xbf16>
    %cst_64 = arith.constant dense<0.000000e+00> : vector<16x128xf32>
    %93 = tpu.matmul %90, %92, %cst_64 {dimension_numbers = #tpu.dot_dimension_numbers<[1], [0], [0], [1], [0, 0, 1, 1], [], []>} : vector<16x4xbf16>, vector<4x128xbf16>, vector<16x128xf32> -> vector<16x128xf32>
    %94 = arith.addf %89, %93 : vector<16x128xf32>
    %c1_i32_65 = arith.constant 1 : i32
    %95 = arith.addi %0, %c1_i32_65 : i32
    %c1_i32_66 = arith.constant 1 : i32
    %96 = arith.addi %95, %c1_i32_66 : i32
    %c0_67 = arith.constant 0 : index
    %97 = arith.index_cast %96 : i32 to index
    %c0_68 = arith.constant 0 : index
    %c0_69 = arith.constant 0 : index
    %98 = vector.load %arg2[%c0_67, %97, %c0_68, %c0_69] : memref<1x18x18x4xbf16, #tpu.memory_space<vmem>>, vector<1x1x18x4xbf16>
    %99 = vector.shape_cast %98 : vector<1x1x18x4xbf16> to vector<18x4xbf16>
    %100 = vector.extract_strided_slice %99 {offsets = [0, 0], sizes = [16, 4], strides = [1, 1]} : vector<18x4xbf16> to vector<16x4xbf16>
    %c3_70 = arith.constant 3 : index
    %c0_71 = arith.constant 0 : index
    %c0_72 = arith.constant 0 : index
    %101 = vector.load %arg3[%c3_70, %c0_71, %c0_72] : memref<9x4x128xbf16, #tpu.memory_space<vmem>>, vector<1x4x128xbf16>
    %102 = vector.shape_cast %101 : vector<1x4x128xbf16> to vector<4x128xbf16>
    %cst_73 = arith.constant dense<0.000000e+00> : vector<16x128xf32>
    %103 = tpu.matmul %100, %102, %cst_73 {dimension_numbers = #tpu.dot_dimension_numbers<[1], [0], [0], [1], [0, 0, 1, 1], [], []>} : vector<16x4xbf16>, vector<4x128xbf16>, vector<16x128xf32> -> vector<16x128xf32>
    %104 = arith.addf %94, %103 : vector<16x128xf32>
    %105 = vector.extract_strided_slice %99 {offsets = [1, 0], sizes = [16, 4], strides = [1, 1]} : vector<18x4xbf16> to vector<16x4xbf16>
    %c4_74 = arith.constant 4 : index
    %c0_75 = arith.constant 0 : index
    %c0_76 = arith.constant 0 : index
    %106 = vector.load %arg3[%c4_74, %c0_75, %c0_76] : memref<9x4x128xbf16, #tpu.memory_space<vmem>>, vector<1x4x128xbf16>
    %107 = vector.shape_cast %106 : vector<1x4x128xbf16> to vector<4x128xbf16>
    %cst_77 = arith.constant dense<0.000000e+00> : vector<16x128xf32>
    %108 = tpu.matmul %105, %107, %cst_77 {dimension_numbers = #tpu.dot_dimension_numbers<[1], [0], [0], [1], [0, 0, 1, 1], [], []>} : vector<16x4xbf16>, vector<4x128xbf16>, vector<16x128xf32> -> vector<16x128xf32>
    %109 = arith.addf %104, %108 : vector<16x128xf32>
    %110 = vector.extract_strided_slice %99 {offsets = [2, 0], sizes = [16, 4], strides = [1, 1]} : vector<18x4xbf16> to vector<16x4xbf16>
    %c5_78 = arith.constant 5 : index
    %c0_79 = arith.constant 0 : index
    %c0_80 = arith.constant 0 : index
    %111 = vector.load %arg3[%c5_78, %c0_79, %c0_80] : memref<9x4x128xbf16, #tpu.memory_space<vmem>>, vector<1x4x128xbf16>
    %112 = vector.shape_cast %111 : vector<1x4x128xbf16> to vector<4x128xbf16>
    %cst_81 = arith.constant dense<0.000000e+00> : vector<16x128xf32>
    %113 = tpu.matmul %110, %112, %cst_81 {dimension_numbers = #tpu.dot_dimension_numbers<[1], [0], [0], [1], [0, 0, 1, 1], [], []>} : vector<16x4xbf16>, vector<4x128xbf16>, vector<16x128xf32> -> vector<16x128xf32>
    %114 = arith.addf %109, %113 : vector<16x128xf32>
    %c1_i32_82 = arith.constant 1 : i32
    %115 = arith.addi %0, %c1_i32_82 : i32
    %c2_i32_83 = arith.constant 2 : i32
    %116 = arith.addi %115, %c2_i32_83 : i32
    %c0_84 = arith.constant 0 : index
    %117 = arith.index_cast %116 : i32 to index
    %c0_85 = arith.constant 0 : index
    %c0_86 = arith.constant 0 : index
    %118 = vector.load %arg2[%c0_84, %117, %c0_85, %c0_86] : memref<1x18x18x4xbf16, #tpu.memory_space<vmem>>, vector<1x1x18x4xbf16>
    %119 = vector.shape_cast %118 : vector<1x1x18x4xbf16> to vector<18x4xbf16>
    %120 = vector.extract_strided_slice %119 {offsets = [0, 0], sizes = [16, 4], strides = [1, 1]} : vector<18x4xbf16> to vector<16x4xbf16>
    %c6_87 = arith.constant 6 : index
    %c0_88 = arith.constant 0 : index
    %c0_89 = arith.constant 0 : index
    %121 = vector.load %arg3[%c6_87, %c0_88, %c0_89] : memref<9x4x128xbf16, #tpu.memory_space<vmem>>, vector<1x4x128xbf16>
    %122 = vector.shape_cast %121 : vector<1x4x128xbf16> to vector<4x128xbf16>
    %cst_90 = arith.constant dense<0.000000e+00> : vector<16x128xf32>
    %123 = tpu.matmul %120, %122, %cst_90 {dimension_numbers = #tpu.dot_dimension_numbers<[1], [0], [0], [1], [0, 0, 1, 1], [], []>} : vector<16x4xbf16>, vector<4x128xbf16>, vector<16x128xf32> -> vector<16x128xf32>
    %124 = arith.addf %114, %123 : vector<16x128xf32>
    %125 = vector.extract_strided_slice %119 {offsets = [1, 0], sizes = [16, 4], strides = [1, 1]} : vector<18x4xbf16> to vector<16x4xbf16>
    %c7_91 = arith.constant 7 : index
    %c0_92 = arith.constant 0 : index
    %c0_93 = arith.constant 0 : index
    %126 = vector.load %arg3[%c7_91, %c0_92, %c0_93] : memref<9x4x128xbf16, #tpu.memory_space<vmem>>, vector<1x4x128xbf16>
    %127 = vector.shape_cast %126 : vector<1x4x128xbf16> to vector<4x128xbf16>
    %cst_94 = arith.constant dense<0.000000e+00> : vector<16x128xf32>
    %128 = tpu.matmul %125, %127, %cst_94 {dimension_numbers = #tpu.dot_dimension_numbers<[1], [0], [0], [1], [0, 0, 1, 1], [], []>} : vector<16x4xbf16>, vector<4x128xbf16>, vector<16x128xf32> -> vector<16x128xf32>
    %129 = arith.addf %124, %128 : vector<16x128xf32>
    %130 = vector.extract_strided_slice %119 {offsets = [2, 0], sizes = [16, 4], strides = [1, 1]} : vector<18x4xbf16> to vector<16x4xbf16>
    %c8_95 = arith.constant 8 : index
    %c0_96 = arith.constant 0 : index
    %c0_97 = arith.constant 0 : index
    %131 = vector.load %arg3[%c8_95, %c0_96, %c0_97] : memref<9x4x128xbf16, #tpu.memory_space<vmem>>, vector<1x4x128xbf16>
    %132 = vector.shape_cast %131 : vector<1x4x128xbf16> to vector<4x128xbf16>
    %cst_98 = arith.constant dense<0.000000e+00> : vector<16x128xf32>
    %133 = tpu.matmul %130, %132, %cst_98 {dimension_numbers = #tpu.dot_dimension_numbers<[1], [0], [0], [1], [0, 0, 1, 1], [], []>} : vector<16x4xbf16>, vector<4x128xbf16>, vector<16x128xf32> -> vector<16x128xf32>
    %134 = arith.addf %129, %133 : vector<16x128xf32>
    %c0_99 = arith.constant 0 : index
    %c1_100 = arith.constant 1 : index
    %c0_101 = arith.constant 0 : index
    %c0_102 = arith.constant 0 : index
    %135 = vector.load %arg4[%c0_99, %c1_100, %c0_101, %c0_102] : memref<1x8x16x128xf32, #tpu.memory_space<vmem>>, vector<1x1x16x128xf32>
    %136 = vector.shape_cast %135 : vector<1x1x16x128xf32> to vector<16x128xf32>
    %137 = vector.shape_cast %134 : vector<16x128xf32> to vector<1x1x16x128xf32>
    tpu.vector_store %arg4[%c0_99, %c1_100, %c0_101, %c0_102], %137 {strides = array<i32>} : memref<1x8x16x128xf32, #tpu.memory_space<vmem>>, vector<1x1x16x128xf32>,
    %cst_103 = arith.constant dense<0.000000e+00> : vector<128xf32>
    %138 = vector.multi_reduction <add>, %134, %cst_103 [0] : vector<16x128xf32> to vector<128xf32>
    %139 = vector.shape_cast %138 : vector<128xf32> to vector<1x128xf32>
    %140 = arith.addf %69, %139 : vector<1x128xf32>
    %141 = arith.mulf %134, %134 : vector<16x128xf32>
    %cst_104 = arith.constant dense<0.000000e+00> : vector<128xf32>
    %142 = vector.multi_reduction <add>, %141, %cst_104 [0] : vector<16x128xf32> to vector<128xf32>
    %143 = vector.shape_cast %142 : vector<128xf32> to vector<1x128xf32>
    %144 = arith.addf %73, %143 : vector<1x128xf32>
    %cst_105 = arith.constant 0.000000e+00 : f32
    %145 = vector.broadcast %cst_105 : f32 to vector<16x128xf32>
    %c2_i32_106 = arith.constant 2 : i32
    %146 = arith.addi %0, %c2_i32_106 : i32
    %c0_i32_107 = arith.constant 0 : i32
    %147 = arith.addi %146, %c0_i32_107 : i32
    %c0_108 = arith.constant 0 : index
    %148 = arith.index_cast %147 : i32 to index
    %c0_109 = arith.constant 0 : index
    %c0_110 = arith.constant 0 : index
    %149 = vector.load %arg2[%c0_108, %148, %c0_109, %c0_110] : memref<1x18x18x4xbf16, #tpu.memory_space<vmem>>, vector<1x1x18x4xbf16>
    %150 = vector.shape_cast %149 : vector<1x1x18x4xbf16> to vector<18x4xbf16>
    %151 = vector.extract_strided_slice %150 {offsets = [0, 0], sizes = [16, 4], strides = [1, 1]} : vector<18x4xbf16> to vector<16x4xbf16>
    %c0_111 = arith.constant 0 : index
    %c0_112 = arith.constant 0 : index
    %c0_113 = arith.constant 0 : index
    %152 = vector.load %arg3[%c0_111, %c0_112, %c0_113] : memref<9x4x128xbf16, #tpu.memory_space<vmem>>, vector<1x4x128xbf16>
    %153 = vector.shape_cast %152 : vector<1x4x128xbf16> to vector<4x128xbf16>
    %cst_114 = arith.constant dense<0.000000e+00> : vector<16x128xf32>
    %154 = tpu.matmul %151, %153, %cst_114 {dimension_numbers = #tpu.dot_dimension_numbers<[1], [0], [0], [1], [0, 0, 1, 1], [], []>} : vector<16x4xbf16>, vector<4x128xbf16>, vector<16x128xf32> -> vector<16x128xf32>
    %155 = arith.addf %145, %154 : vector<16x128xf32>
    %156 = vector.extract_strided_slice %150 {offsets = [1, 0], sizes = [16, 4], strides = [1, 1]} : vector<18x4xbf16> to vector<16x4xbf16>
    %c1_115 = arith.constant 1 : index
    %c0_116 = arith.constant 0 : index
    %c0_117 = arith.constant 0 : index
    %157 = vector.load %arg3[%c1_115, %c0_116, %c0_117] : memref<9x4x128xbf16, #tpu.memory_space<vmem>>, vector<1x4x128xbf16>
    %158 = vector.shape_cast %157 : vector<1x4x128xbf16> to vector<4x128xbf16>
    %cst_118 = arith.constant dense<0.000000e+00> : vector<16x128xf32>
    %159 = tpu.matmul %156, %158, %cst_118 {dimension_numbers = #tpu.dot_dimension_numbers<[1], [0], [0], [1], [0, 0, 1, 1], [], []>} : vector<16x4xbf16>, vector<4x128xbf16>, vector<16x128xf32> -> vector<16x128xf32>
    %160 = arith.addf %155, %159 : vector<16x128xf32>
    %161 = vector.extract_strided_slice %150 {offsets = [2, 0], sizes = [16, 4], strides = [1, 1]} : vector<18x4xbf16> to vector<16x4xbf16>
    %c2_119 = arith.constant 2 : index
    %c0_120 = arith.constant 0 : index
    %c0_121 = arith.constant 0 : index
    %162 = vector.load %arg3[%c2_119, %c0_120, %c0_121] : memref<9x4x128xbf16, #tpu.memory_space<vmem>>, vector<1x4x128xbf16>
    %163 = vector.shape_cast %162 : vector<1x4x128xbf16> to vector<4x128xbf16>
    %cst_122 = arith.constant dense<0.000000e+00> : vector<16x128xf32>
    %164 = tpu.matmul %161, %163, %cst_122 {dimension_numbers = #tpu.dot_dimension_numbers<[1], [0], [0], [1], [0, 0, 1, 1], [], []>} : vector<16x4xbf16>, vector<4x128xbf16>, vector<16x128xf32> -> vector<16x128xf32>
    %165 = arith.addf %160, %164 : vector<16x128xf32>
    %c2_i32_123 = arith.constant 2 : i32
    %166 = arith.addi %0, %c2_i32_123 : i32
    %c1_i32_124 = arith.constant 1 : i32
    %167 = arith.addi %166, %c1_i32_124 : i32
    %c0_125 = arith.constant 0 : index
    %168 = arith.index_cast %167 : i32 to index
    %c0_126 = arith.constant 0 : index
    %c0_127 = arith.constant 0 : index
    %169 = vector.load %arg2[%c0_125, %168, %c0_126, %c0_127] : memref<1x18x18x4xbf16, #tpu.memory_space<vmem>>, vector<1x1x18x4xbf16>
    %170 = vector.shape_cast %169 : vector<1x1x18x4xbf16> to vector<18x4xbf16>
    %171 = vector.extract_strided_slice %170 {offsets = [0, 0], sizes = [16, 4], strides = [1, 1]} : vector<18x4xbf16> to vector<16x4xbf16>
    %c3_128 = arith.constant 3 : index
    %c0_129 = arith.constant 0 : index
    %c0_130 = arith.constant 0 : index
    %172 = vector.load %arg3[%c3_128, %c0_129, %c0_130] : memref<9x4x128xbf16, #tpu.memory_space<vmem>>, vector<1x4x128xbf16>
    %173 = vector.shape_cast %172 : vector<1x4x128xbf16> to vector<4x128xbf16>
    %cst_131 = arith.constant dense<0.000000e+00> : vector<16x128xf32>
    %174 = tpu.matmul %171, %173, %cst_131 {dimension_numbers = #tpu.dot_dimension_numbers<[1], [0], [0], [1], [0, 0, 1, 1], [], []>} : vector<16x4xbf16>, vector<4x128xbf16>, vector<16x128xf32> -> vector<16x128xf32>
    %175 = arith.addf %165, %174 : vector<16x128xf32>
    %176 = vector.extract_strided_slice %170 {offsets = [1, 0], sizes = [16, 4], strides = [1, 1]} : vector<18x4xbf16> to vector<16x4xbf16>
    %c4_132 = arith.constant 4 : index
    %c0_133 = arith.constant 0 : index
    %c0_134 = arith.constant 0 : index
    %177 = vector.load %arg3[%c4_132, %c0_133, %c0_134] : memref<9x4x128xbf16, #tpu.memory_space<vmem>>, vector<1x4x128xbf16>
    %178 = vector.shape_cast %177 : vector<1x4x128xbf16> to vector<4x128xbf16>
    %cst_135 = arith.constant dense<0.000000e+00> : vector<16x128xf32>
    %179 = tpu.matmul %176, %178, %cst_135 {dimension_numbers = #tpu.dot_dimension_numbers<[1], [0], [0], [1], [0, 0, 1, 1], [], []>} : vector<16x4xbf16>, vector<4x128xbf16>, vector<16x128xf32> -> vector<16x128xf32>
    %180 = arith.addf %175, %179 : vector<16x128xf32>
    %181 = vector.extract_strided_slice %170 {offsets = [2, 0], sizes = [16, 4], strides = [1, 1]} : vector<18x4xbf16> to vector<16x4xbf16>
    %c5_136 = arith.constant 5 : index
    %c0_137 = arith.constant 0 : index
    %c0_138 = arith.constant 0 : index
    %182 = vector.load %arg3[%c5_136, %c0_137, %c0_138] : memref<9x4x128xbf16, #tpu.memory_space<vmem>>, vector<1x4x128xbf16>
    %183 = vector.shape_cast %182 : vector<1x4x128xbf16> to vector<4x128xbf16>
    %cst_139 = arith.constant dense<0.000000e+00> : vector<16x128xf32>
    %184 = tpu.matmul %181, %183, %cst_139 {dimension_numbers = #tpu.dot_dimension_numbers<[1], [0], [0], [1], [0, 0, 1, 1], [], []>} : vector<16x4xbf16>, vector<4x128xbf16>, vector<16x128xf32> -> vector<16x128xf32>
    %185 = arith.addf %180, %184 : vector<16x128xf32>
    %c2_i32_140 = arith.constant 2 : i32
    %186 = arith.addi %0, %c2_i32_140 : i32
    %c2_i32_141 = arith.constant 2 : i32
    %187 = arith.addi %186, %c2_i32_141 : i32
    %c0_142 = arith.constant 0 : index
    %188 = arith.index_cast %187 : i32 to index
    %c0_143 = arith.constant 0 : index
    %c0_144 = arith.constant 0 : index
    %189 = vector.load %arg2[%c0_142, %188, %c0_143, %c0_144] : memref<1x18x18x4xbf16, #tpu.memory_space<vmem>>, vector<1x1x18x4xbf16>
    %190 = vector.shape_cast %189 : vector<1x1x18x4xbf16> to vector<18x4xbf16>
    %191 = vector.extract_strided_slice %190 {offsets = [0, 0], sizes = [16, 4], strides = [1, 1]} : vector<18x4xbf16> to vector<16x4xbf16>
    %c6_145 = arith.constant 6 : index
    %c0_146 = arith.constant 0 : index
    %c0_147 = arith.constant 0 : index
    %192 = vector.load %arg3[%c6_145, %c0_146, %c0_147] : memref<9x4x128xbf16, #tpu.memory_space<vmem>>, vector<1x4x128xbf16>
    %193 = vector.shape_cast %192 : vector<1x4x128xbf16> to vector<4x128xbf16>
    %cst_148 = arith.constant dense<0.000000e+00> : vector<16x128xf32>
    %194 = tpu.matmul %191, %193, %cst_148 {dimension_numbers = #tpu.dot_dimension_numbers<[1], [0], [0], [1], [0, 0, 1, 1], [], []>} : vector<16x4xbf16>, vector<4x128xbf16>, vector<16x128xf32> -> vector<16x128xf32>
    %195 = arith.addf %185, %194 : vector<16x128xf32>
    %196 = vector.extract_strided_slice %190 {offsets = [1, 0], sizes = [16, 4], strides = [1, 1]} : vector<18x4xbf16> to vector<16x4xbf16>
    %c7_149 = arith.constant 7 : index
    %c0_150 = arith.constant 0 : index
    %c0_151 = arith.constant 0 : index
    %197 = vector.load %arg3[%c7_149, %c0_150, %c0_151] : memref<9x4x128xbf16, #tpu.memory_space<vmem>>, vector<1x4x128xbf16>
    %198 = vector.shape_cast %197 : vector<1x4x128xbf16> to vector<4x128xbf16>
    %cst_152 = arith.constant dense<0.000000e+00> : vector<16x128xf32>
    %199 = tpu.matmul %196, %198, %cst_152 {dimension_numbers = #tpu.dot_dimension_numbers<[1], [0], [0], [1], [0, 0, 1, 1], [], []>} : vector<16x4xbf16>, vector<4x128xbf16>, vector<16x128xf32> -> vector<16x128xf32>
    %200 = arith.addf %195, %199 : vector<16x128xf32>
    %201 = vector.extract_strided_slice %190 {offsets = [2, 0], sizes = [16, 4], strides = [1, 1]} : vector<18x4xbf16> to vector<16x4xbf16>
    %c8_153 = arith.constant 8 : index
    %c0_154 = arith.constant 0 : index
    %c0_155 = arith.constant 0 : index
    %202 = vector.load %arg3[%c8_153, %c0_154, %c0_155] : memref<9x4x128xbf16, #tpu.memory_space<vmem>>, vector<1x4x128xbf16>
    %203 = vector.shape_cast %202 : vector<1x4x128xbf16> to vector<4x128xbf16>
    %cst_156 = arith.constant dense<0.000000e+00> : vector<16x128xf32>
    %204 = tpu.matmul %201, %203, %cst_156 {dimension_numbers = #tpu.dot_dimension_numbers<[1], [0], [0], [1], [0, 0, 1, 1], [], []>} : vector<16x4xbf16>, vector<4x128xbf16>, vector<16x128xf32> -> vector<16x128xf32>
    %205 = arith.addf %200, %204 : vector<16x128xf32>
    %c0_157 = arith.constant 0 : index
    %c2_158 = arith.constant 2 : index
    %c0_159 = arith.constant 0 : index
    %c0_160 = arith.constant 0 : index
    %206 = vector.load %arg4[%c0_157, %c2_158, %c0_159, %c0_160] : memref<1x8x16x128xf32, #tpu.memory_space<vmem>>, vector<1x1x16x128xf32>
    %207 = vector.shape_cast %206 : vector<1x1x16x128xf32> to vector<16x128xf32>
    %208 = vector.shape_cast %205 : vector<16x128xf32> to vector<1x1x16x128xf32>
    tpu.vector_store %arg4[%c0_157, %c2_158, %c0_159, %c0_160], %208 {strides = array<i32>} : memref<1x8x16x128xf32, #tpu.memory_space<vmem>>, vector<1x1x16x128xf32>,
    %cst_161 = arith.constant dense<0.000000e+00> : vector<128xf32>
    %209 = vector.multi_reduction <add>, %205, %cst_161 [0] : vector<16x128xf32> to vector<128xf32>
    %210 = vector.shape_cast %209 : vector<128xf32> to vector<1x128xf32>
    %211 = arith.addf %140, %210 : vector<1x128xf32>
    %212 = arith.mulf %205, %205 : vector<16x128xf32>
    %cst_162 = arith.constant dense<0.000000e+00> : vector<128xf32>
    %213 = vector.multi_reduction <add>, %212, %cst_162 [0] : vector<16x128xf32> to vector<128xf32>
    %214 = vector.shape_cast %213 : vector<128xf32> to vector<1x128xf32>
    %215 = arith.addf %144, %214 : vector<1x128xf32>
    %cst_163 = arith.constant 0.000000e+00 : f32
    %216 = vector.broadcast %cst_163 : f32 to vector<16x128xf32>
    %c3_i32 = arith.constant 3 : i32
    %217 = arith.addi %0, %c3_i32 : i32
    %c0_i32_164 = arith.constant 0 : i32
    %218 = arith.addi %217, %c0_i32_164 : i32
    %c0_165 = arith.constant 0 : index
    %219 = arith.index_cast %218 : i32 to index
    %c0_166 = arith.constant 0 : index
    %c0_167 = arith.constant 0 : index
    %220 = vector.load %arg2[%c0_165, %219, %c0_166, %c0_167] : memref<1x18x18x4xbf16, #tpu.memory_space<vmem>>, vector<1x1x18x4xbf16>
    %221 = vector.shape_cast %220 : vector<1x1x18x4xbf16> to vector<18x4xbf16>
    %222 = vector.extract_strided_slice %221 {offsets = [0, 0], sizes = [16, 4], strides = [1, 1]} : vector<18x4xbf16> to vector<16x4xbf16>
    %c0_168 = arith.constant 0 : index
    %c0_169 = arith.constant 0 : index
    %c0_170 = arith.constant 0 : index
    %223 = vector.load %arg3[%c0_168, %c0_169, %c0_170] : memref<9x4x128xbf16, #tpu.memory_space<vmem>>, vector<1x4x128xbf16>
    %224 = vector.shape_cast %223 : vector<1x4x128xbf16> to vector<4x128xbf16>
    %cst_171 = arith.constant dense<0.000000e+00> : vector<16x128xf32>
    %225 = tpu.matmul %222, %224, %cst_171 {dimension_numbers = #tpu.dot_dimension_numbers<[1], [0], [0], [1], [0, 0, 1, 1], [], []>} : vector<16x4xbf16>, vector<4x128xbf16>, vector<16x128xf32> -> vector<16x128xf32>
    %226 = arith.addf %216, %225 : vector<16x128xf32>
    %227 = vector.extract_strided_slice %221 {offsets = [1, 0], sizes = [16, 4], strides = [1, 1]} : vector<18x4xbf16> to vector<16x4xbf16>
    %c1_172 = arith.constant 1 : index
    %c0_173 = arith.constant 0 : index
    %c0_174 = arith.constant 0 : index
    %228 = vector.load %arg3[%c1_172, %c0_173, %c0_174] : memref<9x4x128xbf16, #tpu.memory_space<vmem>>, vector<1x4x128xbf16>
    %229 = vector.shape_cast %228 : vector<1x4x128xbf16> to vector<4x128xbf16>
    %cst_175 = arith.constant dense<0.000000e+00> : vector<16x128xf32>
    %230 = tpu.matmul %227, %229, %cst_175 {dimension_numbers = #tpu.dot_dimension_numbers<[1], [0], [0], [1], [0, 0, 1, 1], [], []>} : vector<16x4xbf16>, vector<4x128xbf16>, vector<16x128xf32> -> vector<16x128xf32>
    %231 = arith.addf %226, %230 : vector<16x128xf32>
    %232 = vector.extract_strided_slice %221 {offsets = [2, 0], sizes = [16, 4], strides = [1, 1]} : vector<18x4xbf16> to vector<16x4xbf16>
    %c2_176 = arith.constant 2 : index
    %c0_177 = arith.constant 0 : index
    %c0_178 = arith.constant 0 : index
    %233 = vector.load %arg3[%c2_176, %c0_177, %c0_178] : memref<9x4x128xbf16, #tpu.memory_space<vmem>>, vector<1x4x128xbf16>
    %234 = vector.shape_cast %233 : vector<1x4x128xbf16> to vector<4x128xbf16>
    %cst_179 = arith.constant dense<0.000000e+00> : vector<16x128xf32>
    %235 = tpu.matmul %232, %234, %cst_179 {dimension_numbers = #tpu.dot_dimension_numbers<[1], [0], [0], [1], [0, 0, 1, 1], [], []>} : vector<16x4xbf16>, vector<4x128xbf16>, vector<16x128xf32> -> vector<16x128xf32>
    %236 = arith.addf %231, %235 : vector<16x128xf32>
    %c3_i32_180 = arith.constant 3 : i32
    %237 = arith.addi %0, %c3_i32_180 : i32
    %c1_i32_181 = arith.constant 1 : i32
    %238 = arith.addi %237, %c1_i32_181 : i32
    %c0_182 = arith.constant 0 : index
    %239 = arith.index_cast %238 : i32 to index
    %c0_183 = arith.constant 0 : index
    %c0_184 = arith.constant 0 : index
    %240 = vector.load %arg2[%c0_182, %239, %c0_183, %c0_184] : memref<1x18x18x4xbf16, #tpu.memory_space<vmem>>, vector<1x1x18x4xbf16>
    %241 = vector.shape_cast %240 : vector<1x1x18x4xbf16> to vector<18x4xbf16>
    %242 = vector.extract_strided_slice %241 {offsets = [0, 0], sizes = [16, 4], strides = [1, 1]} : vector<18x4xbf16> to vector<16x4xbf16>
    %c3_185 = arith.constant 3 : index
    %c0_186 = arith.constant 0 : index
    %c0_187 = arith.constant 0 : index
    %243 = vector.load %arg3[%c3_185, %c0_186, %c0_187] : memref<9x4x128xbf16, #tpu.memory_space<vmem>>, vector<1x4x128xbf16>
    %244 = vector.shape_cast %243 : vector<1x4x128xbf16> to vector<4x128xbf16>
    %cst_188 = arith.constant dense<0.000000e+00> : vector<16x128xf32>
    %245 = tpu.matmul %242, %244, %cst_188 {dimension_numbers = #tpu.dot_dimension_numbers<[1], [0], [0], [1], [0, 0, 1, 1], [], []>} : vector<16x4xbf16>, vector<4x128xbf16>, vector<16x128xf32> -> vector<16x128xf32>
    %246 = arith.addf %236, %245 : vector<16x128xf32>
    %247 = vector.extract_strided_slice %241 {offsets = [1, 0], sizes = [16, 4], strides = [1, 1]} : vector<18x4xbf16> to vector<16x4xbf16>
    %c4_189 = arith.constant 4 : index
    %c0_190 = arith.constant 0 : index
    %c0_191 = arith.constant 0 : index
    %248 = vector.load %arg3[%c4_189, %c0_190, %c0_191] : memref<9x4x128xbf16, #tpu.memory_space<vmem>>, vector<1x4x128xbf16>
    %249 = vector.shape_cast %248 : vector<1x4x128xbf16> to vector<4x128xbf16>
    %cst_192 = arith.constant dense<0.000000e+00> : vector<16x128xf32>
    %250 = tpu.matmul %247, %249, %cst_192 {dimension_numbers = #tpu.dot_dimension_numbers<[1], [0], [0], [1], [0, 0, 1, 1], [], []>} : vector<16x4xbf16>, vector<4x128xbf16>, vector<16x128xf32> -> vector<16x128xf32>
    %251 = arith.addf %246, %250 : vector<16x128xf32>
    %252 = vector.extract_strided_slice %241 {offsets = [2, 0], sizes = [16, 4], strides = [1, 1]} : vector<18x4xbf16> to vector<16x4xbf16>
    %c5_193 = arith.constant 5 : index
    %c0_194 = arith.constant 0 : index
    %c0_195 = arith.constant 0 : index
    %253 = vector.load %arg3[%c5_193, %c0_194, %c0_195] : memref<9x4x128xbf16, #tpu.memory_space<vmem>>, vector<1x4x128xbf16>
    %254 = vector.shape_cast %253 : vector<1x4x128xbf16> to vector<4x128xbf16>
    %cst_196 = arith.constant dense<0.000000e+00> : vector<16x128xf32>
    %255 = tpu.matmul %252, %254, %cst_196 {dimension_numbers = #tpu.dot_dimension_numbers<[1], [0], [0], [1], [0, 0, 1, 1], [], []>} : vector<16x4xbf16>, vector<4x128xbf16>, vector<16x128xf32> -> vector<16x128xf32>
    %256 = arith.addf %251, %255 : vector<16x128xf32>
    %c3_i32_197 = arith.constant 3 : i32
    %257 = arith.addi %0, %c3_i32_197 : i32
    %c2_i32_198 = arith.constant 2 : i32
    %258 = arith.addi %257, %c2_i32_198 : i32
    %c0_199 = arith.constant 0 : index
    %259 = arith.index_cast %258 : i32 to index
    %c0_200 = arith.constant 0 : index
    %c0_201 = arith.constant 0 : index
    %260 = vector.load %arg2[%c0_199, %259, %c0_200, %c0_201] : memref<1x18x18x4xbf16, #tpu.memory_space<vmem>>, vector<1x1x18x4xbf16>
    %261 = vector.shape_cast %260 : vector<1x1x18x4xbf16> to vector<18x4xbf16>
    %262 = vector.extract_strided_slice %261 {offsets = [0, 0], sizes = [16, 4], strides = [1, 1]} : vector<18x4xbf16> to vector<16x4xbf16>
    %c6_202 = arith.constant 6 : index
    %c0_203 = arith.constant 0 : index
    %c0_204 = arith.constant 0 : index
    %263 = vector.load %arg3[%c6_202, %c0_203, %c0_204] : memref<9x4x128xbf16, #tpu.memory_space<vmem>>, vector<1x4x128xbf16>
    %264 = vector.shape_cast %263 : vector<1x4x128xbf16> to vector<4x128xbf16>
    %cst_205 = arith.constant dense<0.000000e+00> : vector<16x128xf32>
    %265 = tpu.matmul %262, %264, %cst_205 {dimension_numbers = #tpu.dot_dimension_numbers<[1], [0], [0], [1], [0, 0, 1, 1], [], []>} : vector<16x4xbf16>, vector<4x128xbf16>, vector<16x128xf32> -> vector<16x128xf32>
    %266 = arith.addf %256, %265 : vector<16x128xf32>
    %267 = vector.extract_strided_slice %261 {offsets = [1, 0], sizes = [16, 4], strides = [1, 1]} : vector<18x4xbf16> to vector<16x4xbf16>
    %c7_206 = arith.constant 7 : index
    %c0_207 = arith.constant 0 : index
    %c0_208 = arith.constant 0 : index
    %268 = vector.load %arg3[%c7_206, %c0_207, %c0_208] : memref<9x4x128xbf16, #tpu.memory_space<vmem>>, vector<1x4x128xbf16>
    %269 = vector.shape_cast %268 : vector<1x4x128xbf16> to vector<4x128xbf16>
    %cst_209 = arith.constant dense<0.000000e+00> : vector<16x128xf32>
    %270 = tpu.matmul %267, %269, %cst_209 {dimension_numbers = #tpu.dot_dimension_numbers<[1], [0], [0], [1], [0, 0, 1, 1], [], []>} : vector<16x4xbf16>, vector<4x128xbf16>, vector<16x128xf32> -> vector<16x128xf32>
    %271 = arith.addf %266, %270 : vector<16x128xf32>
    %272 = vector.extract_strided_slice %261 {offsets = [2, 0], sizes = [16, 4], strides = [1, 1]} : vector<18x4xbf16> to vector<16x4xbf16>
    %c8_210 = arith.constant 8 : index
    %c0_211 = arith.constant 0 : index
    %c0_212 = arith.constant 0 : index
    %273 = vector.load %arg3[%c8_210, %c0_211, %c0_212] : memref<9x4x128xbf16, #tpu.memory_space<vmem>>, vector<1x4x128xbf16>
    %274 = vector.shape_cast %273 : vector<1x4x128xbf16> to vector<4x128xbf16>
    %cst_213 = arith.constant dense<0.000000e+00> : vector<16x128xf32>
    %275 = tpu.matmul %272, %274, %cst_213 {dimension_numbers = #tpu.dot_dimension_numbers<[1], [0], [0], [1], [0, 0, 1, 1], [], []>} : vector<16x4xbf16>, vector<4x128xbf16>, vector<16x128xf32> -> vector<16x128xf32>
    %276 = arith.addf %271, %275 : vector<16x128xf32>
    %c0_214 = arith.constant 0 : index
    %c3_215 = arith.constant 3 : index
    %c0_216 = arith.constant 0 : index
    %c0_217 = arith.constant 0 : index
    %277 = vector.load %arg4[%c0_214, %c3_215, %c0_216, %c0_217] : memref<1x8x16x128xf32, #tpu.memory_space<vmem>>, vector<1x1x16x128xf32>
    %278 = vector.shape_cast %277 : vector<1x1x16x128xf32> to vector<16x128xf32>
    %279 = vector.shape_cast %276 : vector<16x128xf32> to vector<1x1x16x128xf32>
    tpu.vector_store %arg4[%c0_214, %c3_215, %c0_216, %c0_217], %279 {strides = array<i32>} : memref<1x8x16x128xf32, #tpu.memory_space<vmem>>, vector<1x1x16x128xf32>,
    %cst_218 = arith.constant dense<0.000000e+00> : vector<128xf32>
    %280 = vector.multi_reduction <add>, %276, %cst_218 [0] : vector<16x128xf32> to vector<128xf32>
    %281 = vector.shape_cast %280 : vector<128xf32> to vector<1x128xf32>
    %282 = arith.addf %211, %281 : vector<1x128xf32>
    %283 = arith.mulf %276, %276 : vector<16x128xf32>
    %cst_219 = arith.constant dense<0.000000e+00> : vector<128xf32>
    %284 = vector.multi_reduction <add>, %283, %cst_219 [0] : vector<16x128xf32> to vector<128xf32>
    %285 = vector.shape_cast %284 : vector<128xf32> to vector<1x128xf32>
    %286 = arith.addf %215, %285 : vector<1x128xf32>
    %cst_220 = arith.constant 0.000000e+00 : f32
    %287 = vector.broadcast %cst_220 : f32 to vector<16x128xf32>
    %c4_i32 = arith.constant 4 : i32
    %288 = arith.addi %0, %c4_i32 : i32
    %c0_i32_221 = arith.constant 0 : i32
    %289 = arith.addi %288, %c0_i32_221 : i32
    %c0_222 = arith.constant 0 : index
    %290 = arith.index_cast %289 : i32 to index
    %c0_223 = arith.constant 0 : index
    %c0_224 = arith.constant 0 : index
    %291 = vector.load %arg2[%c0_222, %290, %c0_223, %c0_224] : memref<1x18x18x4xbf16, #tpu.memory_space<vmem>>, vector<1x1x18x4xbf16>
    %292 = vector.shape_cast %291 : vector<1x1x18x4xbf16> to vector<18x4xbf16>
    %293 = vector.extract_strided_slice %292 {offsets = [0, 0], sizes = [16, 4], strides = [1, 1]} : vector<18x4xbf16> to vector<16x4xbf16>
    %c0_225 = arith.constant 0 : index
    %c0_226 = arith.constant 0 : index
    %c0_227 = arith.constant 0 : index
    %294 = vector.load %arg3[%c0_225, %c0_226, %c0_227] : memref<9x4x128xbf16, #tpu.memory_space<vmem>>, vector<1x4x128xbf16>
    %295 = vector.shape_cast %294 : vector<1x4x128xbf16> to vector<4x128xbf16>
    %cst_228 = arith.constant dense<0.000000e+00> : vector<16x128xf32>
    %296 = tpu.matmul %293, %295, %cst_228 {dimension_numbers = #tpu.dot_dimension_numbers<[1], [0], [0], [1], [0, 0, 1, 1], [], []>} : vector<16x4xbf16>, vector<4x128xbf16>, vector<16x128xf32> -> vector<16x128xf32>
    %297 = arith.addf %287, %296 : vector<16x128xf32>
    %298 = vector.extract_strided_slice %292 {offsets = [1, 0], sizes = [16, 4], strides = [1, 1]} : vector<18x4xbf16> to vector<16x4xbf16>
    %c1_229 = arith.constant 1 : index
    %c0_230 = arith.constant 0 : index
    %c0_231 = arith.constant 0 : index
    %299 = vector.load %arg3[%c1_229, %c0_230, %c0_231] : memref<9x4x128xbf16, #tpu.memory_space<vmem>>, vector<1x4x128xbf16>
    %300 = vector.shape_cast %299 : vector<1x4x128xbf16> to vector<4x128xbf16>
    %cst_232 = arith.constant dense<0.000000e+00> : vector<16x128xf32>
    %301 = tpu.matmul %298, %300, %cst_232 {dimension_numbers = #tpu.dot_dimension_numbers<[1], [0], [0], [1], [0, 0, 1, 1], [], []>} : vector<16x4xbf16>, vector<4x128xbf16>, vector<16x128xf32> -> vector<16x128xf32>
    %302 = arith.addf %297, %301 : vector<16x128xf32>
    %303 = vector.extract_strided_slice %292 {offsets = [2, 0], sizes = [16, 4], strides = [1, 1]} : vector<18x4xbf16> to vector<16x4xbf16>
    %c2_233 = arith.constant 2 : index
    %c0_234 = arith.constant 0 : index
    %c0_235 = arith.constant 0 : index
    %304 = vector.load %arg3[%c2_233, %c0_234, %c0_235] : memref<9x4x128xbf16, #tpu.memory_space<vmem>>, vector<1x4x128xbf16>
    %305 = vector.shape_cast %304 : vector<1x4x128xbf16> to vector<4x128xbf16>
    %cst_236 = arith.constant dense<0.000000e+00> : vector<16x128xf32>
    %306 = tpu.matmul %303, %305, %cst_236 {dimension_numbers = #tpu.dot_dimension_numbers<[1], [0], [0], [1], [0, 0, 1, 1], [], []>} : vector<16x4xbf16>, vector<4x128xbf16>, vector<16x128xf32> -> vector<16x128xf32>
    %307 = arith.addf %302, %306 : vector<16x128xf32>
    %c4_i32_237 = arith.constant 4 : i32
    %308 = arith.addi %0, %c4_i32_237 : i32
    %c1_i32_238 = arith.constant 1 : i32
    %309 = arith.addi %308, %c1_i32_238 : i32
    %c0_239 = arith.constant 0 : index
    %310 = arith.index_cast %309 : i32 to index
    %c0_240 = arith.constant 0 : index
    %c0_241 = arith.constant 0 : index
    %311 = vector.load %arg2[%c0_239, %310, %c0_240, %c0_241] : memref<1x18x18x4xbf16, #tpu.memory_space<vmem>>, vector<1x1x18x4xbf16>
    %312 = vector.shape_cast %311 : vector<1x1x18x4xbf16> to vector<18x4xbf16>
    %313 = vector.extract_strided_slice %312 {offsets = [0, 0], sizes = [16, 4], strides = [1, 1]} : vector<18x4xbf16> to vector<16x4xbf16>
    %c3_242 = arith.constant 3 : index
    %c0_243 = arith.constant 0 : index
    %c0_244 = arith.constant 0 : index
    %314 = vector.load %arg3[%c3_242, %c0_243, %c0_244] : memref<9x4x128xbf16, #tpu.memory_space<vmem>>, vector<1x4x128xbf16>
    %315 = vector.shape_cast %314 : vector<1x4x128xbf16> to vector<4x128xbf16>
    %cst_245 = arith.constant dense<0.000000e+00> : vector<16x128xf32>
    %316 = tpu.matmul %313, %315, %cst_245 {dimension_numbers = #tpu.dot_dimension_numbers<[1], [0], [0], [1], [0, 0, 1, 1], [], []>} : vector<16x4xbf16>, vector<4x128xbf16>, vector<16x128xf32> -> vector<16x128xf32>
    %317 = arith.addf %307, %316 : vector<16x128xf32>
    %318 = vector.extract_strided_slice %312 {offsets = [1, 0], sizes = [16, 4], strides = [1, 1]} : vector<18x4xbf16> to vector<16x4xbf16>
    %c4_246 = arith.constant 4 : index
    %c0_247 = arith.constant 0 : index
    %c0_248 = arith.constant 0 : index
    %319 = vector.load %arg3[%c4_246, %c0_247, %c0_248] : memref<9x4x128xbf16, #tpu.memory_space<vmem>>, vector<1x4x128xbf16>
    %320 = vector.shape_cast %319 : vector<1x4x128xbf16> to vector<4x128xbf16>
    %cst_249 = arith.constant dense<0.000000e+00> : vector<16x128xf32>
    %321 = tpu.matmul %318, %320, %cst_249 {dimension_numbers = #tpu.dot_dimension_numbers<[1], [0], [0], [1], [0, 0, 1, 1], [], []>} : vector<16x4xbf16>, vector<4x128xbf16>, vector<16x128xf32> -> vector<16x128xf32>
    %322 = arith.addf %317, %321 : vector<16x128xf32>
    %323 = vector.extract_strided_slice %312 {offsets = [2, 0], sizes = [16, 4], strides = [1, 1]} : vector<18x4xbf16> to vector<16x4xbf16>
    %c5_250 = arith.constant 5 : index
    %c0_251 = arith.constant 0 : index
    %c0_252 = arith.constant 0 : index
    %324 = vector.load %arg3[%c5_250, %c0_251, %c0_252] : memref<9x4x128xbf16, #tpu.memory_space<vmem>>, vector<1x4x128xbf16>
    %325 = vector.shape_cast %324 : vector<1x4x128xbf16> to vector<4x128xbf16>
    %cst_253 = arith.constant dense<0.000000e+00> : vector<16x128xf32>
    %326 = tpu.matmul %323, %325, %cst_253 {dimension_numbers = #tpu.dot_dimension_numbers<[1], [0], [0], [1], [0, 0, 1, 1], [], []>} : vector<16x4xbf16>, vector<4x128xbf16>, vector<16x128xf32> -> vector<16x128xf32>
    %327 = arith.addf %322, %326 : vector<16x128xf32>
    %c4_i32_254 = arith.constant 4 : i32
    %328 = arith.addi %0, %c4_i32_254 : i32
    %c2_i32_255 = arith.constant 2 : i32
    %329 = arith.addi %328, %c2_i32_255 : i32
    %c0_256 = arith.constant 0 : index
    %330 = arith.index_cast %329 : i32 to index
    %c0_257 = arith.constant 0 : index
    %c0_258 = arith.constant 0 : index
    %331 = vector.load %arg2[%c0_256, %330, %c0_257, %c0_258] : memref<1x18x18x4xbf16, #tpu.memory_space<vmem>>, vector<1x1x18x4xbf16>
    %332 = vector.shape_cast %331 : vector<1x1x18x4xbf16> to vector<18x4xbf16>
    %333 = vector.extract_strided_slice %332 {offsets = [0, 0], sizes = [16, 4], strides = [1, 1]} : vector<18x4xbf16> to vector<16x4xbf16>
    %c6_259 = arith.constant 6 : index
    %c0_260 = arith.constant 0 : index
    %c0_261 = arith.constant 0 : index
    %334 = vector.load %arg3[%c6_259, %c0_260, %c0_261] : memref<9x4x128xbf16, #tpu.memory_space<vmem>>, vector<1x4x128xbf16>
    %335 = vector.shape_cast %334 : vector<1x4x128xbf16> to vector<4x128xbf16>
    %cst_262 = arith.constant dense<0.000000e+00> : vector<16x128xf32>
    %336 = tpu.matmul %333, %335, %cst_262 {dimension_numbers = #tpu.dot_dimension_numbers<[1], [0], [0], [1], [0, 0, 1, 1], [], []>} : vector<16x4xbf16>, vector<4x128xbf16>, vector<16x128xf32> -> vector<16x128xf32>
    %337 = arith.addf %327, %336 : vector<16x128xf32>
    %338 = vector.extract_strided_slice %332 {offsets = [1, 0], sizes = [16, 4], strides = [1, 1]} : vector<18x4xbf16> to vector<16x4xbf16>
    %c7_263 = arith.constant 7 : index
    %c0_264 = arith.constant 0 : index
    %c0_265 = arith.constant 0 : index
    %339 = vector.load %arg3[%c7_263, %c0_264, %c0_265] : memref<9x4x128xbf16, #tpu.memory_space<vmem>>, vector<1x4x128xbf16>
    %340 = vector.shape_cast %339 : vector<1x4x128xbf16> to vector<4x128xbf16>
    %cst_266 = arith.constant dense<0.000000e+00> : vector<16x128xf32>
    %341 = tpu.matmul %338, %340, %cst_266 {dimension_numbers = #tpu.dot_dimension_numbers<[1], [0], [0], [1], [0, 0, 1, 1], [], []>} : vector<16x4xbf16>, vector<4x128xbf16>, vector<16x128xf32> -> vector<16x128xf32>
    %342 = arith.addf %337, %341 : vector<16x128xf32>
    %343 = vector.extract_strided_slice %332 {offsets = [2, 0], sizes = [16, 4], strides = [1, 1]} : vector<18x4xbf16> to vector<16x4xbf16>
    %c8_267 = arith.constant 8 : index
    %c0_268 = arith.constant 0 : index
    %c0_269 = arith.constant 0 : index
    %344 = vector.load %arg3[%c8_267, %c0_268, %c0_269] : memref<9x4x128xbf16, #tpu.memory_space<vmem>>, vector<1x4x128xbf16>
    %345 = vector.shape_cast %344 : vector<1x4x128xbf16> to vector<4x128xbf16>
    %cst_270 = arith.constant dense<0.000000e+00> : vector<16x128xf32>
    %346 = tpu.matmul %343, %345, %cst_270 {dimension_numbers = #tpu.dot_dimension_numbers<[1], [0], [0], [1], [0, 0, 1, 1], [], []>} : vector<16x4xbf16>, vector<4x128xbf16>, vector<16x128xf32> -> vector<16x128xf32>
    %347 = arith.addf %342, %346 : vector<16x128xf32>
    %c0_271 = arith.constant 0 : index
    %c4_272 = arith.constant 4 : index
    %c0_273 = arith.constant 0 : index
    %c0_274 = arith.constant 0 : index
    %348 = vector.load %arg4[%c0_271, %c4_272, %c0_273, %c0_274] : memref<1x8x16x128xf32, #tpu.memory_space<vmem>>, vector<1x1x16x128xf32>
    %349 = vector.shape_cast %348 : vector<1x1x16x128xf32> to vector<16x128xf32>
    %350 = vector.shape_cast %347 : vector<16x128xf32> to vector<1x1x16x128xf32>
    tpu.vector_store %arg4[%c0_271, %c4_272, %c0_273, %c0_274], %350 {strides = array<i32>} : memref<1x8x16x128xf32, #tpu.memory_space<vmem>>, vector<1x1x16x128xf32>,
    %cst_275 = arith.constant dense<0.000000e+00> : vector<128xf32>
    %351 = vector.multi_reduction <add>, %347, %cst_275 [0] : vector<16x128xf32> to vector<128xf32>
    %352 = vector.shape_cast %351 : vector<128xf32> to vector<1x128xf32>
    %353 = arith.addf %282, %352 : vector<1x128xf32>
    %354 = arith.mulf %347, %347 : vector<16x128xf32>
    %cst_276 = arith.constant dense<0.000000e+00> : vector<128xf32>
    %355 = vector.multi_reduction <add>, %354, %cst_276 [0] : vector<16x128xf32> to vector<128xf32>
    %356 = vector.shape_cast %355 : vector<128xf32> to vector<1x128xf32>
    %357 = arith.addf %286, %356 : vector<1x128xf32>
    %cst_277 = arith.constant 0.000000e+00 : f32
    %358 = vector.broadcast %cst_277 : f32 to vector<16x128xf32>
    %c5_i32 = arith.constant 5 : i32
    %359 = arith.addi %0, %c5_i32 : i32
    %c0_i32_278 = arith.constant 0 : i32
    %360 = arith.addi %359, %c0_i32_278 : i32
    %c0_279 = arith.constant 0 : index
    %361 = arith.index_cast %360 : i32 to index
    %c0_280 = arith.constant 0 : index
    %c0_281 = arith.constant 0 : index
    %362 = vector.load %arg2[%c0_279, %361, %c0_280, %c0_281] : memref<1x18x18x4xbf16, #tpu.memory_space<vmem>>, vector<1x1x18x4xbf16>
    %363 = vector.shape_cast %362 : vector<1x1x18x4xbf16> to vector<18x4xbf16>
    %364 = vector.extract_strided_slice %363 {offsets = [0, 0], sizes = [16, 4], strides = [1, 1]} : vector<18x4xbf16> to vector<16x4xbf16>
    %c0_282 = arith.constant 0 : index
    %c0_283 = arith.constant 0 : index
    %c0_284 = arith.constant 0 : index
    %365 = vector.load %arg3[%c0_282, %c0_283, %c0_284] : memref<9x4x128xbf16, #tpu.memory_space<vmem>>, vector<1x4x128xbf16>
    %366 = vector.shape_cast %365 : vector<1x4x128xbf16> to vector<4x128xbf16>
    %cst_285 = arith.constant dense<0.000000e+00> : vector<16x128xf32>
    %367 = tpu.matmul %364, %366, %cst_285 {dimension_numbers = #tpu.dot_dimension_numbers<[1], [0], [0], [1], [0, 0, 1, 1], [], []>} : vector<16x4xbf16>, vector<4x128xbf16>, vector<16x128xf32> -> vector<16x128xf32>
    %368 = arith.addf %358, %367 : vector<16x128xf32>
    %369 = vector.extract_strided_slice %363 {offsets = [1, 0], sizes = [16, 4], strides = [1, 1]} : vector<18x4xbf16> to vector<16x4xbf16>
    %c1_286 = arith.constant 1 : index
    %c0_287 = arith.constant 0 : index
    %c0_288 = arith.constant 0 : index
    %370 = vector.load %arg3[%c1_286, %c0_287, %c0_288] : memref<9x4x128xbf16, #tpu.memory_space<vmem>>, vector<1x4x128xbf16>
    %371 = vector.shape_cast %370 : vector<1x4x128xbf16> to vector<4x128xbf16>
    %cst_289 = arith.constant dense<0.000000e+00> : vector<16x128xf32>
    %372 = tpu.matmul %369, %371, %cst_289 {dimension_numbers = #tpu.dot_dimension_numbers<[1], [0], [0], [1], [0, 0, 1, 1], [], []>} : vector<16x4xbf16>, vector<4x128xbf16>, vector<16x128xf32> -> vector<16x128xf32>
    %373 = arith.addf %368, %372 : vector<16x128xf32>
    %374 = vector.extract_strided_slice %363 {offsets = [2, 0], sizes = [16, 4], strides = [1, 1]} : vector<18x4xbf16> to vector<16x4xbf16>
    %c2_290 = arith.constant 2 : index
    %c0_291 = arith.constant 0 : index
    %c0_292 = arith.constant 0 : index
    %375 = vector.load %arg3[%c2_290, %c0_291, %c0_292] : memref<9x4x128xbf16, #tpu.memory_space<vmem>>, vector<1x4x128xbf16>
    %376 = vector.shape_cast %375 : vector<1x4x128xbf16> to vector<4x128xbf16>
    %cst_293 = arith.constant dense<0.000000e+00> : vector<16x128xf32>
    %377 = tpu.matmul %374, %376, %cst_293 {dimension_numbers = #tpu.dot_dimension_numbers<[1], [0], [0], [1], [0, 0, 1, 1], [], []>} : vector<16x4xbf16>, vector<4x128xbf16>, vector<16x128xf32> -> vector<16x128xf32>
    %378 = arith.addf %373, %377 : vector<16x128xf32>
    %c5_i32_294 = arith.constant 5 : i32
    %379 = arith.addi %0, %c5_i32_294 : i32
    %c1_i32_295 = arith.constant 1 : i32
    %380 = arith.addi %379, %c1_i32_295 : i32
    %c0_296 = arith.constant 0 : index
    %381 = arith.index_cast %380 : i32 to index
    %c0_297 = arith.constant 0 : index
    %c0_298 = arith.constant 0 : index
    %382 = vector.load %arg2[%c0_296, %381, %c0_297, %c0_298] : memref<1x18x18x4xbf16, #tpu.memory_space<vmem>>, vector<1x1x18x4xbf16>
    %383 = vector.shape_cast %382 : vector<1x1x18x4xbf16> to vector<18x4xbf16>
    %384 = vector.extract_strided_slice %383 {offsets = [0, 0], sizes = [16, 4], strides = [1, 1]} : vector<18x4xbf16> to vector<16x4xbf16>
    %c3_299 = arith.constant 3 : index
    %c0_300 = arith.constant 0 : index
    %c0_301 = arith.constant 0 : index
    %385 = vector.load %arg3[%c3_299, %c0_300, %c0_301] : memref<9x4x128xbf16, #tpu.memory_space<vmem>>, vector<1x4x128xbf16>
    %386 = vector.shape_cast %385 : vector<1x4x128xbf16> to vector<4x128xbf16>
    %cst_302 = arith.constant dense<0.000000e+00> : vector<16x128xf32>
    %387 = tpu.matmul %384, %386, %cst_302 {dimension_numbers = #tpu.dot_dimension_numbers<[1], [0], [0], [1], [0, 0, 1, 1], [], []>} : vector<16x4xbf16>, vector<4x128xbf16>, vector<16x128xf32> -> vector<16x128xf32>
    %388 = arith.addf %378, %387 : vector<16x128xf32>
    %389 = vector.extract_strided_slice %383 {offsets = [1, 0], sizes = [16, 4], strides = [1, 1]} : vector<18x4xbf16> to vector<16x4xbf16>
    %c4_303 = arith.constant 4 : index
    %c0_304 = arith.constant 0 : index
    %c0_305 = arith.constant 0 : index
    %390 = vector.load %arg3[%c4_303, %c0_304, %c0_305] : memref<9x4x128xbf16, #tpu.memory_space<vmem>>, vector<1x4x128xbf16>
    %391 = vector.shape_cast %390 : vector<1x4x128xbf16> to vector<4x128xbf16>
    %cst_306 = arith.constant dense<0.000000e+00> : vector<16x128xf32>
    %392 = tpu.matmul %389, %391, %cst_306 {dimension_numbers = #tpu.dot_dimension_numbers<[1], [0], [0], [1], [0, 0, 1, 1], [], []>} : vector<16x4xbf16>, vector<4x128xbf16>, vector<16x128xf32> -> vector<16x128xf32>
    %393 = arith.addf %388, %392 : vector<16x128xf32>
    %394 = vector.extract_strided_slice %383 {offsets = [2, 0], sizes = [16, 4], strides = [1, 1]} : vector<18x4xbf16> to vector<16x4xbf16>
    %c5_307 = arith.constant 5 : index
    %c0_308 = arith.constant 0 : index
    %c0_309 = arith.constant 0 : index
    %395 = vector.load %arg3[%c5_307, %c0_308, %c0_309] : memref<9x4x128xbf16, #tpu.memory_space<vmem>>, vector<1x4x128xbf16>
    %396 = vector.shape_cast %395 : vector<1x4x128xbf16> to vector<4x128xbf16>
    %cst_310 = arith.constant dense<0.000000e+00> : vector<16x128xf32>
    %397 = tpu.matmul %394, %396, %cst_310 {dimension_numbers = #tpu.dot_dimension_numbers<[1], [0], [0], [1], [0, 0, 1, 1], [], []>} : vector<16x4xbf16>, vector<4x128xbf16>, vector<16x128xf32> -> vector<16x128xf32>
    %398 = arith.addf %393, %397 : vector<16x128xf32>
    %c5_i32_311 = arith.constant 5 : i32
    %399 = arith.addi %0, %c5_i32_311 : i32
    %c2_i32_312 = arith.constant 2 : i32
    %400 = arith.addi %399, %c2_i32_312 : i32
    %c0_313 = arith.constant 0 : index
    %401 = arith.index_cast %400 : i32 to index
    %c0_314 = arith.constant 0 : index
    %c0_315 = arith.constant 0 : index
    %402 = vector.load %arg2[%c0_313, %401, %c0_314, %c0_315] : memref<1x18x18x4xbf16, #tpu.memory_space<vmem>>, vector<1x1x18x4xbf16>
    %403 = vector.shape_cast %402 : vector<1x1x18x4xbf16> to vector<18x4xbf16>
    %404 = vector.extract_strided_slice %403 {offsets = [0, 0], sizes = [16, 4], strides = [1, 1]} : vector<18x4xbf16> to vector<16x4xbf16>
    %c6_316 = arith.constant 6 : index
    %c0_317 = arith.constant 0 : index
    %c0_318 = arith.constant 0 : index
    %405 = vector.load %arg3[%c6_316, %c0_317, %c0_318] : memref<9x4x128xbf16, #tpu.memory_space<vmem>>, vector<1x4x128xbf16>
    %406 = vector.shape_cast %405 : vector<1x4x128xbf16> to vector<4x128xbf16>
    %cst_319 = arith.constant dense<0.000000e+00> : vector<16x128xf32>
    %407 = tpu.matmul %404, %406, %cst_319 {dimension_numbers = #tpu.dot_dimension_numbers<[1], [0], [0], [1], [0, 0, 1, 1], [], []>} : vector<16x4xbf16>, vector<4x128xbf16>, vector<16x128xf32> -> vector<16x128xf32>
    %408 = arith.addf %398, %407 : vector<16x128xf32>
    %409 = vector.extract_strided_slice %403 {offsets = [1, 0], sizes = [16, 4], strides = [1, 1]} : vector<18x4xbf16> to vector<16x4xbf16>
    %c7_320 = arith.constant 7 : index
    %c0_321 = arith.constant 0 : index
    %c0_322 = arith.constant 0 : index
    %410 = vector.load %arg3[%c7_320, %c0_321, %c0_322] : memref<9x4x128xbf16, #tpu.memory_space<vmem>>, vector<1x4x128xbf16>
    %411 = vector.shape_cast %410 : vector<1x4x128xbf16> to vector<4x128xbf16>
    %cst_323 = arith.constant dense<0.000000e+00> : vector<16x128xf32>
    %412 = tpu.matmul %409, %411, %cst_323 {dimension_numbers = #tpu.dot_dimension_numbers<[1], [0], [0], [1], [0, 0, 1, 1], [], []>} : vector<16x4xbf16>, vector<4x128xbf16>, vector<16x128xf32> -> vector<16x128xf32>
    %413 = arith.addf %408, %412 : vector<16x128xf32>
    %414 = vector.extract_strided_slice %403 {offsets = [2, 0], sizes = [16, 4], strides = [1, 1]} : vector<18x4xbf16> to vector<16x4xbf16>
    %c8_324 = arith.constant 8 : index
    %c0_325 = arith.constant 0 : index
    %c0_326 = arith.constant 0 : index
    %415 = vector.load %arg3[%c8_324, %c0_325, %c0_326] : memref<9x4x128xbf16, #tpu.memory_space<vmem>>, vector<1x4x128xbf16>
    %416 = vector.shape_cast %415 : vector<1x4x128xbf16> to vector<4x128xbf16>
    %cst_327 = arith.constant dense<0.000000e+00> : vector<16x128xf32>
    %417 = tpu.matmul %414, %416, %cst_327 {dimension_numbers = #tpu.dot_dimension_numbers<[1], [0], [0], [1], [0, 0, 1, 1], [], []>} : vector<16x4xbf16>, vector<4x128xbf16>, vector<16x128xf32> -> vector<16x128xf32>
    %418 = arith.addf %413, %417 : vector<16x128xf32>
    %c0_328 = arith.constant 0 : index
    %c5_329 = arith.constant 5 : index
    %c0_330 = arith.constant 0 : index
    %c0_331 = arith.constant 0 : index
    %419 = vector.load %arg4[%c0_328, %c5_329, %c0_330, %c0_331] : memref<1x8x16x128xf32, #tpu.memory_space<vmem>>, vector<1x1x16x128xf32>
    %420 = vector.shape_cast %419 : vector<1x1x16x128xf32> to vector<16x128xf32>
    %421 = vector.shape_cast %418 : vector<16x128xf32> to vector<1x1x16x128xf32>
    tpu.vector_store %arg4[%c0_328, %c5_329, %c0_330, %c0_331], %421 {strides = array<i32>} : memref<1x8x16x128xf32, #tpu.memory_space<vmem>>, vector<1x1x16x128xf32>,
    %cst_332 = arith.constant dense<0.000000e+00> : vector<128xf32>
    %422 = vector.multi_reduction <add>, %418, %cst_332 [0] : vector<16x128xf32> to vector<128xf32>
    %423 = vector.shape_cast %422 : vector<128xf32> to vector<1x128xf32>
    %424 = arith.addf %353, %423 : vector<1x128xf32>
    %425 = arith.mulf %418, %418 : vector<16x128xf32>
    %cst_333 = arith.constant dense<0.000000e+00> : vector<128xf32>
    %426 = vector.multi_reduction <add>, %425, %cst_333 [0] : vector<16x128xf32> to vector<128xf32>
    %427 = vector.shape_cast %426 : vector<128xf32> to vector<1x128xf32>
    %428 = arith.addf %357, %427 : vector<1x128xf32>
    %cst_334 = arith.constant 0.000000e+00 : f32
    %429 = vector.broadcast %cst_334 : f32 to vector<16x128xf32>
    %c6_i32 = arith.constant 6 : i32
    %430 = arith.addi %0, %c6_i32 : i32
    %c0_i32_335 = arith.constant 0 : i32
    %431 = arith.addi %430, %c0_i32_335 : i32
    %c0_336 = arith.constant 0 : index
    %432 = arith.index_cast %431 : i32 to index
    %c0_337 = arith.constant 0 : index
    %c0_338 = arith.constant 0 : index
    %433 = vector.load %arg2[%c0_336, %432, %c0_337, %c0_338] : memref<1x18x18x4xbf16, #tpu.memory_space<vmem>>, vector<1x1x18x4xbf16>
    %434 = vector.shape_cast %433 : vector<1x1x18x4xbf16> to vector<18x4xbf16>
    %435 = vector.extract_strided_slice %434 {offsets = [0, 0], sizes = [16, 4], strides = [1, 1]} : vector<18x4xbf16> to vector<16x4xbf16>
    %c0_339 = arith.constant 0 : index
    %c0_340 = arith.constant 0 : index
    %c0_341 = arith.constant 0 : index
    %436 = vector.load %arg3[%c0_339, %c0_340, %c0_341] : memref<9x4x128xbf16, #tpu.memory_space<vmem>>, vector<1x4x128xbf16>
    %437 = vector.shape_cast %436 : vector<1x4x128xbf16> to vector<4x128xbf16>
    %cst_342 = arith.constant dense<0.000000e+00> : vector<16x128xf32>
    %438 = tpu.matmul %435, %437, %cst_342 {dimension_numbers = #tpu.dot_dimension_numbers<[1], [0], [0], [1], [0, 0, 1, 1], [], []>} : vector<16x4xbf16>, vector<4x128xbf16>, vector<16x128xf32> -> vector<16x128xf32>
    %439 = arith.addf %429, %438 : vector<16x128xf32>
    %440 = vector.extract_strided_slice %434 {offsets = [1, 0], sizes = [16, 4], strides = [1, 1]} : vector<18x4xbf16> to vector<16x4xbf16>
    %c1_343 = arith.constant 1 : index
    %c0_344 = arith.constant 0 : index
    %c0_345 = arith.constant 0 : index
    %441 = vector.load %arg3[%c1_343, %c0_344, %c0_345] : memref<9x4x128xbf16, #tpu.memory_space<vmem>>, vector<1x4x128xbf16>
    %442 = vector.shape_cast %441 : vector<1x4x128xbf16> to vector<4x128xbf16>
    %cst_346 = arith.constant dense<0.000000e+00> : vector<16x128xf32>
    %443 = tpu.matmul %440, %442, %cst_346 {dimension_numbers = #tpu.dot_dimension_numbers<[1], [0], [0], [1], [0, 0, 1, 1], [], []>} : vector<16x4xbf16>, vector<4x128xbf16>, vector<16x128xf32> -> vector<16x128xf32>
    %444 = arith.addf %439, %443 : vector<16x128xf32>
    %445 = vector.extract_strided_slice %434 {offsets = [2, 0], sizes = [16, 4], strides = [1, 1]} : vector<18x4xbf16> to vector<16x4xbf16>
    %c2_347 = arith.constant 2 : index
    %c0_348 = arith.constant 0 : index
    %c0_349 = arith.constant 0 : index
    %446 = vector.load %arg3[%c2_347, %c0_348, %c0_349] : memref<9x4x128xbf16, #tpu.memory_space<vmem>>, vector<1x4x128xbf16>
    %447 = vector.shape_cast %446 : vector<1x4x128xbf16> to vector<4x128xbf16>
    %cst_350 = arith.constant dense<0.000000e+00> : vector<16x128xf32>
    %448 = tpu.matmul %445, %447, %cst_350 {dimension_numbers = #tpu.dot_dimension_numbers<[1], [0], [0], [1], [0, 0, 1, 1], [], []>} : vector<16x4xbf16>, vector<4x128xbf16>, vector<16x128xf32> -> vector<16x128xf32>
    %449 = arith.addf %444, %448 : vector<16x128xf32>
    %c6_i32_351 = arith.constant 6 : i32
    %450 = arith.addi %0, %c6_i32_351 : i32
    %c1_i32_352 = arith.constant 1 : i32
    %451 = arith.addi %450, %c1_i32_352 : i32
    %c0_353 = arith.constant 0 : index
    %452 = arith.index_cast %451 : i32 to index
    %c0_354 = arith.constant 0 : index
    %c0_355 = arith.constant 0 : index
    %453 = vector.load %arg2[%c0_353, %452, %c0_354, %c0_355] : memref<1x18x18x4xbf16, #tpu.memory_space<vmem>>, vector<1x1x18x4xbf16>
    %454 = vector.shape_cast %453 : vector<1x1x18x4xbf16> to vector<18x4xbf16>
    %455 = vector.extract_strided_slice %454 {offsets = [0, 0], sizes = [16, 4], strides = [1, 1]} : vector<18x4xbf16> to vector<16x4xbf16>
    %c3_356 = arith.constant 3 : index
    %c0_357 = arith.constant 0 : index
    %c0_358 = arith.constant 0 : index
    %456 = vector.load %arg3[%c3_356, %c0_357, %c0_358] : memref<9x4x128xbf16, #tpu.memory_space<vmem>>, vector<1x4x128xbf16>
    %457 = vector.shape_cast %456 : vector<1x4x128xbf16> to vector<4x128xbf16>
    %cst_359 = arith.constant dense<0.000000e+00> : vector<16x128xf32>
    %458 = tpu.matmul %455, %457, %cst_359 {dimension_numbers = #tpu.dot_dimension_numbers<[1], [0], [0], [1], [0, 0, 1, 1], [], []>} : vector<16x4xbf16>, vector<4x128xbf16>, vector<16x128xf32> -> vector<16x128xf32>
    %459 = arith.addf %449, %458 : vector<16x128xf32>
    %460 = vector.extract_strided_slice %454 {offsets = [1, 0], sizes = [16, 4], strides = [1, 1]} : vector<18x4xbf16> to vector<16x4xbf16>
    %c4_360 = arith.constant 4 : index
    %c0_361 = arith.constant 0 : index
    %c0_362 = arith.constant 0 : index
    %461 = vector.load %arg3[%c4_360, %c0_361, %c0_362] : memref<9x4x128xbf16, #tpu.memory_space<vmem>>, vector<1x4x128xbf16>
    %462 = vector.shape_cast %461 : vector<1x4x128xbf16> to vector<4x128xbf16>
    %cst_363 = arith.constant dense<0.000000e+00> : vector<16x128xf32>
    %463 = tpu.matmul %460, %462, %cst_363 {dimension_numbers = #tpu.dot_dimension_numbers<[1], [0], [0], [1], [0, 0, 1, 1], [], []>} : vector<16x4xbf16>, vector<4x128xbf16>, vector<16x128xf32> -> vector<16x128xf32>
    %464 = arith.addf %459, %463 : vector<16x128xf32>
    %465 = vector.extract_strided_slice %454 {offsets = [2, 0], sizes = [16, 4], strides = [1, 1]} : vector<18x4xbf16> to vector<16x4xbf16>
    %c5_364 = arith.constant 5 : index
    %c0_365 = arith.constant 0 : index
    %c0_366 = arith.constant 0 : index
    %466 = vector.load %arg3[%c5_364, %c0_365, %c0_366] : memref<9x4x128xbf16, #tpu.memory_space<vmem>>, vector<1x4x128xbf16>
    %467 = vector.shape_cast %466 : vector<1x4x128xbf16> to vector<4x128xbf16>
    %cst_367 = arith.constant dense<0.000000e+00> : vector<16x128xf32>
    %468 = tpu.matmul %465, %467, %cst_367 {dimension_numbers = #tpu.dot_dimension_numbers<[1], [0], [0], [1], [0, 0, 1, 1], [], []>} : vector<16x4xbf16>, vector<4x128xbf16>, vector<16x128xf32> -> vector<16x128xf32>
    %469 = arith.addf %464, %468 : vector<16x128xf32>
    %c6_i32_368 = arith.constant 6 : i32
    %470 = arith.addi %0, %c6_i32_368 : i32
    %c2_i32_369 = arith.constant 2 : i32
    %471 = arith.addi %470, %c2_i32_369 : i32
    %c0_370 = arith.constant 0 : index
    %472 = arith.index_cast %471 : i32 to index
    %c0_371 = arith.constant 0 : index
    %c0_372 = arith.constant 0 : index
    %473 = vector.load %arg2[%c0_370, %472, %c0_371, %c0_372] : memref<1x18x18x4xbf16, #tpu.memory_space<vmem>>, vector<1x1x18x4xbf16>
    %474 = vector.shape_cast %473 : vector<1x1x18x4xbf16> to vector<18x4xbf16>
    %475 = vector.extract_strided_slice %474 {offsets = [0, 0], sizes = [16, 4], strides = [1, 1]} : vector<18x4xbf16> to vector<16x4xbf16>
    %c6_373 = arith.constant 6 : index
    %c0_374 = arith.constant 0 : index
    %c0_375 = arith.constant 0 : index
    %476 = vector.load %arg3[%c6_373, %c0_374, %c0_375] : memref<9x4x128xbf16, #tpu.memory_space<vmem>>, vector<1x4x128xbf16>
    %477 = vector.shape_cast %476 : vector<1x4x128xbf16> to vector<4x128xbf16>
    %cst_376 = arith.constant dense<0.000000e+00> : vector<16x128xf32>
    %478 = tpu.matmul %475, %477, %cst_376 {dimension_numbers = #tpu.dot_dimension_numbers<[1], [0], [0], [1], [0, 0, 1, 1], [], []>} : vector<16x4xbf16>, vector<4x128xbf16>, vector<16x128xf32> -> vector<16x128xf32>
    %479 = arith.addf %469, %478 : vector<16x128xf32>
    %480 = vector.extract_strided_slice %474 {offsets = [1, 0], sizes = [16, 4], strides = [1, 1]} : vector<18x4xbf16> to vector<16x4xbf16>
    %c7_377 = arith.constant 7 : index
    %c0_378 = arith.constant 0 : index
    %c0_379 = arith.constant 0 : index
    %481 = vector.load %arg3[%c7_377, %c0_378, %c0_379] : memref<9x4x128xbf16, #tpu.memory_space<vmem>>, vector<1x4x128xbf16>
    %482 = vector.shape_cast %481 : vector<1x4x128xbf16> to vector<4x128xbf16>
    %cst_380 = arith.constant dense<0.000000e+00> : vector<16x128xf32>
    %483 = tpu.matmul %480, %482, %cst_380 {dimension_numbers = #tpu.dot_dimension_numbers<[1], [0], [0], [1], [0, 0, 1, 1], [], []>} : vector<16x4xbf16>, vector<4x128xbf16>, vector<16x128xf32> -> vector<16x128xf32>
    %484 = arith.addf %479, %483 : vector<16x128xf32>
    %485 = vector.extract_strided_slice %474 {offsets = [2, 0], sizes = [16, 4], strides = [1, 1]} : vector<18x4xbf16> to vector<16x4xbf16>
    %c8_381 = arith.constant 8 : index
    %c0_382 = arith.constant 0 : index
    %c0_383 = arith.constant 0 : index
    %486 = vector.load %arg3[%c8_381, %c0_382, %c0_383] : memref<9x4x128xbf16, #tpu.memory_space<vmem>>, vector<1x4x128xbf16>
    %487 = vector.shape_cast %486 : vector<1x4x128xbf16> to vector<4x128xbf16>
    %cst_384 = arith.constant dense<0.000000e+00> : vector<16x128xf32>
    %488 = tpu.matmul %485, %487, %cst_384 {dimension_numbers = #tpu.dot_dimension_numbers<[1], [0], [0], [1], [0, 0, 1, 1], [], []>} : vector<16x4xbf16>, vector<4x128xbf16>, vector<16x128xf32> -> vector<16x128xf32>
    %489 = arith.addf %484, %488 : vector<16x128xf32>
    %c0_385 = arith.constant 0 : index
    %c6_386 = arith.constant 6 : index
    %c0_387 = arith.constant 0 : index
    %c0_388 = arith.constant 0 : index
    %490 = vector.load %arg4[%c0_385, %c6_386, %c0_387, %c0_388] : memref<1x8x16x128xf32, #tpu.memory_space<vmem>>, vector<1x1x16x128xf32>
    %491 = vector.shape_cast %490 : vector<1x1x16x128xf32> to vector<16x128xf32>
    %492 = vector.shape_cast %489 : vector<16x128xf32> to vector<1x1x16x128xf32>
    tpu.vector_store %arg4[%c0_385, %c6_386, %c0_387, %c0_388], %492 {strides = array<i32>} : memref<1x8x16x128xf32, #tpu.memory_space<vmem>>, vector<1x1x16x128xf32>,
    %cst_389 = arith.constant dense<0.000000e+00> : vector<128xf32>
    %493 = vector.multi_reduction <add>, %489, %cst_389 [0] : vector<16x128xf32> to vector<128xf32>
    %494 = vector.shape_cast %493 : vector<128xf32> to vector<1x128xf32>
    %495 = arith.addf %424, %494 : vector<1x128xf32>
    %496 = arith.mulf %489, %489 : vector<16x128xf32>
    %cst_390 = arith.constant dense<0.000000e+00> : vector<128xf32>
    %497 = vector.multi_reduction <add>, %496, %cst_390 [0] : vector<16x128xf32> to vector<128xf32>
    %498 = vector.shape_cast %497 : vector<128xf32> to vector<1x128xf32>
    %499 = arith.addf %428, %498 : vector<1x128xf32>
    %cst_391 = arith.constant 0.000000e+00 : f32
    %500 = vector.broadcast %cst_391 : f32 to vector<16x128xf32>
    %c7_i32 = arith.constant 7 : i32
    %501 = arith.addi %0, %c7_i32 : i32
    %c0_i32_392 = arith.constant 0 : i32
    %502 = arith.addi %501, %c0_i32_392 : i32
    %c0_393 = arith.constant 0 : index
    %503 = arith.index_cast %502 : i32 to index
    %c0_394 = arith.constant 0 : index
    %c0_395 = arith.constant 0 : index
    %504 = vector.load %arg2[%c0_393, %503, %c0_394, %c0_395] : memref<1x18x18x4xbf16, #tpu.memory_space<vmem>>, vector<1x1x18x4xbf16>
    %505 = vector.shape_cast %504 : vector<1x1x18x4xbf16> to vector<18x4xbf16>
    %506 = vector.extract_strided_slice %505 {offsets = [0, 0], sizes = [16, 4], strides = [1, 1]} : vector<18x4xbf16> to vector<16x4xbf16>
    %c0_396 = arith.constant 0 : index
    %c0_397 = arith.constant 0 : index
    %c0_398 = arith.constant 0 : index
    %507 = vector.load %arg3[%c0_396, %c0_397, %c0_398] : memref<9x4x128xbf16, #tpu.memory_space<vmem>>, vector<1x4x128xbf16>
    %508 = vector.shape_cast %507 : vector<1x4x128xbf16> to vector<4x128xbf16>
    %cst_399 = arith.constant dense<0.000000e+00> : vector<16x128xf32>
    %509 = tpu.matmul %506, %508, %cst_399 {dimension_numbers = #tpu.dot_dimension_numbers<[1], [0], [0], [1], [0, 0, 1, 1], [], []>} : vector<16x4xbf16>, vector<4x128xbf16>, vector<16x128xf32> -> vector<16x128xf32>
    %510 = arith.addf %500, %509 : vector<16x128xf32>
    %511 = vector.extract_strided_slice %505 {offsets = [1, 0], sizes = [16, 4], strides = [1, 1]} : vector<18x4xbf16> to vector<16x4xbf16>
    %c1_400 = arith.constant 1 : index
    %c0_401 = arith.constant 0 : index
    %c0_402 = arith.constant 0 : index
    %512 = vector.load %arg3[%c1_400, %c0_401, %c0_402] : memref<9x4x128xbf16, #tpu.memory_space<vmem>>, vector<1x4x128xbf16>
    %513 = vector.shape_cast %512 : vector<1x4x128xbf16> to vector<4x128xbf16>
    %cst_403 = arith.constant dense<0.000000e+00> : vector<16x128xf32>
    %514 = tpu.matmul %511, %513, %cst_403 {dimension_numbers = #tpu.dot_dimension_numbers<[1], [0], [0], [1], [0, 0, 1, 1], [], []>} : vector<16x4xbf16>, vector<4x128xbf16>, vector<16x128xf32> -> vector<16x128xf32>
    %515 = arith.addf %510, %514 : vector<16x128xf32>
    %516 = vector.extract_strided_slice %505 {offsets = [2, 0], sizes = [16, 4], strides = [1, 1]} : vector<18x4xbf16> to vector<16x4xbf16>
    %c2_404 = arith.constant 2 : index
    %c0_405 = arith.constant 0 : index
    %c0_406 = arith.constant 0 : index
    %517 = vector.load %arg3[%c2_404, %c0_405, %c0_406] : memref<9x4x128xbf16, #tpu.memory_space<vmem>>, vector<1x4x128xbf16>
    %518 = vector.shape_cast %517 : vector<1x4x128xbf16> to vector<4x128xbf16>
    %cst_407 = arith.constant dense<0.000000e+00> : vector<16x128xf32>
    %519 = tpu.matmul %516, %518, %cst_407 {dimension_numbers = #tpu.dot_dimension_numbers<[1], [0], [0], [1], [0, 0, 1, 1], [], []>} : vector<16x4xbf16>, vector<4x128xbf16>, vector<16x128xf32> -> vector<16x128xf32>
    %520 = arith.addf %515, %519 : vector<16x128xf32>
    %c7_i32_408 = arith.constant 7 : i32
    %521 = arith.addi %0, %c7_i32_408 : i32
    %c1_i32_409 = arith.constant 1 : i32
    %522 = arith.addi %521, %c1_i32_409 : i32
    %c0_410 = arith.constant 0 : index
    %523 = arith.index_cast %522 : i32 to index
    %c0_411 = arith.constant 0 : index
    %c0_412 = arith.constant 0 : index
    %524 = vector.load %arg2[%c0_410, %523, %c0_411, %c0_412] : memref<1x18x18x4xbf16, #tpu.memory_space<vmem>>, vector<1x1x18x4xbf16>
    %525 = vector.shape_cast %524 : vector<1x1x18x4xbf16> to vector<18x4xbf16>
    %526 = vector.extract_strided_slice %525 {offsets = [0, 0], sizes = [16, 4], strides = [1, 1]} : vector<18x4xbf16> to vector<16x4xbf16>
    %c3_413 = arith.constant 3 : index
    %c0_414 = arith.constant 0 : index
    %c0_415 = arith.constant 0 : index
    %527 = vector.load %arg3[%c3_413, %c0_414, %c0_415] : memref<9x4x128xbf16, #tpu.memory_space<vmem>>, vector<1x4x128xbf16>
    %528 = vector.shape_cast %527 : vector<1x4x128xbf16> to vector<4x128xbf16>
    %cst_416 = arith.constant dense<0.000000e+00> : vector<16x128xf32>
    %529 = tpu.matmul %526, %528, %cst_416 {dimension_numbers = #tpu.dot_dimension_numbers<[1], [0], [0], [1], [0, 0, 1, 1], [], []>} : vector<16x4xbf16>, vector<4x128xbf16>, vector<16x128xf32> -> vector<16x128xf32>
    %530 = arith.addf %520, %529 : vector<16x128xf32>
    %531 = vector.extract_strided_slice %525 {offsets = [1, 0], sizes = [16, 4], strides = [1, 1]} : vector<18x4xbf16> to vector<16x4xbf16>
    %c4_417 = arith.constant 4 : index
    %c0_418 = arith.constant 0 : index
    %c0_419 = arith.constant 0 : index
    %532 = vector.load %arg3[%c4_417, %c0_418, %c0_419] : memref<9x4x128xbf16, #tpu.memory_space<vmem>>, vector<1x4x128xbf16>
    %533 = vector.shape_cast %532 : vector<1x4x128xbf16> to vector<4x128xbf16>
    %cst_420 = arith.constant dense<0.000000e+00> : vector<16x128xf32>
    %534 = tpu.matmul %531, %533, %cst_420 {dimension_numbers = #tpu.dot_dimension_numbers<[1], [0], [0], [1], [0, 0, 1, 1], [], []>} : vector<16x4xbf16>, vector<4x128xbf16>, vector<16x128xf32> -> vector<16x128xf32>
    %535 = arith.addf %530, %534 : vector<16x128xf32>
    %536 = vector.extract_strided_slice %525 {offsets = [2, 0], sizes = [16, 4], strides = [1, 1]} : vector<18x4xbf16> to vector<16x4xbf16>
    %c5_421 = arith.constant 5 : index
    %c0_422 = arith.constant 0 : index
    %c0_423 = arith.constant 0 : index
    %537 = vector.load %arg3[%c5_421, %c0_422, %c0_423] : memref<9x4x128xbf16, #tpu.memory_space<vmem>>, vector<1x4x128xbf16>
    %538 = vector.shape_cast %537 : vector<1x4x128xbf16> to vector<4x128xbf16>
    %cst_424 = arith.constant dense<0.000000e+00> : vector<16x128xf32>
    %539 = tpu.matmul %536, %538, %cst_424 {dimension_numbers = #tpu.dot_dimension_numbers<[1], [0], [0], [1], [0, 0, 1, 1], [], []>} : vector<16x4xbf16>, vector<4x128xbf16>, vector<16x128xf32> -> vector<16x128xf32>
    %540 = arith.addf %535, %539 : vector<16x128xf32>
    %c7_i32_425 = arith.constant 7 : i32
    %541 = arith.addi %0, %c7_i32_425 : i32
    %c2_i32_426 = arith.constant 2 : i32
    %542 = arith.addi %541, %c2_i32_426 : i32
    %c0_427 = arith.constant 0 : index
    %543 = arith.index_cast %542 : i32 to index
    %c0_428 = arith.constant 0 : index
    %c0_429 = arith.constant 0 : index
    %544 = vector.load %arg2[%c0_427, %543, %c0_428, %c0_429] : memref<1x18x18x4xbf16, #tpu.memory_space<vmem>>, vector<1x1x18x4xbf16>
    %545 = vector.shape_cast %544 : vector<1x1x18x4xbf16> to vector<18x4xbf16>
    %546 = vector.extract_strided_slice %545 {offsets = [0, 0], sizes = [16, 4], strides = [1, 1]} : vector<18x4xbf16> to vector<16x4xbf16>
    %c6_430 = arith.constant 6 : index
    %c0_431 = arith.constant 0 : index
    %c0_432 = arith.constant 0 : index
    %547 = vector.load %arg3[%c6_430, %c0_431, %c0_432] : memref<9x4x128xbf16, #tpu.memory_space<vmem>>, vector<1x4x128xbf16>
    %548 = vector.shape_cast %547 : vector<1x4x128xbf16> to vector<4x128xbf16>
    %cst_433 = arith.constant dense<0.000000e+00> : vector<16x128xf32>
    %549 = tpu.matmul %546, %548, %cst_433 {dimension_numbers = #tpu.dot_dimension_numbers<[1], [0], [0], [1], [0, 0, 1, 1], [], []>} : vector<16x4xbf16>, vector<4x128xbf16>, vector<16x128xf32> -> vector<16x128xf32>
    %550 = arith.addf %540, %549 : vector<16x128xf32>
    %551 = vector.extract_strided_slice %545 {offsets = [1, 0], sizes = [16, 4], strides = [1, 1]} : vector<18x4xbf16> to vector<16x4xbf16>
    %c7_434 = arith.constant 7 : index
    %c0_435 = arith.constant 0 : index
    %c0_436 = arith.constant 0 : index
    %552 = vector.load %arg3[%c7_434, %c0_435, %c0_436] : memref<9x4x128xbf16, #tpu.memory_space<vmem>>, vector<1x4x128xbf16>
    %553 = vector.shape_cast %552 : vector<1x4x128xbf16> to vector<4x128xbf16>
    %cst_437 = arith.constant dense<0.000000e+00> : vector<16x128xf32>
    %554 = tpu.matmul %551, %553, %cst_437 {dimension_numbers = #tpu.dot_dimension_numbers<[1], [0], [0], [1], [0, 0, 1, 1], [], []>} : vector<16x4xbf16>, vector<4x128xbf16>, vector<16x128xf32> -> vector<16x128xf32>
    %555 = arith.addf %550, %554 : vector<16x128xf32>
    %556 = vector.extract_strided_slice %545 {offsets = [2, 0], sizes = [16, 4], strides = [1, 1]} : vector<18x4xbf16> to vector<16x4xbf16>
    %c8_438 = arith.constant 8 : index
    %c0_439 = arith.constant 0 : index
    %c0_440 = arith.constant 0 : index
    %557 = vector.load %arg3[%c8_438, %c0_439, %c0_440] : memref<9x4x128xbf16, #tpu.memory_space<vmem>>, vector<1x4x128xbf16>
    %558 = vector.shape_cast %557 : vector<1x4x128xbf16> to vector<4x128xbf16>
    %cst_441 = arith.constant dense<0.000000e+00> : vector<16x128xf32>
    %559 = tpu.matmul %556, %558, %cst_441 {dimension_numbers = #tpu.dot_dimension_numbers<[1], [0], [0], [1], [0, 0, 1, 1], [], []>} : vector<16x4xbf16>, vector<4x128xbf16>, vector<16x128xf32> -> vector<16x128xf32>
    %560 = arith.addf %555, %559 : vector<16x128xf32>
    %c0_442 = arith.constant 0 : index
    %c7_443 = arith.constant 7 : index
    %c0_444 = arith.constant 0 : index
    %c0_445 = arith.constant 0 : index
    %561 = vector.load %arg4[%c0_442, %c7_443, %c0_444, %c0_445] : memref<1x8x16x128xf32, #tpu.memory_space<vmem>>, vector<1x1x16x128xf32>
    %562 = vector.shape_cast %561 : vector<1x1x16x128xf32> to vector<16x128xf32>
    %563 = vector.shape_cast %560 : vector<16x128xf32> to vector<1x1x16x128xf32>
    tpu.vector_store %arg4[%c0_442, %c7_443, %c0_444, %c0_445], %563 {strides = array<i32>} : memref<1x8x16x128xf32, #tpu.memory_space<vmem>>, vector<1x1x16x128xf32>,
    %cst_446 = arith.constant dense<0.000000e+00> : vector<128xf32>
    %564 = vector.multi_reduction <add>, %560, %cst_446 [0] : vector<16x128xf32> to vector<128xf32>
    %565 = vector.shape_cast %564 : vector<128xf32> to vector<1x128xf32>
    %566 = arith.addf %495, %565 : vector<1x128xf32>
    %567 = arith.mulf %560, %560 : vector<16x128xf32>
    %cst_447 = arith.constant dense<0.000000e+00> : vector<128xf32>
    %568 = vector.multi_reduction <add>, %567, %cst_447 [0] : vector<16x128xf32> to vector<128xf32>
    %569 = vector.shape_cast %568 : vector<128xf32> to vector<1x128xf32>
    %570 = arith.addf %499, %569 : vector<1x128xf32>
    %c0_448 = arith.constant 0 : index
    %c0_449 = arith.constant 0 : index
    %c0_450 = arith.constant 0 : index
    %c0_451 = arith.constant 0 : index
    %571 = vector.load %arg5[%c0_448, %c0_449, %c0_450, %c0_451] : memref<1x1x2x128xf32, #tpu.memory_space<vmem>>, vector<1x1x1x128xf32>
    %572 = vector.shape_cast %571 : vector<1x1x1x128xf32> to vector<1x128xf32>
    %573 = vector.shape_cast %566 : vector<1x128xf32> to vector<1x1x1x128xf32>
    tpu.vector_store %arg5[%c0_448, %c0_449, %c0_450, %c0_451], %573 {strides = array<i32>} : memref<1x1x2x128xf32, #tpu.memory_space<vmem>>, vector<1x1x1x128xf32>,
    %c0_452 = arith.constant 0 : index
    %c0_453 = arith.constant 0 : index
    %c1_454 = arith.constant 1 : index
    %c0_455 = arith.constant 0 : index
    %574 = vector.load %arg5[%c0_452, %c0_453, %c1_454, %c0_455] : memref<1x1x2x128xf32, #tpu.memory_space<vmem>>, vector<1x1x1x128xf32>
    %575 = vector.shape_cast %574 : vector<1x1x1x128xf32> to vector<1x128xf32>
    %576 = vector.shape_cast %570 : vector<1x128xf32> to vector<1x1x1x128xf32>
    tpu.vector_store %arg5[%c0_452, %c0_453, %c1_454, %c0_455], %576 {strides = array<i32>} : memref<1x1x2x128xf32, #tpu.memory_space<vmem>>, vector<1x1x1x128xf32>,
    return
  }
  func.func @transform_0(%arg0: i32, %arg1: i32) -> (i32, i32, i32, i32) {
    %c0_i32 = arith.constant 0 : i32
    %c0_i32_0 = arith.constant 0 : i32
    %c0_i32_1 = arith.constant 0 : i32
    %c0_i32_2 = arith.constant 0 : i32
    return %arg0, %c0_i32, %c0_i32_0, %c0_i32_1 : i32, i32, i32, i32
  }
  func.func @transform_1(%arg0: i32, %arg1: i32) -> (i32, i32, i32) {
    %c0_i32 = arith.constant 0 : i32
    %c0_i32_0 = arith.constant 0 : i32
    %c0_i32_1 = arith.constant 0 : i32
    %c0_i32_2 = arith.constant 0 : i32
    return %c0_i32, %c0_i32_0, %c0_i32_1 : i32, i32, i32
  }
  func.func @transform_2(%arg0: i32, %arg1: i32) -> (i32, i32, i32, i32) {
    %c0_i32 = arith.constant 0 : i32
    %c0_i32_0 = arith.constant 0 : i32
    %c0_i32_1 = arith.constant 0 : i32
    return %arg0, %arg1, %c0_i32, %c0_i32_0 : i32, i32, i32, i32
  }
  func.func @transform_3(%arg0: i32, %arg1: i32) -> (i32, i32, i32, i32) {
    %c0_i32 = arith.constant 0 : i32
    %c0_i32_0 = arith.constant 0 : i32
    %c0_i32_1 = arith.constant 0 : i32
    return %arg0, %arg1, %c0_i32, %c0_i32_0 : i32, i32, i32, i32
  }
}

module attributes {stable_mosaic.version = 11 : i64} {
  func.func @kernel(%arg0: i32, %arg1: memref<512x128xf32, #tpu.memory_space<vmem>>, %arg2: memref<1x128xf32, #tpu.memory_space<vmem>>, %arg3: memref<1x128xf32, #tpu.memory_space<vmem>>, %arg4: memref<512x128xf32, #tpu.memory_space<vmem>>) attributes {dimension_semantics = [#tpu.dimension_semantics<parallel>], iteration_bounds = array<i64: 1>, scalar_prefetch = 0 : i64, scratch_operands = 0 : i64, tpu.core_type = #tpu.core_type<tc>, window_params = [{transform_indices = @transform_0, window_bounds = array<i64: 512, 128>}, {pipeline_mode = #tpu.pipeline_mode<synchronous>, transform_indices = @transform_1, window_bounds = array<i64: 1, 128>}, {pipeline_mode = #tpu.pipeline_mode<synchronous>, transform_indices = @transform_2, window_bounds = array<i64: 1, 128>}, {transform_indices = @transform_3, window_bounds = array<i64: 512, 128>}]} {
    %c0 = arith.constant 0 : index
    %c0_0 = arith.constant 0 : index
    %0 = vector.load %arg1[%c0, %c0_0] : memref<512x128xf32, #tpu.memory_space<vmem>>, vector<512x128xf32>
    %c0_1 = arith.constant 0 : index
    %c0_2 = arith.constant 0 : index
    %1 = vector.load %arg2[%c0_1, %c0_2] : memref<1x128xf32, #tpu.memory_space<vmem>>, vector<1x128xf32>
    %2 = vector.broadcast %1 : vector<1x128xf32> to vector<512x128xf32>
    %3 = arith.mulf %0, %2 : vector<512x128xf32>
    %c0_3 = arith.constant 0 : index
    %c0_4 = arith.constant 0 : index
    %4 = vector.load %arg3[%c0_3, %c0_4] : memref<1x128xf32, #tpu.memory_space<vmem>>, vector<1x128xf32>
    %5 = vector.broadcast %4 : vector<1x128xf32> to vector<512x128xf32>
    %6 = arith.addf %3, %5 : vector<512x128xf32>
    %cst = arith.constant 0.000000e+00 : f32
    %7 = vector.broadcast %cst : f32 to vector<512x128xf32>
    %8 = arith.cmpf ogt, %6, %7 : vector<512x128xf32>
    %cst_5 = arith.constant 1.000000e-01 : f32
    %9 = vector.broadcast %cst_5 : f32 to vector<512x128xf32>
    %10 = arith.mulf %9, %6 : vector<512x128xf32>
    %11 = arith.select %8, %6, %10 : vector<512x128xi1>, vector<512x128xf32>
    %c0_6 = arith.constant 0 : index
    %c0_7 = arith.constant 0 : index
    %12 = vector.load %arg4[%c0_6, %c0_7] : memref<512x128xf32, #tpu.memory_space<vmem>>, vector<512x128xf32>
    tpu.vector_store %arg4[%c0_6, %c0_7], %11 {strides = array<i32>} : memref<512x128xf32, #tpu.memory_space<vmem>>, vector<512x128xf32>,
    return
  }
  func.func @transform_0(%arg0: i32) -> (i32, i32) {
    %c0_i32 = arith.constant 0 : i32
    %c0_i32_0 = arith.constant 0 : i32
    return %arg0, %c0_i32 : i32, i32
  }
  func.func @transform_1(%arg0: i32) -> (i32, i32) {
    %c0_i32 = arith.constant 0 : i32
    %c0_i32_0 = arith.constant 0 : i32
    %c0_i32_1 = arith.constant 0 : i32
    return %c0_i32, %c0_i32_0 : i32, i32
  }
  func.func @transform_2(%arg0: i32) -> (i32, i32) {
    %c0_i32 = arith.constant 0 : i32
    %c0_i32_0 = arith.constant 0 : i32
    %c0_i32_1 = arith.constant 0 : i32
    return %c0_i32, %c0_i32_0 : i32, i32
  }
  func.func @transform_3(%arg0: i32) -> (i32, i32) {
    %c0_i32 = arith.constant 0 : i32
    %c0_i32_0 = arith.constant 0 : i32
    return %arg0, %c0_i32 : i32, i32
  }
}

</mosaic_0001>

<bundles_post_ra>
// kernel: a_call__.3
= control target key start
LH: loop header
LB: loop body
LE: loop exit
PB: predicated region body
PF: predicated region fallthrough
CT: control target
= control target key end

     0   :  { %s1030_s0 = inlined_call_operand.vmem [shape: f32[512,128], index: 0, kind: input, shape index: {}]   ;;  %s1031_s1 = inlined_call_operand.vmem [shape: f32[1,128], index: 1, kind: input, shape index: {}]   ;;  %s1032_s2 = inlined_call_operand.vmem [shape: f32[1,128], index: 2, kind: input, shape index: {}]   ;;  %s1033_s3 = inlined_call_operand.vmem [shape: f32[512,128], index: 3, kind: output, shape index: {}]  }
   0x1   :  { %v14_v0 = vld [vmem:[%s1030_s0] sm:$0xff]  ;;  %v15_v4 = vld [vmem:[%s1030_s0 + $0x8] sm:$0xff]  ;;  %v16_v5 = vld [vmem:[%s1030_s0 + $0x10] sm:$0xff] }
   0x2   :  { %v508_v1 = vld [vmem:[%s1031_s1] ss:$0 sm:$0xff]  ;;  %v17_v6 = vld [vmem:[%s1030_s0 + $0x18] sm:$0xff]  ;;  %v19_v11 = vld [vmem:[%s1030_s0 + $0x28] sm:$0xff] }
   0x3   :  { %v513_v2 = vld [vmem:[%s1032_s2] ss:$0 sm:$0xff]  ;;  %v85_v3 = vmul.f32 %v508_v1, %v14_v0  ;;  %v86_v7 = vmul.f32 %v508_v1, %v15_v4  ;;  %v87_v8 = vmul.f32 %v508_v1, %v16_v5  ;;  %v88_v9 = vmul.f32 %v508_v1, %v17_v6  ;;  %v20_v12 = vld [vmem:[%s1030_s0 + $0x30] sm:$0xff]  ;;  %v21_v17 = vld [vmem:[%s1030_s0 + $0x38] sm:$0xff] }
   0x4   :  { %v18_v10 = vld [vmem:[%s1030_s0 + $0x20] sm:$0xff]  ;;  %v90_v15 = vmul.f32 %v508_v1, %v19_v11  ;;  %v91_v16 = vmul.f32 %v508_v1, %v20_v12  ;;  %v92_v21 = vmul.f32 %v508_v1, %v21_v17  ;;  %v23_v30 = vld [vmem:[%s1030_s0 + $0x48] sm:$0xff]  ;;  %v24_v31 = vld [vmem:[%s1030_s0 + $0x50] sm:$0xff] }
   0x5   :  { %v156_v13 = vadd.f32 %v513_v2, %v85_v3  ;;  %v89_v14 = vmul.f32 %v508_v1, %v18_v10  ;;  %v157_v18 = vadd.f32 %v513_v2, %v86_v7  ;;  %v158_v19 = vadd.f32 %v513_v2, %v87_v8  ;;  %v22_v25 = vld [vmem:[%s1030_s0 + $0x40] sm:$0xff]  ;;  %v25_v43 = vld [vmem:[%s1030_s0 + $0x58] sm:$0xff]  ;;  %v27_v45 = vld [vmem:[%s1030_s0 + $0x68] sm:$0xff] }
   0x6   :  { %v159_v20 = vadd.f32 %v513_v2, %v88_v9  ;;  %v161_v24 = vadd.f32 %v513_v2, %v90_v15  ;;  %v162_v37 = vadd.f32 %v513_v2, %v91_v16  ;;  %v163_v38 = vadd.f32 %v513_v2, %v92_v21  ;;  %v26_v44 = vld [vmem:[%s1030_s0 + $0x60] sm:$0xff]  ;;  %v28_v56 = vld [vmem:[%s1030_s0 + $0x70] sm:$0xff]  ;;  %v29_v4 = vld [vmem:[%s1030_s0 + $0x78] sm:$0xff] }
   0x7   :  { %vm220_vm0 = vcmp.gt.f32.partialorder %v156_v13, 0.0  ;;  %v284_v22 = vmul.f32 0.1, %v156_v13  ;;  %v160_v23 = vadd.f32 %v513_v2, %v89_v14  ;;  %vm221_vm1 = vcmp.gt.f32.partialorder %v157_v18, 0.0  ;;  %v30_v5 = vld [vmem:[%s1030_s0 + $0x80] sm:$0xff]  ;;  %v31_v9 = vld [vmem:[%s1030_s0 + $0x88] sm:$0xff] }
   0x8   :  { %v285_v26 = vmul.f32 0.1, %v157_v18  ;;  %vm222_vm2 = vcmp.gt.f32.partialorder %v158_v19, 0.0  ;;  %v286_v27 = vmul.f32 0.1, %v158_v19  ;;  %vm223_vm3 = vcmp.gt.f32.partialorder %v159_v20, 0.0 }
   0x9   :  { %v348_v28 = vsel %vm220_vm0, %v156_v13, %v284_v22  ;;  %v287_v29 = vmul.f32 0.1, %v159_v20  ;;  %vm224_vm4 = vcmp.gt.f32.partialorder %v160_v23, 0.0  ;;  %v288_v34 = vmul.f32 0.1, %v160_v23  ;;  %v32_v10 = vld [vmem:[%s1030_s0 + $0x90] sm:$0xff] }
   0xa   :  { %412 = vst [vmem:[%s1033_s3] sm:$0xff] %v348_v28  ;;  %v349_v32 = vsel %vm221_vm1, %v157_v18, %v285_v26  ;;  %v350_v33 = vsel %vm222_vm2, %v158_v19, %v286_v27  ;;  %vm225_vm5 = vcmp.gt.f32.partialorder %v161_v24, 0.0  ;;  %v289_v36 = vmul.f32 0.1, %v161_v24  ;;  %v33_v17 = vld [vmem:[%s1030_s0 + $0x98] sm:$0xff]  ;;  %v34_v18 = vld [vmem:[%s1030_s0 + $0xa0] sm:$0xff] }
   0xb   :  { %413 = vst [vmem:[%s1033_s3 + $0x8] sm:$0xff] %v349_v32  ;;  %414 = vst [vmem:[%s1033_s3 + $0x10] sm:$0xff] %v350_v33  ;;  %v351_v35 = vsel %vm223_vm3, %v159_v20, %v287_v29  ;;  %v352_v39 = vsel %vm224_vm4, %v160_v23, %v288_v34  ;;  %v93_v40 = vmul.f32 %v508_v1, %v22_v25  ;;  %vm226_vm6 = vcmp.gt.f32.partialorder %v162_v37, 0.0  ;;  %v35_v32 = vld [vmem:[%s1030_s0 + $0xa8] sm:$0xff]  ;;  %v36_v33 = vld [vmem:[%s1030_s0 + $0xb0] sm:$0xff] }
   0xc   :  { %415 = vst [vmem:[%s1033_s3 + $0x18] sm:$0xff] %v351_v35  ;;  %v94_v41 = vmul.f32 %v508_v1, %v23_v30  ;;  %v95_v42 = vmul.f32 %v508_v1, %v24_v31  ;;  %416 = vst [vmem:[%s1033_s3 + $0x20] sm:$0xff] %v352_v39  ;;  %v353_v46 = vsel %vm225_vm5, %v161_v24, %v289_v36  ;;  %v290_v47 = vmul.f32 0.1, %v162_v37 }
   0xd   :  { %vm227_vm7 = vcmp.gt.f32.partialorder %v163_v38, 0.0  ;;  %417 = vst [vmem:[%s1033_s3 + $0x28] sm:$0xff] %v353_v46  ;;  %v291_v48 = vmul.f32 0.1, %v163_v38  ;;  %v164_v49 = vadd.f32 %v513_v2, %v93_v40  ;;  %v96_v53 = vmul.f32 %v508_v1, %v25_v43  ;;  %v37_v40 = vld [vmem:[%s1030_s0 + $0xb8] sm:$0xff]  ;;  %v39_v46 = vld [vmem:[%s1030_s0 + $0xc8] sm:$0xff] }
   0xe   :  { %v165_v50 = vadd.f32 %v513_v2, %v94_v41  ;;  %v166_v51 = vadd.f32 %v513_v2, %v95_v42  ;;  %v354_v52 = vsel %vm226_vm6, %v162_v37, %v290_v47  ;;  %v97_v54 = vmul.f32 %v508_v1, %v26_v44  ;;  %v40_v47 = vld [vmem:[%s1030_s0 + $0xd0] sm:$0xff] }
   0xf   :  { %v98_v55 = vmul.f32 %v508_v1, %v27_v45  ;;  %418 = vst [vmem:[%s1033_s3 + $0x30] sm:$0xff] %v354_v52  ;;  %v355_v57 = vsel %vm227_vm7, %v163_v38, %v291_v48  ;;  %vm228_vm8 = vcmp.gt.f32.partialorder %v164_v49, 0.0  ;;  %v292_v58 = vmul.f32 0.1, %v164_v49  ;;  %v38_v45 = vld [vmem:[%s1030_s0 + $0xc0] sm:$0xff] }
  0x10   :  { %vm229_vm9 = vcmp.gt.f32.partialorder %v165_v50, 0.0  ;;  %419 = vst [vmem:[%s1033_s3 + $0x38] sm:$0xff] %v355_v57  ;;  %v293_v59 = vmul.f32 0.1, %v165_v50  ;;  %vm230_vm10 = vcmp.gt.f32.partialorder %v166_v51, 0.0  ;;  %v167_v61 = vadd.f32 %v513_v2, %v96_v53 }
  0x11   :  { %v294_v60 = vmul.f32 0.1, %v166_v51  ;;  %v356_v62 = vsel %vm228_vm8, %v164_v49, %v292_v58  ;;  %v168_v63 = vadd.f32 %v513_v2, %v97_v54  ;;  %v169_v0 = vadd.f32 %v513_v2, %v98_v55  ;;  %v41_v58 = vld [vmem:[%s1030_s0 + $0xd8] sm:$0xff] }
  0x12   :  { %v99_v3 = vmul.f32 %v508_v1, %v28_v56  ;;  %420 = vst [vmem:[%s1033_s3 + $0x40] sm:$0xff] %v356_v62  ;;  %v357_v6 = vsel %vm229_vm9, %v165_v50, %v293_v59  ;;  %vm231_vm11 = vcmp.gt.f32.partialorder %v167_v61, 0.0  ;;  %v295_v8 = vmul.f32 0.1, %v167_v61  ;;  %v42_v59 = vld [vmem:[%s1030_s0 + $0xe0] sm:$0xff] }
  0x13   :  { %v358_v7 = vsel %vm230_vm10, %v166_v51, %v294_v60  ;;  %421 = vst [vmem:[%s1033_s3 + $0x48] sm:$0xff] %v357_v6  ;;  %vm232_vm12 = vcmp.gt.f32.partialorder %v168_v63, 0.0  ;;  %v296_v11 = vmul.f32 0.1, %v168_v63  ;;  %vm233_vm13 = vcmp.gt.f32.partialorder %v169_v0, 0.0 }
  0x14   :  { %422 = vst [vmem:[%s1033_s3 + $0x50] sm:$0xff] %v358_v7  ;;  %v297_v12 = vmul.f32 0.1, %v169_v0  ;;  %v359_v13 = vsel %vm231_vm11, %v167_v61, %v295_v8  ;;  %v170_v14 = vadd.f32 %v513_v2, %v99_v3  ;;  %v100_v15 = vmul.f32 %v508_v1, %v29_v4 }
  0x15   :  { %v101_v16 = vmul.f32 %v508_v1, %v30_v5  ;;  %423 = vst [vmem:[%s1033_s3 + $0x58] sm:$0xff] %v359_v13  ;;  %v360_v19 = vsel %vm232_vm12, %v168_v63, %v296_v11  ;;  %v102_v21 = vmul.f32 %v508_v1, %v31_v9  ;;  %v103_v22 = vmul.f32 %v508_v1, %v32_v10  ;;  %v43_v10 = vld [vmem:[%s1030_s0 + $0xe8] sm:$0xff]  ;;  %v44_v11 = vld [vmem:[%s1030_s0 + $0xf0] sm:$0xff] }
  0x16   :  { %v361_v20 = vsel %vm233_vm13, %v169_v0, %v297_v12  ;;  %424 = vst [vmem:[%s1033_s3 + $0x60] sm:$0xff] %v360_v19  ;;  %vm234_vm14 = vcmp.gt.f32.partialorder %v170_v14, 0.0  ;;  %v298_v23 = vmul.f32 0.1, %v170_v14  ;;  %v171_v24 = vadd.f32 %v513_v2, %v100_v15 }
  0x17   :  { %425 = vst [vmem:[%s1033_s3 + $0x68] sm:$0xff] %v361_v20  ;;  %v172_v25 = vadd.f32 %v513_v2, %v101_v16  ;;  %v173_v26 = vadd.f32 %v513_v2, %v102_v21  ;;  %v174_v27 = vadd.f32 %v513_v2, %v103_v22  ;;  %v104_v28 = vmul.f32 %v508_v1, %v33_v17 }
  0x18   :  { %v105_v29 = vmul.f32 %v508_v1, %v34_v18  ;;  %v362_v30 = vsel %vm234_vm14, %v170_v14, %v298_v23  ;;  %vm235_vm15 = vcmp.gt.f32.partialorder %v171_v24, 0.0  ;;  %v299_v31 = vmul.f32 0.1, %v171_v24  ;;  %v45_v18 = vld [vmem:[%s1030_s0 + $0xf8] sm:$0xff]  ;;  %v46_v23 = vld [vmem:[%s1030_s0 + $0x100] sm:$0xff] }
  0x19   :  { %vm236_vm0 = vcmp.gt.f32.partialorder %v172_v25, 0.0  ;;  %426 = vst [vmem:[%s1033_s3 + $0x70] sm:$0xff] %v362_v30  ;;  %v300_v34 = vmul.f32 0.1, %v172_v25  ;;  %vm237_vm1 = vcmp.gt.f32.partialorder %v173_v26, 0.0  ;;  %vm238_vm2 = vcmp.gt.f32.partialorder %v174_v27, 0.0 }
  0x1a   :  { %v301_v35 = vmul.f32 0.1, %v173_v26  ;;  %v363_v36 = vsel %vm235_vm15, %v171_v24, %v299_v31  ;;  %v302_v37 = vmul.f32 0.1, %v174_v27  ;;  %v175_v38 = vadd.f32 %v513_v2, %v104_v28  ;;  %v47_v24 = vld [vmem:[%s1030_s0 + $0x108] sm:$0xff] }
  0x1b   :  { %v176_v39 = vadd.f32 %v513_v2, %v105_v29  ;;  %427 = vst [vmem:[%s1033_s3 + $0x78] sm:$0xff] %v363_v36  ;;  %v364_v41 = vsel %vm236_vm0, %v172_v25, %v300_v34  ;;  %v106_v43 = vmul.f32 %v508_v1, %v35_v32  ;;  %v107_v44 = vmul.f32 %v508_v1, %v36_v33  ;;  %v48_v25 = vld [vmem:[%s1030_s0 + $0x110] sm:$0xff]  ;;  %v49_v36 = vld [vmem:[%s1030_s0 + $0x118] sm:$0xff] }
  0x1c   :  { %v365_v42 = vsel %vm237_vm1, %v173_v26, %v301_v35  ;;  %428 = vst [vmem:[%s1033_s3 + $0x80] sm:$0xff] %v364_v41  ;;  %v366_v48 = vsel %vm238_vm2, %v174_v27, %v302_v37  ;;  %vm239_vm3 = vcmp.gt.f32.partialorder %v175_v38, 0.0  ;;  %v303_v49 = vmul.f32 0.1, %v175_v38  ;;  %v50_v37 = vld [vmem:[%s1030_s0 + $0x120] sm:$0xff] }
  0x1d   :  { %429 = vst [vmem:[%s1033_s3 + $0x88] sm:$0xff] %v365_v42  ;;  %vm240_vm4 = vcmp.gt.f32.partialorder %v176_v39, 0.0  ;;  %430 = vst [vmem:[%s1033_s3 + $0x90] sm:$0xff] %v366_v48  ;;  %v304_v50 = vmul.f32 0.1, %v176_v39  ;;  %v177_v51 = vadd.f32 %v513_v2, %v106_v43  ;;  %v178_v52 = vadd.f32 %v513_v2, %v107_v44 }
  0x1e   :  { %v108_v53 = vmul.f32 %v508_v1, %v37_v40  ;;  %v367_v54 = vsel %vm239_vm3, %v175_v38, %v303_v49  ;;  %v109_v55 = vmul.f32 %v508_v1, %v38_v45  ;;  %v110_v56 = vmul.f32 %v508_v1, %v39_v46 }
  0x1f   :  { %v111_v57 = vmul.f32 %v508_v1, %v40_v47  ;;  %431 = vst [vmem:[%s1033_s3 + $0x98] sm:$0xff] %v367_v54  ;;  %v368_v60 = vsel %vm240_vm4, %v176_v39, %v304_v50  ;;  %vm241_vm5 = vcmp.gt.f32.partialorder %v177_v51, 0.0  ;;  %v305_v61 = vmul.f32 0.1, %v177_v51  ;;  %v51_v50 = vld [vmem:[%s1030_s0 + $0x128] sm:$0xff] }
  0x20   :  { %vm242_vm6 = vcmp.gt.f32.partialorder %v178_v52, 0.0  ;;  %432 = vst [vmem:[%s1033_s3 + $0xa0] sm:$0xff] %v368_v60  ;;  %v306_v62 = vmul.f32 0.1, %v178_v52  ;;  %v179_v63 = vadd.f32 %v513_v2, %v108_v53  ;;  %v180_v0 = vadd.f32 %v513_v2, %v109_v55 }
  0x21   :  { %v181_v3 = vadd.f32 %v513_v2, %v110_v56  ;;  %v369_v4 = vsel %vm241_vm5, %v177_v51, %v305_v61  ;;  %v182_v5 = vadd.f32 %v513_v2, %v111_v57  ;;  %v112_v6 = vmul.f32 %v508_v1, %v41_v58  ;;  %v52_v51 = vld [vmem:[%s1030_s0 + $0x130] sm:$0xff]  ;;  %v53_v58 = vld [vmem:[%s1030_s0 + $0x138] sm:$0xff] }
  0x22   :  { %v113_v7 = vmul.f32 %v508_v1, %v42_v59  ;;  %433 = vst [vmem:[%s1033_s3 + $0xa8] sm:$0xff] %v369_v4  ;;  %v370_v8 = vsel %vm242_vm6, %v178_v52, %v306_v62  ;;  %vm243_vm7 = vcmp.gt.f32.partialorder %v179_v63, 0.0  ;;  %v307_v9 = vmul.f32 0.1, %v179_v63 }
  0x23   :  { %vm244_vm8 = vcmp.gt.f32.partialorder %v180_v0, 0.0  ;;  %434 = vst [vmem:[%s1033_s3 + $0xb0] sm:$0xff] %v370_v8  ;;  %v308_v12 = vmul.f32 0.1, %v180_v0  ;;  %vm245_vm9 = vcmp.gt.f32.partialorder %v181_v3, 0.0  ;;  %vm246_vm10 = vcmp.gt.f32.partialorder %v182_v5, 0.0 }
  0x24   :  { %v309_v13 = vmul.f32 0.1, %v181_v3  ;;  %v371_v14 = vsel %vm243_vm7, %v179_v63, %v307_v9  ;;  %v310_v15 = vmul.f32 0.1, %v182_v5  ;;  %v183_v16 = vadd.f32 %v513_v2, %v112_v6  ;;  %v54_v63 = vld [vmem:[%s1030_s0 + $0x140] sm:$0xff] }
  0x25   :  { %v184_v17 = vadd.f32 %v513_v2, %v113_v7  ;;  %435 = vst [vmem:[%s1033_s3 + $0xb8] sm:$0xff] %v371_v14  ;;  %v372_v19 = vsel %vm244_vm8, %v180_v0, %v308_v12  ;;  %v114_v21 = vmul.f32 %v508_v1, %v43_v10  ;;  %v115_v22 = vmul.f32 %v508_v1, %v44_v11  ;;  %v55_v0 = vld [vmem:[%s1030_s0 + $0x148] sm:$0xff]  ;;  %v57_v14 = vld [vmem:[%s1030_s0 + $0x158] sm:$0xff] }
  0x26   :  { %v373_v20 = vsel %vm245_vm9, %v181_v3, %v309_v13  ;;  %436 = vst [vmem:[%s1033_s3 + $0xc0] sm:$0xff] %v372_v19  ;;  %v374_v26 = vsel %vm246_vm10, %v182_v5, %v310_v15  ;;  %vm247_vm11 = vcmp.gt.f32.partialorder %v183_v16, 0.0  ;;  %v311_v27 = vmul.f32 0.1, %v183_v16  ;;  %v56_v3 = vld [vmem:[%s1030_s0 + $0x150] sm:$0xff]  ;;  %v58_v15 = vld [vmem:[%s1030_s0 + $0x160] sm:$0xff] }
  0x27   :  { %437 = vst [vmem:[%s1033_s3 + $0xc8] sm:$0xff] %v373_v20  ;;  %vm248_vm12 = vcmp.gt.f32.partialorder %v184_v17, 0.0  ;;  %438 = vst [vmem:[%s1033_s3 + $0xd0] sm:$0xff] %v374_v26  ;;  %v312_v28 = vmul.f32 0.1, %v184_v17  ;;  %v185_v29 = vadd.f32 %v513_v2, %v114_v21  ;;  %v186_v30 = vadd.f32 %v513_v2, %v115_v22 }
  0x28   :  { %v116_v31 = vmul.f32 %v508_v1, %v45_v18  ;;  %v375_v32 = vsel %vm247_vm11, %v183_v16, %v311_v27  ;;  %v117_v33 = vmul.f32 %v508_v1, %v46_v23  ;;  %v118_v34 = vmul.f32 %v508_v1, %v47_v24 }
  0x29   :  { %v119_v35 = vmul.f32 %v508_v1, %v48_v25  ;;  %439 = vst [vmem:[%s1033_s3 + $0xd8] sm:$0xff] %v375_v32  ;;  %v376_v38 = vsel %vm248_vm12, %v184_v17, %v312_v28  ;;  %vm249_vm13 = vcmp.gt.f32.partialorder %v185_v29, 0.0  ;;  %v313_v39 = vmul.f32 0.1, %v185_v29  ;;  %v59_v28 = vld [vmem:[%s1030_s0 + $0x168] sm:$0xff] }
  0x2a   :  { %vm250_vm14 = vcmp.gt.f32.partialorder %v186_v30, 0.0  ;;  %440 = vst [vmem:[%s1033_s3 + $0xe0] sm:$0xff] %v376_v38  ;;  %v314_v40 = vmul.f32 0.1, %v186_v30  ;;  %v187_v41 = vadd.f32 %v513_v2, %v116_v31  ;;  %v188_v42 = vadd.f32 %v513_v2, %v117_v33 }
  0x2b   :  { %v189_v43 = vadd.f32 %v513_v2, %v118_v34  ;;  %v377_v44 = vsel %vm249_vm13, %v185_v29, %v313_v39  ;;  %v190_v45 = vadd.f32 %v513_v2, %v119_v35  ;;  %v120_v46 = vmul.f32 %v508_v1, %v49_v36  ;;  %v60_v29 = vld [vmem:[%s1030_s0 + $0x170] sm:$0xff]  ;;  %v61_v36 = vld [vmem:[%s1030_s0 + $0x178] sm:$0xff] }
  0x2c   :  { %v121_v47 = vmul.f32 %v508_v1, %v50_v37  ;;  %441 = vst [vmem:[%s1033_s3 + $0xe8] sm:$0xff] %v377_v44  ;;  %v378_v48 = vsel %vm250_vm14, %v186_v30, %v314_v40  ;;  %vm251_vm15 = vcmp.gt.f32.partialorder %v187_v41, 0.0  ;;  %v315_v49 = vmul.f32 0.1, %v187_v41 }
  0x2d   :  { %vm252_vm0 = vcmp.gt.f32.partialorder %v188_v42, 0.0  ;;  %442 = vst [vmem:[%s1033_s3 + $0xf0] sm:$0xff] %v378_v48  ;;  %v316_v52 = vmul.f32 0.1, %v188_v42  ;;  %vm253_vm1 = vcmp.gt.f32.partialorder %v189_v43, 0.0  ;;  %vm254_vm2 = vcmp.gt.f32.partialorder %v190_v45, 0.0 }
  0x2e   :  { %v317_v53 = vmul.f32 0.1, %v189_v43  ;;  %v379_v54 = vsel %vm251_vm15, %v187_v41, %v315_v49  ;;  %v318_v55 = vmul.f32 0.1, %v190_v45  ;;  %v191_v56 = vadd.f32 %v513_v2, %v120_v46  ;;  %v62_v41 = vld [vmem:[%s1030_s0 + $0x180] sm:$0xff] }
  0x2f   :  { %v192_v57 = vadd.f32 %v513_v2, %v121_v47  ;;  %443 = vst [vmem:[%s1033_s3 + $0xf8] sm:$0xff] %v379_v54  ;;  %v380_v59 = vsel %vm252_vm0, %v188_v42, %v316_v52  ;;  %v122_v61 = vmul.f32 %v508_v1, %v51_v50  ;;  %v123_v62 = vmul.f32 %v508_v1, %v52_v51  ;;  %v63_v42 = vld [vmem:[%s1030_s0 + $0x188] sm:$0xff]  ;;  %v65_v54 = vld [vmem:[%s1030_s0 + $0x198] sm:$0xff] }
  0x30   :  { %v381_v60 = vsel %vm253_vm1, %v189_v43, %v317_v53  ;;  %444 = vst [vmem:[%s1033_s3 + $0x100] sm:$0xff] %v380_v59  ;;  %v382_v4 = vsel %vm254_vm2, %v190_v45, %v318_v55  ;;  %vm255_vm3 = vcmp.gt.f32.partialorder %v191_v56, 0.0  ;;  %v319_v5 = vmul.f32 0.1, %v191_v56  ;;  %v64_v43 = vld [vmem:[%s1030_s0 + $0x190] sm:$0xff]  ;;  %v66_v55 = vld [vmem:[%s1030_s0 + $0x1a0] sm:$0xff] }
  0x31   :  { %445 = vst [vmem:[%s1033_s3 + $0x108] sm:$0xff] %v381_v60  ;;  %vm256_vm4 = vcmp.gt.f32.partialorder %v192_v57, 0.0  ;;  %446 = vst [vmem:[%s1033_s3 + $0x110] sm:$0xff] %v382_v4  ;;  %v320_v6 = vmul.f32 0.1, %v192_v57  ;;  %v193_v7 = vadd.f32 %v513_v2, %v122_v61  ;;  %v194_v8 = vadd.f32 %v513_v2, %v123_v62 }
  0x32   :  { %v124_v9 = vmul.f32 %v508_v1, %v53_v58  ;;  %v383_v10 = vsel %vm255_vm3, %v191_v56, %v319_v5  ;;  %v125_v11 = vmul.f32 %v508_v1, %v54_v63  ;;  %v126_v12 = vmul.f32 %v508_v1, %v55_v0 }
  0x33   :  { %v127_v13 = vmul.f32 %v508_v1, %v56_v3  ;;  %447 = vst [vmem:[%s1033_s3 + $0x118] sm:$0xff] %v383_v10  ;;  %v384_v16 = vsel %vm256_vm4, %v192_v57, %v320_v6  ;;  %vm257_vm5 = vcmp.gt.f32.partialorder %v193_v7, 0.0  ;;  %v321_v17 = vmul.f32 0.1, %v193_v7  ;;  %v67_v6 = vld [vmem:[%s1030_s0 + $0x1a8] sm:$0xff] }
  0x34   :  { %vm258_vm6 = vcmp.gt.f32.partialorder %v194_v8, 0.0  ;;  %448 = vst [vmem:[%s1033_s3 + $0x120] sm:$0xff] %v384_v16  ;;  %v322_v18 = vmul.f32 0.1, %v194_v8  ;;  %v195_v19 = vadd.f32 %v513_v2, %v124_v9  ;;  %v196_v20 = vadd.f32 %v513_v2, %v125_v11 }
  0x35   :  { %v197_v21 = vadd.f32 %v513_v2, %v126_v12  ;;  %v385_v22 = vsel %vm257_vm5, %v193_v7, %v321_v17  ;;  %v198_v23 = vadd.f32 %v513_v2, %v127_v13  ;;  %v128_v24 = vmul.f32 %v508_v1, %v57_v14  ;;  %v68_v7 = vld [vmem:[%s1030_s0 + $0x1b0] sm:$0xff]  ;;  %v69_v14 = vld [vmem:[%s1030_s0 + $0x1b8] sm:$0xff] }
  0x36   :  { %v129_v25 = vmul.f32 %v508_v1, %v58_v15  ;;  %449 = vst [vmem:[%s1033_s3 + $0x128] sm:$0xff] %v385_v22  ;;  %v386_v26 = vsel %vm258_vm6, %v194_v8, %v322_v18  ;;  %vm259_vm7 = vcmp.gt.f32.partialorder %v195_v19, 0.0  ;;  %v323_v27 = vmul.f32 0.1, %v195_v19 }
  0x37   :  { %vm260_vm8 = vcmp.gt.f32.partialorder %v196_v20, 0.0  ;;  %450 = vst [vmem:[%s1033_s3 + $0x130] sm:$0xff] %v386_v26  ;;  %v324_v30 = vmul.f32 0.1, %v196_v20  ;;  %vm261_vm9 = vcmp.gt.f32.partialorder %v197_v21, 0.0  ;;  %vm262_vm10 = vcmp.gt.f32.partialorder %v198_v23, 0.0 }
  0x38   :  { %v325_v31 = vmul.f32 0.1, %v197_v21  ;;  %v387_v32 = vsel %vm259_vm7, %v195_v19, %v323_v27  ;;  %v326_v33 = vmul.f32 0.1, %v198_v23  ;;  %v199_v34 = vadd.f32 %v513_v2, %v128_v24  ;;  %v70_v19 = vld [vmem:[%s1030_s0 + $0x1c0] sm:$0xff] }
  0x39   :  { %v200_v35 = vadd.f32 %v513_v2, %v129_v25  ;;  %451 = vst [vmem:[%s1033_s3 + $0x138] sm:$0xff] %v387_v32  ;;  %v388_v37 = vsel %vm260_vm8, %v196_v20, %v324_v30  ;;  %v130_v39 = vmul.f32 %v508_v1, %v59_v28  ;;  %v131_v40 = vmul.f32 %v508_v1, %v60_v29  ;;  %v71_v20 = vld [vmem:[%s1030_s0 + $0x1c8] sm:$0xff]  ;;  %v73_v32 = vld [vmem:[%s1030_s0 + $0x1d8] sm:$0xff] }
  0x3a   :  { %v389_v38 = vsel %vm261_vm9, %v197_v21, %v325_v31  ;;  %452 = vst [vmem:[%s1033_s3 + $0x140] sm:$0xff] %v388_v37  ;;  %v390_v44 = vsel %vm262_vm10, %v198_v23, %v326_v33  ;;  %vm263_vm11 = vcmp.gt.f32.partialorder %v199_v34, 0.0  ;;  %v327_v45 = vmul.f32 0.1, %v199_v34  ;;  %v72_v21 = vld [vmem:[%s1030_s0 + $0x1d0] sm:$0xff]  ;;  %v74_v33 = vld [vmem:[%s1030_s0 + $0x1e0] sm:$0xff] }
  0x3b   :  { %453 = vst [vmem:[%s1033_s3 + $0x148] sm:$0xff] %v389_v38  ;;  %vm264_vm12 = vcmp.gt.f32.partialorder %v200_v35, 0.0  ;;  %454 = vst [vmem:[%s1033_s3 + $0x150] sm:$0xff] %v390_v44  ;;  %v328_v46 = vmul.f32 0.1, %v200_v35  ;;  %v201_v47 = vadd.f32 %v513_v2, %v130_v39  ;;  %v202_v48 = vadd.f32 %v513_v2, %v131_v40 }
  0x3c   :  { %v132_v49 = vmul.f32 %v508_v1, %v61_v36  ;;  %v391_v50 = vsel %vm263_vm11, %v199_v34, %v327_v45  ;;  %v133_v51 = vmul.f32 %v508_v1, %v62_v41  ;;  %v134_v52 = vmul.f32 %v508_v1, %v63_v42 }
  0x3d   :  { %v135_v53 = vmul.f32 %v508_v1, %v64_v43  ;;  %455 = vst [vmem:[%s1033_s3 + $0x158] sm:$0xff] %v391_v50  ;;  %v392_v56 = vsel %vm264_vm12, %v200_v35, %v328_v46  ;;  %vm265_vm13 = vcmp.gt.f32.partialorder %v201_v47, 0.0  ;;  %v329_v57 = vmul.f32 0.1, %v201_v47  ;;  %v75_v46 = vld [vmem:[%s1030_s0 + $0x1e8] sm:$0xff] }
  0x3e   :  { %vm266_vm14 = vcmp.gt.f32.partialorder %v202_v48, 0.0  ;;  %456 = vst [vmem:[%s1033_s3 + $0x160] sm:$0xff] %v392_v56  ;;  %v330_v58 = vmul.f32 0.1, %v202_v48  ;;  %v203_v59 = vadd.f32 %v513_v2, %v132_v49  ;;  %v204_v60 = vadd.f32 %v513_v2, %v133_v51 }
  0x3f   :  { %v205_v61 = vadd.f32 %v513_v2, %v134_v52  ;;  %v393_v62 = vsel %vm265_vm13, %v201_v47, %v329_v57  ;;  %v206_v63 = vadd.f32 %v513_v2, %v135_v53  ;;  %v136_v0 = vmul.f32 %v508_v1, %v65_v54  ;;  %v76_v47 = vld [vmem:[%s1030_s0 + $0x1f0] sm:$0xff]  ;;  %v77_v54 = vld [vmem:[%s1030_s0 + $0x1f8] sm:$0xff] }
  0x40   :  { %v137_v3 = vmul.f32 %v508_v1, %v66_v55  ;;  %457 = vst [vmem:[%s1033_s3 + $0x168] sm:$0xff] %v393_v62  ;;  %v394_v4 = vsel %vm266_vm14, %v202_v48, %v330_v58  ;;  %vm267_vm15 = vcmp.gt.f32.partialorder %v203_v59, 0.0  ;;  %v331_v5 = vmul.f32 0.1, %v203_v59 }
  0x41   :  { %vm268_vm0 = vcmp.gt.f32.partialorder %v204_v60, 0.0  ;;  %458 = vst [vmem:[%s1033_s3 + $0x170] sm:$0xff] %v394_v4  ;;  %v332_v8 = vmul.f32 0.1, %v204_v60  ;;  %vm269_vm1 = vcmp.gt.f32.partialorder %v205_v61, 0.0  ;;  %vm270_vm2 = vcmp.gt.f32.partialorder %v206_v63, 0.0 }
  0x42   :  { %v333_v9 = vmul.f32 0.1, %v205_v61  ;;  %v395_v10 = vsel %vm267_vm15, %v203_v59, %v331_v5  ;;  %v334_v11 = vmul.f32 0.1, %v206_v63  ;;  %v207_v12 = vadd.f32 %v513_v2, %v136_v0 }
  0x43   :  { %v208_v13 = vadd.f32 %v513_v2, %v137_v3  ;;  %459 = vst [vmem:[%s1033_s3 + $0x178] sm:$0xff] %v395_v10  ;;  %v396_v15 = vsel %vm268_vm0, %v204_v60, %v332_v8  ;;  %v138_v17 = vmul.f32 %v508_v1, %v67_v6  ;;  %v139_v18 = vmul.f32 %v508_v1, %v68_v7 }
  0x44   :  { %v397_v16 = vsel %vm269_vm1, %v205_v61, %v333_v9  ;;  %460 = vst [vmem:[%s1033_s3 + $0x180] sm:$0xff] %v396_v15  ;;  %v398_v22 = vsel %vm270_vm2, %v206_v63, %v334_v11  ;;  %vm271_vm3 = vcmp.gt.f32.partialorder %v207_v12, 0.0  ;;  %v335_v23 = vmul.f32 0.1, %v207_v12 }
  0x45   :  { %461 = vst [vmem:[%s1033_s3 + $0x188] sm:$0xff] %v397_v16  ;;  %vm272_vm4 = vcmp.gt.f32.partialorder %v208_v13, 0.0  ;;  %462 = vst [vmem:[%s1033_s3 + $0x190] sm:$0xff] %v398_v22  ;;  %v336_v24 = vmul.f32 0.1, %v208_v13  ;;  %v209_v25 = vadd.f32 %v513_v2, %v138_v17  ;;  %v210_v26 = vadd.f32 %v513_v2, %v139_v18 }
  0x46   :  { %v140_v27 = vmul.f32 %v508_v1, %v69_v14  ;;  %v399_v28 = vsel %vm271_vm3, %v207_v12, %v335_v23  ;;  %v141_v29 = vmul.f32 %v508_v1, %v70_v19  ;;  %v142_v30 = vmul.f32 %v508_v1, %v71_v20 }
  0x47   :  { %v143_v31 = vmul.f32 %v508_v1, %v72_v21  ;;  %463 = vst [vmem:[%s1033_s3 + $0x198] sm:$0xff] %v399_v28  ;;  %v400_v34 = vsel %vm272_vm4, %v208_v13, %v336_v24  ;;  %vm273_vm5 = vcmp.gt.f32.partialorder %v209_v25, 0.0  ;;  %v337_v35 = vmul.f32 0.1, %v209_v25 }
  0x48   :  { %vm274_vm6 = vcmp.gt.f32.partialorder %v210_v26, 0.0  ;;  %464 = vst [vmem:[%s1033_s3 + $0x1a0] sm:$0xff] %v400_v34  ;;  %v338_v36 = vmul.f32 0.1, %v210_v26  ;;  %v211_v37 = vadd.f32 %v513_v2, %v140_v27  ;;  %v212_v38 = vadd.f32 %v513_v2, %v141_v29 }
  0x49   :  { %v213_v39 = vadd.f32 %v513_v2, %v142_v30  ;;  %v401_v40 = vsel %vm273_vm5, %v209_v25, %v337_v35  ;;  %v214_v41 = vadd.f32 %v513_v2, %v143_v31  ;;  %v144_v42 = vmul.f32 %v508_v1, %v73_v32 }
  0x4a   :  { %v145_v43 = vmul.f32 %v508_v1, %v74_v33  ;;  %465 = vst [vmem:[%s1033_s3 + $0x1a8] sm:$0xff] %v401_v40  ;;  %v402_v44 = vsel %vm274_vm6, %v210_v26, %v338_v36  ;;  %vm275_vm7 = vcmp.gt.f32.partialorder %v211_v37, 0.0  ;;  %v339_v45 = vmul.f32 0.1, %v211_v37 }
  0x4b   :  { %vm276_vm8 = vcmp.gt.f32.partialorder %v212_v38, 0.0  ;;  %466 = vst [vmem:[%s1033_s3 + $0x1b0] sm:$0xff] %v402_v44  ;;  %v340_v48 = vmul.f32 0.1, %v212_v38  ;;  %vm277_vm9 = vcmp.gt.f32.partialorder %v213_v39, 0.0  ;;  %vm278_vm10 = vcmp.gt.f32.partialorder %v214_v41, 0.0 }
  0x4c   :  { %v341_v49 = vmul.f32 0.1, %v213_v39  ;;  %v403_v50 = vsel %vm275_vm7, %v211_v37, %v339_v45  ;;  %v342_v51 = vmul.f32 0.1, %v214_v41  ;;  %v215_v52 = vadd.f32 %v513_v2, %v144_v42 }
  0x4d   :  { %v216_v53 = vadd.f32 %v513_v2, %v145_v43  ;;  %467 = vst [vmem:[%s1033_s3 + $0x1b8] sm:$0xff] %v403_v50  ;;  %v404_v55 = vsel %vm276_vm8, %v212_v38, %v340_v48  ;;  %v146_v57 = vmul.f32 %v508_v1, %v75_v46  ;;  %v147_v58 = vmul.f32 %v508_v1, %v76_v47 }
  0x4e   :  { %v405_v56 = vsel %vm277_vm9, %v213_v39, %v341_v49  ;;  %468 = vst [vmem:[%s1033_s3 + $0x1c0] sm:$0xff] %v404_v55  ;;  %v406_v59 = vsel %vm278_vm10, %v214_v41, %v342_v51  ;;  %vm279_vm11 = vcmp.gt.f32.partialorder %v215_v52, 0.0  ;;  %v343_v60 = vmul.f32 0.1, %v215_v52 }
  0x4f   :  { %469 = vst [vmem:[%s1033_s3 + $0x1c8] sm:$0xff] %v405_v56  ;;  %vm280_vm12 = vcmp.gt.f32.partialorder %v216_v53, 0.0  ;;  %470 = vst [vmem:[%s1033_s3 + $0x1d0] sm:$0xff] %v406_v59  ;;  %v344_v61 = vmul.f32 0.1, %v216_v53  ;;  %v217_v62 = vadd.f32 %v513_v2, %v146_v57  ;;  %v218_v63 = vadd.f32 %v513_v2, %v147_v58 }
  0x50   :  { %v148_v0 = vmul.f32 %v508_v1, %v77_v54  ;;  %v407_v3 = vsel %vm279_vm11, %v215_v52, %v343_v60 }
  0x51   :  { %471 = vst [vmem:[%s1033_s3 + $0x1d8] sm:$0xff] %v407_v3  ;;  %v408_v4 = vsel %vm280_vm12, %v216_v53, %v344_v61  ;;  %vm281_vm13 = vcmp.gt.f32.partialorder %v217_v62, 0.0  ;;  %v345_v5 = vmul.f32 0.1, %v217_v62  ;;  %vm282_vm14 = vcmp.gt.f32.partialorder %v218_v63, 0.0 }
  0x52   :  { %472 = vst [vmem:[%s1033_s3 + $0x1e0] sm:$0xff] %v408_v4  ;;  %v346_v6 = vmul.f32 0.1, %v218_v63  ;;  %v219_v7 = vadd.f32 %v513_v2, %v148_v0 }
  0x53   :  { %v409_v8 = vsel %vm281_vm13, %v217_v62, %v345_v5 }
  0x54   :  { %473 = vst [vmem:[%s1033_s3 + $0x1e8] sm:$0xff] %v409_v8  ;;  %v410_v1 = vsel %vm282_vm14, %v218_v63, %v346_v6  ;;  %vm283_vm15 = vcmp.gt.f32.partialorder %v219_v7, 0.0  ;;  %v347_v9 = vmul.f32 0.1, %v219_v7 }
  0x55   :  { %474 = vst [vmem:[%s1033_s3 + $0x1f0] sm:$0xff] %v410_v1 }
  0x56   :  { %v411_v10 = vsel %vm283_vm15, %v219_v7, %v347_v9 }
  0x57   :  { %475 = vst [vmem:[%s1033_s3 + $0x1f8] sm:$0xff] %v411_v10 }

// kernel: a_call__.2
= control target key start
LH: loop header
LB: loop body
LE: loop exit
PB: predicated region body
PF: predicated region fallthrough
CT: control target
= control target key end

     0   :  { %s5814_s12 = smov 0   ;;  %s5816_s13 = smov 0   ;;  %s6786_s0 = inlined_call_operand.vmem [shape: bf16[2,18,18,4], index: 0, kind: input, shape index: {}]   ;;  %s6787_s1 = inlined_call_operand.vmem [shape: bf16[9,4,128], index: 1, kind: input, shape index: {}]   ;;  %s6788_s2 = inlined_call_operand.vmem [shape: f32[2,16,16,128], index: 2, kind: output, shape index: {0}]   ;;  %s6789_s3 = inlined_call_operand.vmem [shape: f32[2,2,2,128], index: 3, kind: output, shape index: {1}]  }
   0x1   :  { %s5818_s14 = smov 0   ;;  %s5820_s15 = smov 0  }
   0x2   :  { %s5822_s16 = smov 0  }
   0x3 LB: > { %s23_s17 = sadd.s32 1, %s5782_s14  ;;  %s26_s18 = sadd.s32 1, %s5786_s15  ;;  %s5790_s16 = sphi %s5822_s16, %s14_s16   ;;  %s5786_s15 = sphi %s5820_s15, %s6794_s15   ;;  %s5782_s14 = sphi %s5818_s14, %s6793_s14   ;;  %s5778_s13 = sphi %s5816_s13, %s6792_s13   ;;  %s5774_s12 = sphi %s5814_s12, %s6791_s12  }
   0x4   : > { %p24_p0 = scmp.ge.s32.totalorder %s23_s17, 2  ;;  %p4786_p1 = scmp.ge.s32.totalorder %s5790_s16, 1 }
   0x5   : > { %p156_p2 = scmp.lt.s32.totalorder %s5790_s16, 5 }
   0x6   : > { %s6796_s17 = smov (%p24_p0, %s23_s17), 0  ;;  %s6798_s18 = smov (!%p24_p0, %s26_s18), %s5786_s15 }
   0x7   : > { %p157_p3 = pnand %p4786_p1, %p156_p2  ;;  %p28_p4 = scmp.ge.s32.totalorder %s6798_s18, 2 }
   0x8   : > { %p193_p5 = scmp.lt.s32.totalorder (!%p157_p3), %s5778_s13, 1  ;;  %s5084_s23 = smul.u32 (!%p157_p3), 96, %s5774_s12 }
   0x9   : > { %s6800_s18 = smov (%p28_p4, %s6798_s18), 0  ;;  %160 = sbr.rel (%p157_p3) target bundleno = 528 (0x210), region = 28 }
   0xa   : > { %s4788_s22 = sshll.u32 (!%p157_p3), %s5774_s12, 3  ;;  %p211_p7 = scmp.lt.s32.totalorder (!%p157_p3), %s5774_s12, 1 }
   0xb   : > { %p6469_p6 = scmp.lt.s32.totalorder (!%p157_p3), %s4788_s22, 15 }
   0xe   : > { %v225_v0 = vld [vmem:[%s6787_s1] sm:$0x3]  ;;  %vm253_vm0 = vcmask 1041408   ;;  %v5792_v1 = vmov 0.0   ;;  %v4797_v3 = vld [vmem:[%s6787_s1 + $0x2] sm:$0x3] }
   0xf   : > { %5235 = vmatprep.subr.bf16.mxu1 %v5792_v1  ;;  %v301_v2 = vsel %vm253_vm0, %v225_v0, 0  ;;  %5229 = vmatprep.subr.bf16.mxu0 %v5792_v1  ;;  %vm5793_vm1 = vmmov 0   ;;  %v255_v4 = vsel %vm253_vm0, %v4797_v3, 0  ;;  %s6802_s13 = smov (!%p193_p5, %s5778_s13), 1  ;;  %v4809_v5 = vld [vmem:[%s6787_s1 + $0x6] sm:$0x3] }
  0x10   : > { %5236 = vmatpush3.bf16.msra.mxu1 %v301_v2  ;;  %5237 = vmatprep.mubr.msk.bf16.mxu1 %vm5793_vm1, %v5792_v1  ;;  %s5661_s24 = smul.u32 216, %s6802_s13  ;;  %vm249_vm2 = vcmask 31744   ;;  %v417_v7 = vsel %vm253_vm0, %v4809_v5, 0  ;;  %vm236_vm3 = vsmask.f32 7424  ;;  %vm346_vm4 = vcmask 1046528  }
  0x11   : > { %5230 = vmatpush3.bf16.msra.mxu0 %v255_v4  ;;  %5231 = vmatprep.mubr.msk.bf16.mxu0 %vm5793_vm1, %v5792_v1  ;;  %v4802_v13 = vld [vmem:[%s6787_s1 + $0x4] sm:$0x3]  ;;  %v4815_v17 = vld [vmem:[%s6787_s1 + $0xa] sm:$0x3]  ;;  %v4812_v25 = vld [vmem:[%s6787_s1 + $0x8] sm:$0x3] }
  0x12   : > { %5241 = vmatprep.subr.bf16.mxu0 %v5792_v1  ;;  %5247 = vmatprep.subr.bf16.mxu1 %v5792_v1  ;;  %s197_s29 = scalar_lea.vmem %s6786_s0, %s5661_s24  ;;  %v354_v18 = vsel %vm253_vm0, %v4802_v13, 0  ;;  %v536_v22 = vsel %vm253_vm0, %v4815_v17, 0  ;;  %v482_v31 = vsel %vm253_vm0, %v4812_v25, 0  ;;  %v4825_v36 = vld [vmem:[%s6787_s1 + $0xe] sm:$0x3]  ;;  %s6804_s22 = smov (!%p6469_p6, %s4788_s22), 15 }
  0x13   : > { %s5872_s30 = scalar_lea.vmem %s197_s29, %s5084_s23  ;;  %v664_v42 = vsel %vm253_vm0, %v4825_v36, 0  ;;  %v4822_v45 = vld [vmem:[%s6787_s1 + $0xc] sm:$0x3]  ;;  %v4833_v52 = vld [vmem:[%s6787_s1 + $0x2] sm:$0x3]  ;;  %s4789_s4 = sshll.u32 %s6804_s22, 1 }
  0x14   : > { %v5704_v6 = vld [vmem:[%s5872_s30] sm:$0xff]   ;;  %v5705_v8 = vld [vmem:[%s5872_s30 + $0x8] ss:$0 sps:$4 sm:$0x11]   ;;  %v5706_v16 = vld [vmem:[%s5872_s30 + $0xc] sm:$0xff]   ;;  %v599_v51 = vsel %vm253_vm0, %v4822_v45, 0 }
  0x15   : > { %5238 = vmatmul.mubr.msk.bf16.vlgmr.msra.gmra.mxu1 %vm249_vm2, %v5704_v6  ;;  %v238_v9 = vshrl.u32 %v5704_v6, 16  ;;  %v240_v10 = vshll.u32 %v5704_v6, 16  ;;  %v245_v11 = vshll.u32 %v5705_v8, 16  ;;  %v5707_v19 = vld [vmem:[%s5872_s30 + $0x14] ss:$0 sps:$4 sm:$0x11]  }
  0x16   : > { %5248 = vmatpush3.bf16.msra.mxu1 %v417_v7  ;;  %5249 = vmatprep.mubr.msk.bf16.mxu1 %vm5793_vm1, %v5792_v1  ;;  %v5891_v20 = vld [vmem:[%s5872_s30 + $0x18] sm:$0xff]   ;;  %v347_v23 = vrot.slane %v5704_v6, 1  ;;  %v348_v24 = vrot.slane %v5705_v8, 1  ;;  %v469_v26 = vshll.u32 %v5706_v16, 16  ;;  %v529_v27 = vrot.slane %v5706_v16, 1  ;;  %v5919_v41 = vld [vmem:[%s5872_s30 + $0xc] sm:$0xff]  }
  0x17   : > { %v242_v12 = vrot.slane %v240_v10, 1  ;;  %5259 = vmatprep.subr.bf16.mxu1 %v5792_v1  ;;  %v247_v14 = vrot.slane %v245_v11, 1  ;;  %v530_v28 = vrot.slane %v5707_v19, 1  ;;  %v5904_v29 = vld [vmem:[%s5872_s30 + $0x20] ss:$0 sps:$4 sm:$0x11]  }
  0x18   : > { %v651_v30 = vshll.u32 %v5891_v20, 16  ;;  %v349_v32 = vsel %vm346_vm4, %v347_v23, %v348_v24  ;;  %v467_v33 = vshrl.u32 %v5706_v16, 16  ;;  %v471_v34 = vrot.slane %v469_v26, 1  ;;  %v5711_v48 = vld [vmem:[%s5872_s30 + $0x14] ss:$0 sps:$4 sm:$0x11]  }
  0x19   : > { %v243_v15 = vor.u32 %v242_v12, %v238_v9  ;;  %v474_v35 = vshll.u32 %v5707_v19, 16  ;;  %v531_v37 = vsel %vm346_vm4, %v529_v27, %v530_v28  ;;  %v649_v38 = vshrl.u32 %v5891_v20, 16  ;;  %v4828_v60 = vld [vmem:[%s6787_s1 + $0x10] sm:$0x3]  ;;  %v4838_v61 = vld [vmem:[%s6787_s1 + $0x4] sm:$0x3] }
  0x1a   : > { %v653_v39 = vrot.slane %v651_v30, 1  ;;  %v656_v40 = vshll.u32 %v5904_v29, 16  ;;  %v472_v43 = vor.u32 %v471_v34, %v467_v33  ;;  %v799_v49 = vshll.u32 %v5919_v41, 16  ;;  %v5960_v0 = vld [vmem:[%s5872_s30 + $0x18] sm:$0xff]   ;;  %v786_v5 = vld [vmem:[%s6787_s1] sm:$0x3] }
  0x1b   : > { %v248_v21 = vsel %vm236_vm3, %v243_v15, %v247_v14  ;;  %v476_v44 = vrot.slane %v474_v35, 1  ;;  %v797_v54 = vshrl.u32 %v5919_v41, 16  ;;  %v804_v56 = vshll.u32 %v5711_v48, 16  ;;  %v5713_v8 = vld [vmem:[%s5872_s30 + $0x20] ss:$0 sps:$4 sm:$0x11]  }
  0x1c   : > { %5232 = vmatmul.mubr.msk.bf16.vlgmr.msra.gmra.mxu0 %vm249_vm2, %v248_v21  ;;  %v654_v46 = vor.u32 %v653_v39, %v649_v38  ;;  %v658_v47 = vrot.slane %v656_v40, 1  ;;  %v801_v55 = vrot.slane %v799_v49, 1  ;;  %v812_v57 = vsel %vm253_vm0, %v4833_v52, 0  ;;  %v4846_v12 = vld [vmem:[%s6787_s1 + $0x8] sm:$0x3]  ;;  %s4790_s5 = sshll.u32 %s6802_s13, 5 }
  0x1d   : > { %5242 = vmatpush3.bf16.msra.mxu0 %v354_v18  ;;  %5250 = vmatmul.mubr.msk.bf16.vlgmr.msra.gmra.mxu1 %vm249_vm2, %v5706_v16  ;;  %v477_v50 = vsel %vm236_vm3, %v472_v43, %v476_v44  ;;  %v806_v59 = vrot.slane %v804_v56, 1  ;;  %v718_v62 = vsel %vm253_vm0, %v4828_v60, 0  ;;  %v909_v2 = vsel %vm253_vm0, %v4838_v61, 0  ;;  %v4856_v21 = vld [vmem:[%s6787_s1 + $0xc] sm:$0x3]  ;;  %v5714_v26 = vld [vmem:[%s5872_s30 + $0x24] sm:$0xff]   ;;  %s6526_s6 = sadd.s32 %s4790_s5, %s4789_s4 }
  0x1e   : > { %5243 = vmatprep.mubr.msk.bf16.mxu0 %vm5793_vm1, %v5792_v1  ;;  %5253 = vmatprep.subr.bf16.mxu0 %v5792_v1  ;;  %v659_v53 = vsel %vm236_vm3, %v654_v46, %v658_v47  ;;  %v802_v58 = vor.u32 %v801_v55, %v797_v54  ;;  %v711_v3 = vrot.slane %v5891_v20, 1  ;;  %v712_v4 = vrot.slane %v5904_v29, 1  ;;  %v4849_v25 = vld [vmem:[%s6787_s1 + $0xa] sm:$0x3]  ;;  %v4862_v27 = vld [vmem:[%s6787_s1 + $0x10] sm:$0x3] }
  0x1f   : > { %5260 = vmatpush3.bf16.msra.mxu1 %v536_v22  ;;  %5261 = vmatprep.mubr.msk.bf16.mxu1 %vm5793_vm1, %v5792_v1  ;;  %v902_v6 = vrot.slane %v5919_v41, 1  ;;  %v903_v7 = vrot.slane %v5711_v48, 1  ;;  %v1018_v9 = vshll.u32 %v5960_v0, 16  ;;  %v858_v11 = vsel %vm253_vm0, %v786_v5, 0  ;;  %v4859_v36 = vld [vmem:[%s6787_s1 + $0xe] sm:$0x3] }
  0x20   : > { %5271 = vmatprep.subr.bf16.mxu1 %v5792_v1  ;;  %v807_v63 = vsel %vm236_vm3, %v802_v58, %v806_v59  ;;  %v713_v10 = vsel %vm346_vm4, %v711_v3, %v712_v4  ;;  %v1016_v13 = vshrl.u32 %v5960_v0, 16  ;;  %v1023_v16 = vshll.u32 %v5713_v8, 16  ;;  %v5715_v29 = vld [vmem:[%s5872_s30 + $0x2c] ss:$0 sps:$4 sm:$0x11]   ;;  %v6082_v3 = vld [vmem:[%s5872_s30 + $0x30] sm:$0xff]  }
  0x21   : > { %v904_v14 = vsel %vm346_vm4, %v902_v6, %v903_v7  ;;  %v1020_v15 = vrot.slane %v1018_v9, 1  ;;  %v1031_v17 = vsel %vm253_vm0, %v4846_v12, 0  ;;  %v1146_v24 = vsel %vm253_vm0, %v4856_v21, 0  ;;  %v4869_v45 = vld [vmem:[%s6787_s1 + $0x2] sm:$0x3]  ;;  %s4791_s9 = sshll.u32 %s6526_s6, 3 }
  0x22   : > { %v1025_v19 = vrot.slane %v1023_v16, 1  ;;  %v1084_v28 = vsel %vm253_vm0, %v4849_v25, 0  ;;  %v1263_v30 = vsel %vm253_vm0, %v4862_v27, 0  ;;  %v1197_v33 = vshll.u32 %v5714_v26, 16  ;;  %v4874_v60 = vld [vmem:[%s6787_s1 + $0x4] sm:$0x3]  ;;  %s6553_s21 = scalar_lea.vmem %s6788_s2, %s4791_s9 }
  0x23   : > { %v1021_v18 = vor.u32 %v1020_v15, %v1016_v13  ;;  %v1256_v34 = vrot.slane %v5714_v26, 1  ;;  %v1257_v35 = vrot.slane %v5715_v29, 1  ;;  %v1195_v38 = vshrl.u32 %v5714_v26, 16  ;;  %v5717_v47 = vld [vmem:[%s5872_s30 + $0x20] ss:$0 sps:$4 sm:$0x11]  }
  0x24   : > { %5244 = vmatmul.mubr.msk.bf16.vlgmr.msra.gmra.mxu0 %vm249_vm2, %v349_v32  ;;  %v1078_v32 = vrot.slane %v5713_v8, 1  ;;  %v1199_v39 = vrot.slane %v1197_v33, 1  ;;  %v1202_v40 = vshll.u32 %v5715_v29, 16  ;;  %v1210_v43 = vsel %vm253_vm0, %v4859_v36, 0  ;;  %v4882_v7 = vld [vmem:[%s6787_s1 + $0x8] sm:$0x3] }
  0x25   : > { %5254 = vmatpush3.bf16.msra.mxu0 %v482_v31  ;;  %5262 = vmatmul.mubr.msk.bf16.vlgmr.msra.gmra.mxu1 %vm249_vm2, %v531_v37  ;;  %v1026_v23 = vsel %vm236_vm3, %v1021_v18, %v1025_v19  ;;  %v1077_v31 = vrot.slane %v5960_v0, 1  ;;  %v1258_v44 = vsel %vm346_vm4, %v1256_v34, %v1257_v35  ;;  %v1350_v56 = vshll.u32 %v5717_v47, 16  ;;  %v4895_v18 = vld [vmem:[%s6787_s1 + $0xe] sm:$0x3]  ;;  %v4892_v27 = vld [vmem:[%s6787_s1 + $0xc] sm:$0x3] }
  0x26   : > { %5255 = vmatprep.mubr.msk.bf16.mxu0 %vm5793_vm1, %v5792_v1  ;;  %5265 = vmatprep.subr.bf16.mxu0 %v5792_v1  ;;  %v1200_v48 = vor.u32 %v1199_v39, %v1195_v38  ;;  %v1204_v49 = vrot.slane %v1202_v40, 1  ;;  %v1449_v6 = vrot.slane %v5717_v47, 1  ;;  %v1743_v12 = vshll.u32 %v6082_v3, 16  ;;  %v4905_v34 = vld [vmem:[%s6787_s1 + $0x2] sm:$0x3]  ;;  %s6806_s12 = smov (!%p211_p7, %s5774_s12), 1 }
  0x27   : > { %5272 = vmatpush3.bf16.msra.mxu1 %v664_v42  ;;  %5273 = vmatprep.mubr.msk.bf16.mxu1 %vm5793_vm1, %v5792_v1  ;;  %v1079_v37 = vsel %vm346_vm4, %v1077_v31, %v1078_v32  ;;  %v5716_v42 = vld [vmem:[%s5872_s30 + $0x18] sm:$0xff]   ;;  %v1352_v59 = vrot.slane %v1350_v56, 1  ;;  %v1577_v13 = vsel %vm253_vm0, %v4882_v7, 0  ;;  %v1692_v33 = vsel %vm253_vm0, %v4892_v27, 0  ;;  %v4921_v7 = vld [vmem:[%s6787_s1 + $0xa] sm:$0x3] }
  0x28   : > { %5283 = vmatprep.subr.bf16.mxu1 %v5792_v1  ;;  %v1343_v52 = vshrl.u32 %v5716_v42, 16  ;;  %v1205_v54 = vsel %vm236_vm3, %v1200_v48, %v1204_v49  ;;  %v1448_v5 = vrot.slane %v5716_v42, 1  ;;  %v1745_v21 = vrot.slane %v1743_v12, 1  ;;  %s4792_s25 = sshll.u32 %s6802_s13, 1 }
  0x29   : > { %v1904_v39 = vsel %vm253_vm0, %v4905_v34, 0  ;;  %v1802_v48 = vrot.slane %v6082_v3, 1  ;;  %s214_s26 = sadd.s32 %s4792_s25, %s6806_s12 }
  0x2a   : > { %s4793_s27 = sshll.u32 %s214_s26, 1 }
  0x2b   : > { %s216_s13 = scalar_lea.vmem %s6789_s3, %s4793_s27 }
  0x2c   : > { %5256 = vmatmul.mubr.msk.bf16.vlgmr.msra.gmra.mxu0 %vm249_vm2, %v477_v50  ;;  %v1345_v50 = vshll.u32 %v5716_v42, 16 }
  0x2d   : > { %5266 = vmatpush3.bf16.msra.mxu0 %v599_v51  ;;  %5274 = vmatmul.mubr.msk.bf16.vlgmr.msra.gmra.mxu1 %vm249_vm2, %v659_v53  ;;  %v1358_v51 = vsel %vm253_vm0, %v4869_v45, 0  ;;  %v4879_v53 = vld [vmem:[%s6787_s1 + $0x6] sm:$0x3] }
  0x2e   : > { %5267 = vmatprep.mubr.msk.bf16.mxu0 %vm5793_vm1, %v5792_v1  ;;  %5277 = vmatprep.subr.bf16.mxu0 %v5792_v1  ;;  %v1347_v55 = vrot.slane %v1345_v50, 1  ;;  %v1878_v50 = vld [vmem:[%s6787_s1] sm:$0x3] }
  0x2f   : > { %5284 = vmatpush3.bf16.msra.mxu1 %v812_v57  ;;  %5285 = vmatprep.mubr.msk.bf16.mxu1 %vm5793_vm1, %v5792_v1  ;;  %v1513_v57 = vsel %vm253_vm0, %v4879_v53, 0  ;;  %v5725_v53 = vld [vmem:[%s5872_s30 + $0x38] ss:$0 sps:$4 sm:$0x11]   ;;  %v1950_v56 = vsel %vm253_vm0, %v1878_v50, 0 }
  0x30   : > { %5295 = vmatprep.subr.bf16.mxu1 %v5792_v1  ;;  %v1348_v58 = vor.u32 %v1347_v55, %v1343_v52 }
  0x32   : > { %v1353_v61 = vsel %vm236_vm3, %v1348_v58, %v1352_v59 }
  0x34   : > { %5268 = vmatmul.mubr.msk.bf16.vlgmr.msra.gmra.mxu0 %vm249_vm2, %v5891_v20  ;;  %v4843_v20 = vld [vmem:[%s6787_s1 + $0x6] sm:$0x3] }
  0x35   : > { %5278 = vmatpush3.bf16.msra.mxu0 %v718_v62  ;;  %5286 = vmatmul.mubr.msk.bf16.vlgmr.msra.gmra.mxu1 %vm249_vm2, %v807_v63  ;;  %v967_v22 = vsel %vm253_vm0, %v4843_v20, 0  ;;  %v5718_v62 = vld [vmem:[%s5872_s30 + $0x24] sm:$0xff]   ;;  %v1741_v20 = vshrl.u32 %v6082_v3, 16 }
  0x36   : > { %5279 = vmatprep.mubr.msk.bf16.mxu0 %vm5793_vm1, %v5792_v1  ;;  %5289 = vmatprep.subr.bf16.mxu0 %v5792_v1  ;;  %v4885_v63 = vld [vmem:[%s6787_s1 + $0xa] sm:$0x3]  ;;  %v1564_v8 = vshll.u32 %v5718_v62, 16  ;;  %v1623_v9 = vrot.slane %v5718_v62, 1  ;;  %v1562_v15 = vshrl.u32 %v5718_v62, 16 }
  0x37   : > { %5296 = vmatpush3.bf16.msra.mxu1 %v909_v2  ;;  %5297 = vmatprep.mubr.msk.bf16.mxu1 %vm5793_vm1, %v5792_v1  ;;  %v5719_v2 = vld [vmem:[%s5872_s30 + $0x2c] ss:$0 sps:$4 sm:$0x11]   ;;  %v1630_v4 = vsel %vm253_vm0, %v4885_v63, 0 }
  0x38   : > { %5307 = vmatprep.subr.bf16.mxu1 %v5792_v1  ;;  %v1566_v16 = vrot.slane %v1564_v8, 1  ;;  %v5726_v8 = vld [vmem:[%s5872_s30 + $0x3c] sm:$0xff]  }
  0x3a   : > { %v1567_v25 = vor.u32 %v1566_v16, %v1562_v15  ;;  %v2289_v15 = vshll.u32 %v5726_v8, 16  ;;  %v2348_v16 = vrot.slane %v5726_v8, 1 }
  0x3c   : > { %5280 = vmatmul.mubr.msk.bf16.vlgmr.msra.gmra.mxu0 %vm249_vm2, %v713_v10  ;;  %v1624_v10 = vrot.slane %v5719_v2, 1 }
  0x3d   : > { %5290 = vmatpush3.bf16.msra.mxu0 %v858_v11  ;;  %5298 = vmatmul.mubr.msk.bf16.vlgmr.msra.gmra.mxu1 %vm249_vm2, %v904_v14  ;;  %v6094_v11 = vld [vmem:[%s5872_s30 + $0x38] ss:$0 sps:$4 sm:$0x11]   ;;  %v1450_v14 = vsel %vm346_vm4, %v1448_v5, %v1449_v6 }
  0x3e   : > { %5291 = vmatprep.mubr.msk.bf16.mxu0 %vm5793_vm1, %v5792_v1  ;;  %5301 = vmatprep.subr.bf16.mxu0 %v5792_v1  ;;  %v1625_v19 = vsel %vm346_vm4, %v1623_v9, %v1624_v10  ;;  %v1803_v49 = vrot.slane %v6094_v11, 1  ;;  %v4934_v9 = vld [vmem:[%s6787_s1 + $0x10] sm:$0x3]  ;;  %v2176_v10 = vsel %vm253_vm0, %v4921_v7, 0 }
  0x3f   : > { %5308 = vmatpush3.bf16.msra.mxu1 %v1031_v17  ;;  %5309 = vmatprep.mubr.msk.bf16.mxu1 %vm5793_vm1, %v5792_v1  ;;  %v1569_v17 = vshll.u32 %v5719_v2, 16  ;;  %v4915_v2 = vld [vmem:[%s6787_s1 + $0x6] sm:$0x3]  ;;  %v2355_v12 = vsel %vm253_vm0, %v4934_v9, 0  ;;  %v4964_v9 = vld [vmem:[%s6787_s1 + $0xc] sm:$0x3] }
  0x40   : > { %5319 = vmatprep.subr.bf16.mxu1 %v5792_v1  ;;  %v1804_v55 = vsel %vm346_vm4, %v1802_v48, %v1803_v49  ;;  %v6272_v48 = vld [vmem:[%s5872_s30 + $0x48] sm:$0xff]  }
  0x44   : > { %5292 = vmatmul.mubr.msk.bf16.vlgmr.msra.gmra.mxu0 %vm249_vm2, %v5919_v41  ;;  %v1332_v41 = vld [vmem:[%s6787_s1] sm:$0x3] }
  0x45   : > { %5302 = vmatpush3.bf16.msra.mxu0 %v967_v22  ;;  %5310 = vmatmul.mubr.msk.bf16.vlgmr.msra.gmra.mxu1 %vm249_vm2, %v1026_v23  ;;  %v1404_v46 = vsel %vm253_vm0, %v1332_v41, 0  ;;  %v1748_v22 = vshll.u32 %v6094_v11, 16  ;;  %v6109_v23 = vld [vmem:[%s5872_s30 + $0x24] sm:$0xff]  }
  0x46   : > { %5303 = vmatprep.mubr.msk.bf16.mxu0 %vm5793_vm1, %v5792_v1  ;;  %5313 = vmatprep.subr.bf16.mxu0 %v5792_v1  ;;  %v1891_v31 = vshll.u32 %v6109_v23, 16  ;;  %v1889_v36 = vshrl.u32 %v6109_v23, 16  ;;  %v5727_v11 = vld [vmem:[%s5872_s30 + $0x44] ss:$0 sps:$4 sm:$0x11]  }
  0x47   : > { %5320 = vmatpush3.bf16.msra.mxu1 %v1146_v24  ;;  %5321 = vmatprep.mubr.msk.bf16.mxu1 %vm5793_vm1, %v5792_v1  ;;  %v1756_v24 = vsel %vm253_vm0, %v4895_v18, 0  ;;  %v1750_v29 = vrot.slane %v1748_v22, 1  ;;  %v4931_v18 = vld [vmem:[%s6787_s1 + $0xe] sm:$0x3]  ;;  %v2294_v22 = vshll.u32 %v5727_v11, 16 }
  0x48   : > { %5331 = vmatprep.subr.bf16.mxu1 %v5792_v1 }
  0x4c   : > { %5304 = vmatmul.mubr.msk.bf16.vlgmr.msra.gmra.mxu0 %vm249_vm2, %v5960_v0  ;;  %v1455_v0 = vsel %vm253_vm0, %v4874_v60, 0 }
  0x4d   : > { %5314 = vmatpush3.bf16.msra.mxu0 %v1084_v28  ;;  %5322 = vmatmul.mubr.msk.bf16.vlgmr.msra.gmra.mxu1 %vm249_vm2, %v5714_v26  ;;  %v1571_v26 = vrot.slane %v1569_v17, 1  ;;  %v1746_v28 = vor.u32 %v1745_v21, %v1741_v20  ;;  %v2349_v17 = vrot.slane %v5727_v11, 1  ;;  %v2287_v20 = vshrl.u32 %v5726_v8, 16 }
  0x4e   : > { %5315 = vmatprep.mubr.msk.bf16.mxu0 %vm5793_vm1, %v5792_v1  ;;  %5325 = vmatprep.subr.bf16.mxu0 %v5792_v1  ;;  %v2291_v21 = vrot.slane %v2289_v15, 1  ;;  %v2784_v15 = vsel %vm253_vm0, %v4964_v9, 0 }
  0x4f   : > { %5332 = vmatpush3.bf16.msra.mxu1 %v1263_v30  ;;  %5333 = vmatprep.mubr.msk.bf16.mxu1 %vm5793_vm1, %v5792_v1  ;;  %v5723_v30 = vld [vmem:[%s5872_s30 + $0x2c] ss:$0 sps:$4 sm:$0x11]   ;;  %v1572_v32 = vsel %vm236_vm3, %v1567_v25, %v1571_v26  ;;  %v1751_v35 = vsel %vm236_vm3, %v1746_v28, %v1750_v29  ;;  %v2302_v25 = vsel %vm253_vm0, %v4931_v18, 0  ;;  %v2350_v26 = vsel %vm346_vm4, %v2348_v16, %v2349_v17  ;;  %v4977_v16 = vld [vmem:[%s6787_s1 + $0x2] sm:$0x3] }
  0x50   : > { %5343 = vmatprep.subr.bf16.mxu1 %v5792_v1  ;;  %v1896_v38 = vshll.u32 %v5723_v30, 16  ;;  %v1995_v52 = vrot.slane %v5723_v30, 1  ;;  %v2292_v28 = vor.u32 %v2291_v21, %v2287_v20  ;;  %v2296_v29 = vrot.slane %v2294_v22, 1  ;;  %v5729_v30 = vld [vmem:[%s5872_s30 + $0x38] ss:$0 sps:$4 sm:$0x11]  }
  0x51   : > { %v2996_v21 = vsel %vm253_vm0, %v4977_v16, 0  ;;  %v6434_v16 = vld [vmem:[%s5872_s30 + $0x48] sm:$0xff]  }
  0x52   : > { %v1898_v41 = vrot.slane %v1896_v38, 1 }
  0x54   : > { %5316 = vmatmul.mubr.msk.bf16.vlgmr.msra.gmra.mxu0 %vm249_vm2, %v1079_v37  ;;  %v1893_v37 = vrot.slane %v1891_v31, 1 }
  0x55   : > { %5326 = vmatpush3.bf16.msra.mxu0 %v1210_v43  ;;  %5334 = vmatmul.mubr.msk.bf16.vlgmr.msra.gmra.mxu1 %vm249_vm2, %v1258_v44  ;;  %v4910_v43 = vld [vmem:[%s6787_s1 + $0x4] sm:$0x3] }
  0x56   : > { %5327 = vmatprep.mubr.msk.bf16.mxu0 %vm5793_vm1, %v5792_v1  ;;  %5337 = vmatprep.subr.bf16.mxu0 %v5792_v1  ;;  %v1894_v40 = vor.u32 %v1893_v37, %v1889_v36  ;;  %v2001_v47 = vsel %vm253_vm0, %v4910_v43, 0  ;;  %v2442_v36 = vshll.u32 %v5729_v30, 16  ;;  %v4951_v37 = vld [vmem:[%s6787_s1 + $0x6] sm:$0x3] }
  0x57   : > { %5344 = vmatpush3.bf16.msra.mxu1 %v1404_v46  ;;  %5345 = vmatprep.mubr.msk.bf16.mxu1 %vm5793_vm1, %v5792_v1  ;;  %v6150_v46 = vld [vmem:[%s5872_s30 + $0x30] sm:$0xff]  }
  0x58   : > { %5355 = vmatprep.subr.bf16.mxu1 %v5792_v1  ;;  %v1899_v45 = vsel %vm236_vm3, %v1894_v40, %v1898_v41  ;;  %v2108_v59 = vshrl.u32 %v6150_v46, 16  ;;  %v2444_v41 = vrot.slane %v2442_v36, 1 }
  0x5c   : > { %5328 = vmatmul.mubr.msk.bf16.vlgmr.msra.gmra.mxu0 %vm249_vm2, %v1205_v54  ;;  %v2110_v54 = vshll.u32 %v6150_v46, 16 }
  0x5d   : > { %5338 = vmatpush3.bf16.msra.mxu0 %v1358_v51  ;;  %5346 = vmatmul.mubr.msk.bf16.vlgmr.msra.gmra.mxu1 %vm249_vm2, %v5716_v42  ;;  %v4898_v42 = vld [vmem:[%s6787_s1 + $0x10] sm:$0x3]  ;;  %v1994_v51 = vrot.slane %v6109_v23, 1 }
  0x5e   : > { %5339 = vmatprep.mubr.msk.bf16.mxu0 %vm5793_vm1, %v5792_v1  ;;  %5349 = vmatprep.subr.bf16.mxu0 %v5792_v1  ;;  %v1809_v44 = vsel %vm253_vm0, %v4898_v42, 0  ;;  %v2112_v60 = vrot.slane %v2110_v54, 1  ;;  %v4946_v42 = vld [vmem:[%s6787_s1 + $0x4] sm:$0x3] }
  0x5f   : > { %5356 = vmatpush3.bf16.msra.mxu1 %v1513_v57  ;;  %5357 = vmatprep.mubr.msk.bf16.mxu1 %vm5793_vm1, %v5792_v1  ;;  %v4918_v57 = vld [vmem:[%s6787_s1 + $0x8] sm:$0x3]  ;;  %v1996_v58 = vsel %vm346_vm4, %v1994_v51, %v1995_v52  ;;  %v2541_v51 = vrot.slane %v5729_v30, 1  ;;  %v2894_v30 = vrot.slane %v6272_v48, 1 }
  0x60   : > { %5367 = vmatprep.subr.bf16.mxu1 %v5792_v1  ;;  %v2113_v63 = vor.u32 %v2112_v60, %v2108_v59  ;;  %v4954_v52 = vld [vmem:[%s6787_s1 + $0x8] sm:$0x3] }
  0x64   : > { %5340 = vmatmul.mubr.msk.bf16.vlgmr.msra.gmra.mxu0 %vm249_vm2, %v1353_v61  ;;  %v2115_v61 = vshll.u32 %v5725_v53, 16 }
  0x65   : > { %5350 = vmatpush3.bf16.msra.mxu0 %v1455_v0  ;;  %5358 = vmatmul.mubr.msk.bf16.vlgmr.msra.gmra.mxu1 %vm249_vm2, %v5718_v62  ;;  %v2123_v62 = vsel %vm253_vm0, %v4918_v57, 0  ;;  %v2835_v57 = vshll.u32 %v6272_v48, 16 }
  0x66   : > { %5351 = vmatprep.mubr.msk.bf16.mxu0 %vm5793_vm1, %v5792_v1  ;;  %5361 = vmatprep.subr.bf16.mxu0 %v5792_v1  ;;  %v2117_v0 = vrot.slane %v2115_v61, 1 }
  0x67   : > { %5368 = vmatpush3.bf16.msra.mxu1 %v1630_v4  ;;  %5369 = vmatprep.mubr.msk.bf16.mxu1 %vm5793_vm1, %v5792_v1  ;;  %v2059_v4 = vsel %vm253_vm0, %v4915_v2, 0  ;;  %v2833_v2 = vshrl.u32 %v6272_v48, 16 }
  0x68   : > { %5379 = vmatprep.subr.bf16.mxu1 %v5792_v1  ;;  %v2118_v5 = vsel %vm236_vm3, %v2113_v63, %v2117_v0  ;;  %v4967_v63 = vld [vmem:[%s6787_s1 + $0xe] sm:$0x3] }
  0x6c   : > { %5352 = vmatmul.mubr.msk.bf16.vlgmr.msra.gmra.mxu0 %vm249_vm2, %v1450_v14  ;;  %v2170_v14 = vrot.slane %v5725_v53, 1 }
  0x6d   : > { %5362 = vmatpush3.bf16.msra.mxu0 %v1577_v13  ;;  %5370 = vmatmul.mubr.msk.bf16.vlgmr.msra.gmra.mxu1 %vm249_vm2, %v1625_v19  ;;  %v2169_v13 = vrot.slane %v6150_v46, 1 }
  0x6e   : > { %5363 = vmatprep.mubr.msk.bf16.mxu0 %vm5793_vm1, %v5792_v1  ;;  %5373 = vmatprep.subr.bf16.mxu0 %v5792_v1 }
  0x6f   : > { %5380 = vmatpush3.bf16.msra.mxu1 %v1756_v24  ;;  %5381 = vmatprep.mubr.msk.bf16.mxu1 %vm5793_vm1, %v5792_v1  ;;  %v2171_v19 = vsel %vm346_vm4, %v2169_v13, %v2170_v14  ;;  %v5728_v24 = vld [vmem:[%s5872_s30 + $0x30] sm:$0xff]  }
  0x70   : > { %5391 = vmatprep.subr.bf16.mxu1 %v5792_v1  ;;  %v2437_v31 = vshll.u32 %v5728_v24, 16  ;;  %v2435_v34 = vshrl.u32 %v5728_v24, 16  ;;  %v2540_v50 = vrot.slane %v5728_v24, 1 }
  0x72   : > { %v2542_v59 = vsel %vm346_vm4, %v2540_v50, %v2541_v51 }
  0x74   : > { %5364 = vmatmul.mubr.msk.bf16.vlgmr.msra.gmra.mxu0 %vm249_vm2, %v1572_v32  ;;  %v4941_v32 = vld [vmem:[%s6787_s1 + $0x2] sm:$0x3] }
  0x75   : > { %5374 = vmatpush3.bf16.msra.mxu0 %v1692_v33  ;;  %5382 = vmatmul.mubr.msk.bf16.vlgmr.msra.gmra.mxu1 %vm249_vm2, %v1751_v35  ;;  %v2297_v33 = vsel %vm236_vm3, %v2292_v28, %v2296_v29  ;;  %v2439_v35 = vrot.slane %v2437_v31, 1  ;;  %v2450_v38 = vsel %vm253_vm0, %v4941_v32, 0  ;;  %v6340_v28 = vld [vmem:[%s5872_s30 + $0x48] sm:$0xff]   ;;  %v2970_v32 = vld [vmem:[%s6787_s1] sm:$0x3] }
  0x76   : > { %5375 = vmatprep.mubr.msk.bf16.mxu0 %vm5793_vm1, %v5792_v1  ;;  %5385 = vmatprep.subr.bf16.mxu0 %v5792_v1  ;;  %v3202_v36 = vshll.u32 %v6340_v28, 16 }
  0x77   : > { %5392 = vmatpush3.bf16.msra.mxu1 %v1904_v39  ;;  %5393 = vmatprep.mubr.msk.bf16.mxu1 %vm5793_vm1, %v5792_v1  ;;  %v2605_v39 = vsel %vm253_vm0, %v4951_v37, 0  ;;  %v2440_v40 = vor.u32 %v2439_v35, %v2435_v34  ;;  %v6356_v35 = vld [vmem:[%s5872_s30 + $0x50] ss:$0 sps:$4 sm:$0x11]  }
  0x78   : > { %5403 = vmatprep.subr.bf16.mxu1 %v5792_v1 }
  0x79   : > { %v2445_v43 = vsel %vm236_vm3, %v2440_v40, %v2444_v41  ;;  %v3200_v41 = vshrl.u32 %v6340_v28, 16 }
  0x7c   : > { %5376 = vmatmul.mubr.msk.bf16.vlgmr.msra.gmra.mxu0 %vm249_vm2, %v6082_v3  ;;  %v4928_v3 = vld [vmem:[%s6787_s1 + $0xc] sm:$0x3] }
  0x7d   : > { %5386 = vmatpush3.bf16.msra.mxu0 %v1809_v44  ;;  %5394 = vmatmul.mubr.msk.bf16.vlgmr.msra.gmra.mxu1 %vm249_vm2, %v1899_v45  ;;  %v2238_v6 = vsel %vm253_vm0, %v4928_v3, 0  ;;  %v5730_v44 = vld [vmem:[%s5872_s30 + $0x3c] sm:$0xff]   ;;  %v4957_v45 = vld [vmem:[%s6787_s1 + $0xa] sm:$0x3]  ;;  %v2837_v3 = vrot.slane %v2835_v57, 1 }
  0x7e   : > { %5387 = vmatprep.mubr.msk.bf16.mxu0 %vm5793_vm1, %v5792_v1  ;;  %5397 = vmatprep.subr.bf16.mxu0 %v5792_v1  ;;  %v2722_v49 = vsel %vm253_vm0, %v4957_v45, 0  ;;  %v2656_v53 = vshll.u32 %v5730_v44, 16  ;;  %v2715_v54 = vrot.slane %v5730_v44, 1  ;;  %v2654_v60 = vshrl.u32 %v5730_v44, 16  ;;  %v5006_v57 = vld [vmem:[%s6787_s1 + $0x10] sm:$0x3] }
  0x7f   : > { %5404 = vmatpush3.bf16.msra.mxu1 %v2001_v47  ;;  %5405 = vmatprep.mubr.msk.bf16.mxu1 %vm5793_vm1, %v5792_v1  ;;  %v5731_v47 = vld [vmem:[%s5872_s30 + $0x44] ss:$0 sps:$4 sm:$0x11]  }
  0x80   : > { %5415 = vmatprep.subr.bf16.mxu1 %v5792_v1  ;;  %v2658_v61 = vrot.slane %v2656_v53, 1 }
  0x82   : > { %v2659_v7 = vor.u32 %v2658_v61, %v2654_v60 }
  0x84   : > { %5388 = vmatmul.mubr.msk.bf16.vlgmr.msra.gmra.mxu0 %vm249_vm2, %v1804_v55  ;;  %v2716_v55 = vrot.slane %v5731_v47, 1 }
  0x85   : > { %5398 = vmatpush3.bf16.msra.mxu0 %v1950_v56  ;;  %5406 = vmatmul.mubr.msk.bf16.vlgmr.msra.gmra.mxu1 %vm249_vm2, %v1996_v58  ;;  %v6284_v56 = vld [vmem:[%s5872_s30 + $0x50] ss:$0 sps:$4 sm:$0x11]   ;;  %v2669_v58 = vsel %vm253_vm0, %v4954_v52, 0 }
  0x86   : > { %5399 = vmatprep.mubr.msk.bf16.mxu0 %vm5793_vm1, %v5792_v1  ;;  %5409 = vmatprep.subr.bf16.mxu0 %v5792_v1  ;;  %v2717_v0 = vsel %vm346_vm4, %v2715_v54, %v2716_v55  ;;  %v2895_v31 = vrot.slane %v6284_v56, 1  ;;  %v4993_v54 = vld [vmem:[%s6787_s1 + $0xa] sm:$0x3] }
  0x87   : > { %5416 = vmatpush3.bf16.msra.mxu1 %v2123_v62  ;;  %5417 = vmatprep.mubr.msk.bf16.mxu1 %vm5793_vm1, %v5792_v1  ;;  %v2661_v62 = vshll.u32 %v5731_v47, 16  ;;  %v4987_v47 = vld [vmem:[%s6787_s1 + $0x6] sm:$0x3] }
  0x88   : > { %5427 = vmatprep.subr.bf16.mxu1 %v5792_v1  ;;  %v2896_v37 = vsel %vm346_vm4, %v2894_v30, %v2895_v31  ;;  %v5013_v30 = vld [vmem:[%s6787_s1 + $0x2] sm:$0x3] }
  0x8c   : > { %5400 = vmatmul.mubr.msk.bf16.vlgmr.msra.gmra.mxu0 %vm249_vm2, %v6109_v23  ;;  %v2424_v23 = vld [vmem:[%s6787_s1] sm:$0x3] }
  0x8d   : > { %5410 = vmatpush3.bf16.msra.mxu0 %v2059_v4  ;;  %5418 = vmatmul.mubr.msk.bf16.vlgmr.msra.gmra.mxu1 %vm249_vm2, %v2118_v5  ;;  %v2496_v27 = vsel %vm253_vm0, %v2424_v23, 0  ;;  %v2840_v4 = vshll.u32 %v6284_v56, 16  ;;  %v6299_v5 = vld [vmem:[%s5872_s30 + $0x3c] sm:$0xff]   ;;  %v5738_v56 = vld [vmem:[%s5872_s30 + $0x54] sm:$0xff]  }
  0x8e   : > { %5411 = vmatprep.mubr.msk.bf16.mxu0 %vm5793_vm1, %v5792_v1  ;;  %5421 = vmatprep.subr.bf16.mxu0 %v5792_v1  ;;  %v2983_v13 = vshll.u32 %v6299_v5, 16  ;;  %v2981_v18 = vshrl.u32 %v6299_v5, 16 }
  0x8f   : > { %5428 = vmatpush3.bf16.msra.mxu1 %v2238_v6  ;;  %5429 = vmatprep.mubr.msk.bf16.mxu1 %vm5793_vm1, %v5792_v1  ;;  %v2848_v6 = vsel %vm253_vm0, %v4967_v63, 0  ;;  %v2842_v11 = vrot.slane %v2840_v4, 1  ;;  %v3381_v63 = vshll.u32 %v5738_v56, 16 }
  0x90   : > { %5439 = vmatprep.subr.bf16.mxu1 %v5792_v1 }
  0x94   : > { %5412 = vmatmul.mubr.msk.bf16.vlgmr.msra.gmra.mxu0 %vm249_vm2, %v6150_v46  ;;  %v2547_v46 = vsel %vm253_vm0, %v4946_v42, 0  ;;  %v3204_v42 = vrot.slane %v3202_v36, 1 }
  0x95   : > { %5422 = vmatpush3.bf16.msra.mxu0 %v2176_v10  ;;  %5430 = vmatmul.mubr.msk.bf16.vlgmr.msra.gmra.mxu1 %vm249_vm2, %v5726_v8  ;;  %v2663_v8 = vrot.slane %v2661_v62, 1  ;;  %v2838_v10 = vor.u32 %v2837_v3, %v2833_v2  ;;  %v3447_v62 = vsel %vm253_vm0, %v5006_v57, 0  ;;  %v3261_v2 = vrot.slane %v6340_v28, 1 }
  0x96   : > { %5423 = vmatprep.mubr.msk.bf16.mxu0 %vm5793_vm1, %v5792_v1  ;;  %5433 = vmatprep.subr.bf16.mxu0 %v5792_v1  ;;  %v3205_v45 = vor.u32 %v3204_v42, %v3200_v41  ;;  %v3262_v3 = vrot.slane %v6356_v35, 1 }
  0x97   : > { %5440 = vmatpush3.bf16.msra.mxu1 %v2355_v12  ;;  %5441 = vmatprep.mubr.msk.bf16.mxu1 %vm5793_vm1, %v5792_v1  ;;  %v5735_v12 = vld [vmem:[%s5872_s30 + $0x44] ss:$0 sps:$4 sm:$0x11]   ;;  %v2664_v14 = vsel %vm236_vm3, %v2659_v7, %v2663_v8  ;;  %v2843_v17 = vsel %vm236_vm3, %v2838_v10, %v2842_v11  ;;  %v5003_v8 = vld [vmem:[%s6787_s1 + $0xe] sm:$0x3]  ;;  %v3379_v10 = vshrl.u32 %v5738_v56, 16 }
  0x98   : > { %5451 = vmatprep.subr.bf16.mxu1 %v5792_v1  ;;  %v2988_v20 = vshll.u32 %v5735_v12, 16  ;;  %v3087_v34 = vrot.slane %v5735_v12, 1  ;;  %v3383_v11 = vrot.slane %v3381_v63, 1  ;;  %v5743_v63 = vld [vmem:[%s5872_s30 + $0x5c] ss:$0 sps:$4 sm:$0x11]  }
  0x9a   : > { %v2990_v23 = vrot.slane %v2988_v20, 1 }
  0x9c   : > { %5424 = vmatmul.mubr.msk.bf16.vlgmr.msra.gmra.mxu0 %vm249_vm2, %v2171_v19  ;;  %v2985_v19 = vrot.slane %v2983_v13, 1 }
  0x9d   : > { %5434 = vmatpush3.bf16.msra.mxu0 %v2302_v25  ;;  %5442 = vmatmul.mubr.msk.bf16.vlgmr.msra.gmra.mxu1 %vm249_vm2, %v2350_v26  ;;  %v4982_v25 = vld [vmem:[%s6787_s1 + $0x4] sm:$0x3] }
  0x9e   : > { %5435 = vmatprep.mubr.msk.bf16.mxu0 %vm5793_vm1, %v5792_v1  ;;  %5445 = vmatprep.subr.bf16.mxu0 %v5792_v1  ;;  %v2986_v22 = vor.u32 %v2985_v19, %v2981_v18  ;;  %v3093_v29 = vsel %vm253_vm0, %v4982_v25, 0  ;;  %v3394_v18 = vsel %vm253_vm0, %v5003_v8, 0 }
  0x9f   : > { %5452 = vmatpush3.bf16.msra.mxu1 %v2496_v27  ;;  %5453 = vmatprep.mubr.msk.bf16.mxu1 %vm5793_vm1, %v5792_v1 }
  0xa0   : > { %5463 = vmatprep.subr.bf16.mxu1 %v5792_v1  ;;  %v2991_v27 = vsel %vm236_vm3, %v2986_v22, %v2990_v23  ;;  %v3384_v22 = vor.u32 %v3383_v11, %v3379_v10  ;;  %v6520_v11 = vld [vmem:[%s5872_s30 + $0x68] ss:$0 sps:$4 sm:$0x11]  }
  0xa4   : > { %5436 = vmatmul.mubr.msk.bf16.vlgmr.msra.gmra.mxu0 %vm249_vm2, %v2297_v33  ;;  %v3086_v33 = vrot.slane %v6299_v5, 1 }
  0xa5   : > { %5446 = vmatpush3.bf16.msra.mxu0 %v2450_v38  ;;  %5454 = vmatmul.mubr.msk.bf16.vlgmr.msra.gmra.mxu1 %vm249_vm2, %v5728_v24  ;;  %v4970_v24 = vld [vmem:[%s6787_s1 + $0x10] sm:$0x3]  ;;  %v3042_v38 = vsel %vm253_vm0, %v2970_v32, 0 }
  0xa6   : > { %5447 = vmatprep.mubr.msk.bf16.mxu0 %vm5793_vm1, %v5792_v1  ;;  %5457 = vmatprep.subr.bf16.mxu0 %v5792_v1  ;;  %v2901_v26 = vsel %vm253_vm0, %v4970_v24, 0  ;;  %v3088_v40 = vsel %vm346_vm4, %v3086_v33, %v3087_v34 }
  0xa7   : > { %5464 = vmatpush3.bf16.msra.mxu1 %v2605_v39  ;;  %5465 = vmatprep.mubr.msk.bf16.mxu1 %vm5793_vm1, %v5792_v1  ;;  %v4990_v39 = vld [vmem:[%s6787_s1 + $0x8] sm:$0x3] }
  0xa8   : > { %5475 = vmatprep.subr.bf16.mxu1 %v5792_v1 }
  0xac   : > { %5448 = vmatmul.mubr.msk.bf16.vlgmr.msra.gmra.mxu0 %vm249_vm2, %v2445_v43  ;;  %v3207_v43 = vshll.u32 %v6356_v35, 16  ;;  %v3527_v35 = vshrl.u32 %v6434_v16, 16 }
  0xad   : > { %5458 = vmatpush3.bf16.msra.mxu0 %v2547_v46  ;;  %5466 = vmatmul.mubr.msk.bf16.vlgmr.msra.gmra.mxu1 %vm249_vm2, %v5730_v44  ;;  %v3215_v44 = vsel %vm253_vm0, %v4990_v39, 0 }
  0xae   : > { %5459 = vmatprep.mubr.msk.bf16.mxu0 %vm5793_vm1, %v5792_v1  ;;  %5469 = vmatprep.subr.bf16.mxu0 %v5792_v1  ;;  %v3209_v46 = vrot.slane %v3207_v43, 1 }
  0xaf   : > { %5476 = vmatpush3.bf16.msra.mxu1 %v2722_v49  ;;  %5477 = vmatprep.mubr.msk.bf16.mxu1 %vm5793_vm1, %v5792_v1  ;;  %v3151_v49 = vsel %vm253_vm0, %v4987_v47, 0 }
  0xb0   : > { %5487 = vmatprep.subr.bf16.mxu1 %v5792_v1  ;;  %v3210_v50 = vsel %vm236_vm3, %v3205_v45, %v3209_v46 }
  0xb4   : > { %5460 = vmatmul.mubr.msk.bf16.vlgmr.msra.gmra.mxu0 %vm249_vm2, %v2542_v59  ;;  %v5739_v59 = vld [vmem:[%s5872_s30 + $0x5c] ss:$0 sps:$4 sm:$0x11]  }
  0xb5   : > { %5470 = vmatpush3.bf16.msra.mxu0 %v2669_v58  ;;  %5478 = vmatmul.mubr.msk.bf16.vlgmr.msra.gmra.mxu1 %vm249_vm2, %v2717_v0  ;;  %v3268_v58 = vsel %vm253_vm0, %v4993_v54, 0  ;;  %v3386_v12 = vshll.u32 %v5739_v59, 16 }
  0xb6   : > { %5471 = vmatprep.mubr.msk.bf16.mxu0 %vm5793_vm1, %v5792_v1  ;;  %5481 = vmatprep.subr.bf16.mxu0 %v5792_v1 }
  0xb7   : > { %5488 = vmatpush3.bf16.msra.mxu1 %v2848_v6  ;;  %5489 = vmatprep.mubr.msk.bf16.mxu1 %vm5793_vm1, %v5792_v1  ;;  %v3441_v6 = vrot.slane %v5739_v59, 1  ;;  %v3388_v23 = vrot.slane %v3386_v12, 1  ;;  %v5029_v59 = vld [vmem:[%s6787_s1 + $0xa] sm:$0x3] }
  0xb8   : > { %5499 = vmatprep.subr.bf16.mxu1 %v5792_v1 }
  0xb9   : > { %v3389_v32 = vsel %vm236_vm3, %v3384_v22, %v3388_v23  ;;  %v3753_v23 = vshll.u32 %v5743_v63, 16 }
  0xbc   : > { %5472 = vmatmul.mubr.msk.bf16.vlgmr.msra.gmra.mxu0 %vm249_vm2, %v2664_v14  ;;  %v3263_v14 = vsel %vm346_vm4, %v3261_v2, %v3262_v3 }
  0xbd   : > { %5482 = vmatpush3.bf16.msra.mxu0 %v2784_v15  ;;  %5490 = vmatmul.mubr.msk.bf16.vlgmr.msra.gmra.mxu1 %vm249_vm2, %v2843_v17  ;;  %v3516_v15 = vld [vmem:[%s6787_s1] sm:$0x3] }
  0xbe   : > { %5483 = vmatprep.mubr.msk.bf16.mxu0 %vm5793_vm1, %v5792_v1  ;;  %5493 = vmatprep.subr.bf16.mxu0 %v5792_v1  ;;  %v3588_v24 = vsel %vm253_vm0, %v3516_v15, 0  ;;  %v3808_v15 = vrot.slane %v5743_v63, 1 }
  0xbf   : > { %5500 = vmatpush3.bf16.msra.mxu1 %v2996_v21  ;;  %5501 = vmatprep.mubr.msk.bf16.mxu1 %vm5793_vm1, %v5792_v1 }
  0xc0   : > { %5511 = vmatprep.subr.bf16.mxu1 %v5792_v1 }
  0xc4   : > { %5484 = vmatmul.mubr.msk.bf16.vlgmr.msra.gmra.mxu0 %vm249_vm2, %v6272_v48  ;;  %v5000_v48 = vld [vmem:[%s6787_s1 + $0xc] sm:$0x3] }
  0xc5   : > { %5494 = vmatpush3.bf16.msra.mxu0 %v2901_v26  ;;  %5502 = vmatmul.mubr.msk.bf16.vlgmr.msra.gmra.mxu1 %vm249_vm2, %v2991_v27  ;;  %v3330_v51 = vsel %vm253_vm0, %v5000_v48, 0  ;;  %v6444_v26 = vld [vmem:[%s5872_s30 + $0x50] ss:$0 sps:$4 sm:$0x11]   ;;  %v3529_v27 = vshll.u32 %v6434_v16, 16 }
  0xc6   : > { %5495 = vmatprep.mubr.msk.bf16.mxu0 %vm5793_vm1, %v5792_v1  ;;  %5505 = vmatprep.subr.bf16.mxu0 %v5792_v1 }
  0xc7   : > { %5512 = vmatpush3.bf16.msra.mxu1 %v3093_v29  ;;  %5513 = vmatprep.mubr.msk.bf16.mxu1 %vm5793_vm1, %v5792_v1  ;;  %v3531_v36 = vrot.slane %v3529_v27, 1 }
  0xc8   : > { %5523 = vmatprep.subr.bf16.mxu1 %v5792_v1 }
  0xc9   : > { %v3532_v47 = vor.u32 %v3531_v36, %v3527_v35 }
  0xcc   : > { %5496 = vmatmul.mubr.msk.bf16.vlgmr.msra.gmra.mxu0 %vm249_vm2, %v2896_v37  ;;  %v3534_v37 = vshll.u32 %v6444_v26, 16 }
  0xcd   : > { %5506 = vmatpush3.bf16.msra.mxu0 %v3042_v38  ;;  %5514 = vmatmul.mubr.msk.bf16.vlgmr.msra.gmra.mxu1 %vm249_vm2, %v3088_v40  ;;  %v5023_v38 = vld [vmem:[%s6787_s1 + $0x6] sm:$0x3]  ;;  %v3542_v40 = vsel %vm253_vm0, %v5013_v30, 0 }
  0xce   : > { %5507 = vmatprep.mubr.msk.bf16.mxu0 %vm5793_vm1, %v5792_v1  ;;  %5517 = vmatprep.subr.bf16.mxu0 %v5792_v1  ;;  %v3536_v48 = vrot.slane %v3534_v37, 1 }
  0xcf   : > { %5524 = vmatpush3.bf16.msra.mxu1 %v3215_v44  ;;  %5525 = vmatprep.mubr.msk.bf16.mxu1 %vm5793_vm1, %v5792_v1  ;;  %v3697_v44 = vsel %vm253_vm0, %v5023_v38, 0 }
  0xd0   : > { %5535 = vmatprep.subr.bf16.mxu1 %v5792_v1  ;;  %v3537_v57 = vsel %vm236_vm3, %v3532_v47, %v3536_v48 }
  0xd4   : > { %5508 = vmatmul.mubr.msk.bf16.vlgmr.msra.gmra.mxu0 %vm249_vm2, %v6299_v5  ;;  %v3440_v5 = vrot.slane %v5738_v56, 1 }
  0xd5   : > { %5518 = vmatpush3.bf16.msra.mxu0 %v3151_v49  ;;  %v6390_v52 = vpop.f32.mrf.mxu1  ;;  %5526 = vmatmul.mubr.msk.bf16.vlgmr.msra.gmra.mxu1 %vm249_vm2, %v3210_v50 }
  0xd6   : > { %5519 = vmatprep.mubr.msk.bf16.mxu0 %vm5793_vm1, %v5792_v1  ;;  %5529 = vmatprep.subr.bf16.mxu0 %v5792_v1  ;;  %v3442_v19 = vsel %vm346_vm4, %v3440_v5, %v3441_v6  ;;  %v3633_v5 = vrot.slane %v6444_v26, 1  ;;  %v3814_v6 = vsel %vm253_vm0, %v5029_v59, 0  ;;  %v5039_v26 = vld [vmem:[%s6787_s1 + $0xe] sm:$0x3] }
  0xd7   : > { %v5239_v53 = vpop.f32.mrf.mxu1  ;;  %5536 = vmatpush3.bf16.msra.mxu1 %v3330_v51  ;;  %5537 = vmatprep.mubr.msk.bf16.mxu1 %vm5793_vm1, %v5792_v1 }
  0xd8   : > { %5547 = vmatprep.subr.bf16.mxu1 %v5792_v1  ;;  %v5018_v53 = vld [vmem:[%s6787_s1 + $0x4] sm:$0x3] }
  0xd9   : > { %v6402_v55 = vpop.f32.mrf.mxu1 }
  0xdb   : > { %v5240_v60 = vpop.f32.mrf.mxu1 }
  0xdc   : > { %v291_v61 = vpop.f32.mrf.mxu0  ;;  %5520 = vmatmul.mubr.msk.bf16.vlgmr.msra.gmra.mxu0 %vm249_vm2, %v6340_v28  ;;  %v6504_v60 = vld [vmem:[%s5872_s30 + $0x60] sm:$0xff]  }
  0xdd   : > { %5530 = vmatpush3.bf16.msra.mxu0 %v3268_v58  ;;  %v6413_v0 = vpop.f32.mrf.mxu1  ;;  %5538 = vmatmul.mubr.msk.bf16.vlgmr.msra.gmra.mxu1 %vm249_vm2, %v5738_v56  ;;  %v338_v33 = vadd.f32 %v6390_v52, %v291_v61  ;;  %v5742_v58 = vld [vmem:[%s5872_s30 + $0x54] sm:$0xff]   ;;  %v3927_v12 = vshll.u32 %v6504_v60, 16  ;;  %v3925_v27 = vshrl.u32 %v6504_v60, 16 }
  0xde   : > { %v5233_v4 = vpop.f32.mrf.mxu0  ;;  %5531 = vmatprep.mubr.msk.bf16.mxu0 %vm5793_vm1, %v5792_v1  ;;  %5541 = vmatprep.subr.bf16.mxu0 %v5792_v1 }
  0xdf   : > { %v5251_v7 = vpop.f32.mrf.mxu1  ;;  %5548 = vmatpush3.bf16.msra.mxu1 %v3447_v62  ;;  %5549 = vmatprep.mubr.msk.bf16.mxu1 %vm5793_vm1, %v5792_v1  ;;  %v3639_v62 = vsel %vm253_vm0, %v5018_v53, 0  ;;  %v3632_v4 = vrot.slane %v6434_v16, 1 }
  0xe0   : > { %v294_v9 = vpop.f32.mrf.mxu0  ;;  %5559 = vmatprep.subr.bf16.mxu1 %v5792_v1  ;;  %v3748_v7 = vshll.u32 %v5742_v58, 16 }
  0xe1   : > { %v6427_v13 = vpop.f32.mrf.mxu1  ;;  %v341_v45 = vadd.f32 %v6402_v55, %v294_v9 }
  0xe2   : > { %v5234_v17 = vpop.f32.mrf.mxu0  ;;  %v3750_v22 = vrot.slane %v3748_v7, 1 }
  0xe3   : > { %v5252_v20 = vpop.f32.mrf.mxu1 }
  0xe4   : > { %v390_v21 = vpop.f32.mrf.mxu0  ;;  %5532 = vmatmul.mubr.msk.bf16.vlgmr.msra.gmra.mxu0 %vm249_vm2, %v3263_v14  ;;  %v3807_v14 = vrot.slane %v5742_v58, 1  ;;  %v3634_v20 = vsel %vm346_vm4, %v3632_v4, %v3633_v5 }
  0xe5   : > { %5542 = vmatpush3.bf16.msra.mxu0 %v3394_v18  ;;  %v6440_v25 = vpop.f32.mrf.mxu1  ;;  %5550 = vmatmul.mubr.msk.bf16.vlgmr.msra.gmra.mxu1 %vm249_vm2, %v3442_v19  ;;  %v397_v41 = vadd.f32 %v390_v21, %v338_v33  ;;  %v5026_v18 = vld [vmem:[%s6787_s1 + $0x8] sm:$0x3]  ;;  %v3746_v21 = vshrl.u32 %v5742_v58, 16  ;;  %v6547_v33 = vld [vmem:[%s5872_s30 + $0x54] sm:$0xff]  }
  0xe6   : > { %v5245_v28 = vpop.f32.mrf.mxu0  ;;  %5543 = vmatprep.mubr.msk.bf16.mxu0 %vm5793_vm1, %v5792_v1  ;;  %5553 = vmatprep.subr.bf16.mxu0 %v5792_v1  ;;  %v4075_v47 = vshll.u32 %v6547_v33, 16  ;;  %v4073_v59 = vshrl.u32 %v6547_v33, 16 }
  0xe7   : > { %v5263_v29 = vpop.f32.mrf.mxu1  ;;  %5560 = vmatpush3.bf16.msra.mxu1 %v3588_v24  ;;  %5561 = vmatprep.mubr.msk.bf16.mxu1 %vm5793_vm1, %v5792_v1  ;;  %v460_v51 = vadd.f32 %v6413_v0, %v397_v41  ;;  %v3929_v28 = vrot.slane %v3927_v12, 1  ;;  %v3751_v38 = vor.u32 %v3750_v22, %v3746_v21  ;;  %v6610_v21 = vld [vmem:[%s5872_s30 + $0x60] sm:$0xff]  }
  0xe8   : > { %v393_v31 = vpop.f32.mrf.mxu0  ;;  %5571 = vmatprep.subr.bf16.mxu1 %v5792_v1  ;;  %v3932_v29 = vshll.u32 %v6520_v11, 16 }
  0xe9   : > { %v6459_v34 = vpop.f32.mrf.mxu1  ;;  %v398_v50 = vadd.f32 %v393_v31, %v341_v45  ;;  %v3761_v31 = vsel %vm253_vm0, %v5026_v18, 0 }
  0xea   : > { %v5246_v39 = vpop.f32.mrf.mxu0 }
  0xeb   : > { %v5264_v42 = vpop.f32.mrf.mxu1  ;;  %v461_v0 = vadd.f32 %v6427_v13, %v398_v50  ;;  %v3940_v39 = vsel %vm253_vm0, %v5039_v26, 0  ;;  %v5036_v50 = vld [vmem:[%s6787_s1 + $0xc] sm:$0x3] }
  0xec   : > { %v518_v43 = vpop.f32.mrf.mxu0  ;;  %5544 = vmatmul.mubr.msk.bf16.vlgmr.msra.gmra.mxu0 %vm249_vm2, %v3389_v32  ;;  %v3809_v32 = vsel %vm346_vm4, %v3807_v14, %v3808_v15  ;;  %v3755_v42 = vrot.slane %v3753_v23, 1  ;;  %v5042_v14 = vld [vmem:[%s6787_s1 + $0x10] sm:$0x3] }
  0xed   : > { %5554 = vmatpush3.bf16.msra.mxu0 %v3542_v40  ;;  %v6476_v46 = vpop.f32.mrf.mxu1  ;;  %5562 = vmatmul.mubr.msk.bf16.vlgmr.msra.gmra.mxu1 %vm249_vm2, %v6434_v16  ;;  %v525_v55 = vadd.f32 %v518_v43, %v460_v51  ;;  %v3930_v43 = vor.u32 %v3929_v28, %v3925_v27  ;;  %v3986_v28 = vrot.slane %v6504_v60, 1 }
  0xee   : > { %v5257_v49 = vpop.f32.mrf.mxu0  ;;  %5555 = vmatprep.mubr.msk.bf16.mxu0 %vm5793_vm1, %v5792_v1  ;;  %5565 = vmatprep.subr.bf16.mxu0 %v5792_v1 }
  0xef   : > { %v5275_v52 = vpop.f32.mrf.mxu1  ;;  %5572 = vmatpush3.bf16.msra.mxu1 %v3697_v44  ;;  %5573 = vmatprep.mubr.msk.bf16.mxu1 %vm5793_vm1, %v5792_v1  ;;  %v579_v9 = vadd.f32 %v6440_v25, %v525_v55  ;;  %v3934_v44 = vrot.slane %v3932_v29, 1  ;;  %v3987_v29 = vrot.slane %v6520_v11, 1 }
  0xf0   : > { %v521_v54 = vpop.f32.mrf.mxu0  ;;  %5583 = vmatprep.subr.bf16.mxu1 %v5792_v1 }
  0xf1   : > { %v6496_v56 = vpop.f32.mrf.mxu1  ;;  %v526_v8 = vadd.f32 %v521_v54, %v461_v0  ;;  %v3756_v54 = vsel %vm236_vm3, %v3751_v38, %v3755_v42  ;;  %v3935_v55 = vsel %vm236_vm3, %v3930_v43, %v3934_v44  ;;  %v4292_v44 = vshrl.u32 %v6610_v21, 16 }
  0xf2   : > { %v5258_v61 = vpop.f32.mrf.mxu0 }
  0xf3   : > { %v5276_v2 = vpop.f32.mrf.mxu1  ;;  %v580_v24 = vadd.f32 %v6459_v34, %v526_v8  ;;  %v4077_v61 = vrot.slane %v4075_v47, 1 }
  0xf4   : > { %v635_v3 = vpop.f32.mrf.mxu0  ;;  %5556 = vmatmul.mubr.msk.bf16.vlgmr.msra.gmra.mxu0 %vm249_vm2, %v3537_v57 }
  0xf5   : > { %5566 = vmatpush3.bf16.msra.mxu0 %v3639_v62  ;;  %v6516_v10 = vpop.f32.mrf.mxu1  ;;  %5574 = vmatmul.mubr.msk.bf16.vlgmr.msra.gmra.mxu1 %vm249_vm2, %v5742_v58  ;;  %v642_v16 = vadd.f32 %v635_v3, %v579_v9  ;;  %v3876_v58 = vsel %vm253_vm0, %v5036_v50, 0  ;;  %v4078_v9 = vor.u32 %v4077_v61, %v4073_v59  ;;  %v5059_v59 = vld [vmem:[%s6787_s1 + $0x6] sm:$0x3] }
  0xf6   : > { %v5269_v13 = vpop.f32.mrf.mxu0  ;;  %5567 = vmatprep.mubr.msk.bf16.mxu0 %vm5793_vm1, %v5792_v1  ;;  %5577 = vmatprep.subr.bf16.mxu0 %v5792_v1 }
  0xf7   : > { %v5287_v17 = vpop.f32.mrf.mxu1  ;;  %5584 = vmatpush3.bf16.msra.mxu1 %v3814_v6  ;;  %5585 = vmatprep.mubr.msk.bf16.mxu1 %vm5793_vm1, %v5792_v1  ;;  %v707_v35 = vadd.f32 %v6476_v46, %v642_v16  ;;  %v6564_v46 = vld [vmem:[%s5872_s30 + $0x5c] ss:$0 sps:$4 sm:$0x11]  }
  0xf8   : > { %v638_v19 = vpop.f32.mrf.mxu0  ;;  %5595 = vmatprep.subr.bf16.mxu1 %v5792_v1  ;;  %v4080_v62 = vshll.u32 %v6564_v46, 16  ;;  %v5054_v17 = vld [vmem:[%s6787_s1 + $0x4] sm:$0x3] }
  0xf9   : > { %v6537_v25 = vpop.f32.mrf.mxu1  ;;  %v643_v34 = vadd.f32 %v638_v19, %v580_v24  ;;  %v3993_v19 = vsel %vm253_vm0, %v5042_v14, 0  ;;  %v4185_v26 = vsel %vm253_vm0, %v5054_v17, 0 }
  0xfa   : > { %v5270_v30 = vpop.f32.mrf.mxu0  ;;  %v4082_v12 = vrot.slane %v4080_v62, 1 }
  0xfb   : > { %v5288_v36 = vpop.f32.mrf.mxu1  ;;  %v708_v48 = vadd.f32 %v6496_v56, %v643_v34  ;;  %v5049_v56 = vld [vmem:[%s6787_s1 + $0x2] sm:$0x3]  ;;  %v6628_v34 = vld [vmem:[%s5872_s30 + $0x68] ss:$0 sps:$4 sm:$0x11]  }
  0xfc   : > { %v754_v37 = vpop.f32.mrf.mxu0  ;;  %5568 = vmatmul.mubr.msk.bf16.vlgmr.msra.gmra.mxu0 %vm249_vm2, %v3634_v20  ;;  %v4088_v5 = vsel %vm253_vm0, %v5049_v56, 0  ;;  %v4083_v20 = vsel %vm236_vm3, %v4078_v9, %v4082_v12 }
  0xfd   : > { %v761_v40 = vadd.f32 %v754_v37, %v707_v35  ;;  %5578 = vmatpush3.bf16.msra.mxu0 %v3761_v31  ;;  %v6557_v41 = vpop.f32.mrf.mxu1  ;;  %5586 = vmatmul.mubr.msk.bf16.vlgmr.msra.gmra.mxu1 %vm249_vm2, %v3809_v32  ;;  %v4178_v31 = vrot.slane %v6547_v33, 1  ;;  %v4179_v32 = vrot.slane %v6564_v46, 1  ;;  %v4299_v46 = vshll.u32 %v6628_v34, 16 }
  0xfe   : > { %v5281_v45 = vpop.f32.mrf.mxu0  ;;  %5579 = vmatprep.mubr.msk.bf16.mxu0 %vm5793_vm1, %v5792_v1  ;;  %5589 = vmatprep.subr.bf16.mxu0 %v5792_v1 }
  0xff   : > { %763 = vst [vmem:[%s6553_s21] sm:$0xff] %v761_v40  ;;  %v5299_v49 = vpop.f32.mrf.mxu1  ;;  %5596 = vmatpush3.bf16.msra.mxu1 %v3940_v39  ;;  %5597 = vmatprep.mubr.msk.bf16.mxu1 %vm5793_vm1, %v5792_v1  ;;  %v773_v63 = vmul.f32 %v761_v40, %v761_v40 }
 0x100   : > { %v757_v51 = vpop.f32.mrf.mxu0  ;;  %5607 = vmatprep.subr.bf16.mxu1 %v5792_v1 }
 0x101   : > { %v762_v52 = vadd.f32 %v757_v51, %v708_v48  ;;  %v6575_v53 = vpop.f32.mrf.mxu1 }
 0x102   : > { %v5282_v57 = vpop.f32.mrf.mxu0 }
 0x103   : > { %764 = vst [vmem:[%s6553_s21 + $0x8] sm:$0xff] %v762_v52  ;;  %v6586_v0 = vadd.f32 %v762_v52, %v761_v40  ;;  %v774_v2 = vmul.f32 %v762_v52, %v762_v52  ;;  %v5300_v3 = vpop.f32.mrf.mxu1  ;;  %v3988_v40 = vsel %vm346_vm4, %v3986_v28, %v3987_v29  ;;  %v5750_v28 = vld [vmem:[%s5872_s30 + $0x6c] sm:$0xff]  }
 0x104   : > { %v894_v4 = vpop.f32.mrf.mxu0  ;;  %5580 = vmatmul.mubr.msk.bf16.vlgmr.msra.gmra.mxu0 %vm249_vm2, %v3756_v54  ;;  %v5078_v29 = vld [vmem:[%s6787_s1 + $0x10] sm:$0x3] }
 0x105   : > { %v6590_v6 = vadd.f32 %v774_v2, %v773_v63  ;;  %5590 = vmatpush3.bf16.msra.mxu0 %v3876_v58  ;;  %v1067_v7 = vpop.f32.mrf.mxu1  ;;  %5598 = vmatmul.mubr.msk.bf16.vlgmr.msra.gmra.mxu1 %vm249_vm2, %v3935_v55  ;;  %v895_v22 = vadd.f32 %v894_v4, %v6516_v10  ;;  %v4062_v10 = vld [vmem:[%s6787_s1] sm:$0x3]  ;;  %v5072_v2 = vld [vmem:[%s6787_s1 + $0xc] sm:$0x3]  ;;  %v4243_v4 = vsel %vm253_vm0, %v5059_v59, 0  ;;  %v766_v14 = vrot.slane %v6586_v0, 4 }
 0x106   : > { %v5293_v8 = vpop.f32.mrf.mxu0  ;;  %5591 = vmatprep.mubr.msk.bf16.mxu0 %vm5793_vm1, %v5792_v1  ;;  %5601 = vmatprep.subr.bf16.mxu0 %v5792_v1  ;;  %v4134_v42 = vsel %vm253_vm0, %v4062_v10, 0 }
 0x107   : > { %v5311_v13 = vpop.f32.mrf.mxu1  ;;  %5608 = vmatpush3.bf16.msra.mxu1 %v4088_v5  ;;  %5609 = vmatprep.mubr.msk.bf16.mxu1 %vm5793_vm1, %v5792_v1  ;;  %v952_v35 = vadd.f32 %v6557_v41, %v895_v22  ;;  %v4180_v41 = vsel %vm346_vm4, %v4178_v31, %v4179_v32  ;;  %v5065_v22 = vld [vmem:[%s6787_s1 + $0xa] sm:$0x3]  ;;  %v5751_v31 = vld [vmem:[%s5872_s30 + $0x74] ss:$0 sps:$4 sm:$0x11]  }
 0x108   : > { %v897_v15 = vpop.f32.mrf.mxu0  ;;  %5619 = vmatprep.subr.bf16.mxu1 %v5792_v1  ;;  %v4422_v13 = vsel %vm253_vm0, %v5072_v2, 0 }
 0x109   : > { %v6602_v16 = vpop.f32.mrf.mxu1  ;;  %v898_v11 = vadd.f32 %v897_v15, %v6537_v25  ;;  %v5062_v25 = vld [vmem:[%s6787_s1 + $0x8] sm:$0x3] }
 0x10a   : > { %v5294_v18 = vpop.f32.mrf.mxu0  ;;  %v4307_v50 = vsel %vm253_vm0, %v5062_v25, 0 }
 0x10b   : > { %v5312_v23 = vpop.f32.mrf.mxu1  ;;  %v953_v47 = vadd.f32 %v6575_v53, %v898_v11  ;;  %v4301_v53 = vrot.slane %v4299_v46, 1 }
 0x10c   : > { %v1003_v24 = vpop.f32.mrf.mxu0  ;;  %5592 = vmatmul.mubr.msk.bf16.vlgmr.msra.gmra.mxu0 %vm249_vm2, %v6504_v60  ;;  %v4294_v60 = vshll.u32 %v6610_v21, 16 }
 0x10d   : > { %5602 = vmatpush3.bf16.msra.mxu0 %v3993_v19  ;;  %v1182_v27 = vpop.f32.mrf.mxu1  ;;  %5610 = vmatmul.mubr.msk.bf16.vlgmr.msra.gmra.mxu1 %vm249_vm2, %v4083_v20  ;;  %v1010_v38 = vadd.f32 %v1003_v24, %v952_v35  ;;  %v767_v24 = vadd.f32 %v766_v14, %v6586_v0  ;;  %v4353_v0 = vrot.slane %v6610_v21, 1 }
 0x10e   : > { %v5305_v30 = vpop.f32.mrf.mxu0  ;;  %5603 = vmatprep.mubr.msk.bf16.mxu0 %vm5793_vm1, %v5792_v1  ;;  %5613 = vmatprep.subr.bf16.mxu0 %v5792_v1  ;;  %v4296_v45 = vrot.slane %v4294_v60, 1 }
 0x10f   : > { %v5323_v36 = vpop.f32.mrf.mxu1  ;;  %5620 = vmatpush3.bf16.msra.mxu1 %v4185_v26  ;;  %5621 = vmatprep.mubr.msk.bf16.mxu1 %vm5793_vm1, %v5792_v1  ;;  %v1074_v52 = vadd.f32 %v1067_v7, %v1010_v38  ;;  %v4360_v30 = vsel %vm253_vm0, %v5065_v22, 0  ;;  %v4473_v38 = vshll.u32 %v5750_v28, 16 }
 0x110   : > { %v1006_v37 = vpop.f32.mrf.mxu0  ;;  %5631 = vmatprep.subr.bf16.mxu1 %v5792_v1  ;;  %v4297_v56 = vor.u32 %v4296_v45, %v4292_v44  ;;  %v4354_v36 = vrot.slane %v6628_v34, 1  ;;  %v4533_v34 = vrot.slane %v5751_v31, 1 }
 0x111   : > { %v1185_v39 = vpop.f32.mrf.mxu1  ;;  %v1011_v51 = vadd.f32 %v1006_v37, %v953_v47  ;;  %v4539_v37 = vsel %vm253_vm0, %v5078_v29, 0  ;;  %v5075_v47 = vld [vmem:[%s6787_s1 + $0xe] sm:$0x3] }
 0x112   : > { %v5306_v43 = vpop.f32.mrf.mxu0  ;;  %v4302_v5 = vsel %vm236_vm3, %v4297_v56, %v4301_v53  ;;  %v4355_v53 = vsel %vm346_vm4, %v4353_v0, %v4354_v36 }
 0x113   : > { %v5324_v48 = vpop.f32.mrf.mxu1  ;;  %v1075_v62 = vadd.f32 %v6602_v16, %v1011_v51  ;;  %v4478_v51 = vshll.u32 %v5751_v31, 16 }
 0x114   : > { %v1120_v49 = vpop.f32.mrf.mxu0  ;;  %5604 = vmatmul.mubr.msk.bf16.vlgmr.msra.gmra.mxu0 %vm249_vm2, %v3988_v40 }
 0x115   : > { %5614 = vmatpush3.bf16.msra.mxu0 %v4134_v42  ;;  %v1299_v54 = vpop.f32.mrf.mxu1  ;;  %5622 = vmatmul.mubr.msk.bf16.vlgmr.msra.gmra.mxu1 %vm249_vm2, %v4180_v41  ;;  %v1127_v57 = vadd.f32 %v1120_v49, %v1074_v52  ;;  %v4471_v49 = vshrl.u32 %v5750_v28, 16 }
 0x116   : > { %v5317_v55 = vpop.f32.mrf.mxu0  ;;  %5615 = vmatprep.mubr.msk.bf16.mxu0 %vm5793_vm1, %v5792_v1  ;;  %5625 = vmatprep.subr.bf16.mxu0 %v5792_v1 }
 0x117   : > { %v5335_v58 = vpop.f32.mrf.mxu1  ;;  %5632 = vmatpush3.bf16.msra.mxu1 %v4307_v50  ;;  %5633 = vmatprep.mubr.msk.bf16.mxu1 %vm5793_vm1, %v5792_v1  ;;  %v1189_v8 = vadd.f32 %v1182_v27, %v1127_v57  ;;  %v4475_v50 = vrot.slane %v4473_v38, 1 }
 0x118   : > { %v1123_v61 = vpop.f32.mrf.mxu0  ;;  %5643 = vmatprep.subr.bf16.mxu1 %v5792_v1  ;;  %v4486_v58 = vsel %vm253_vm0, %v5075_v47, 0 }
 0x119   : > { %v1302_v63 = vpop.f32.mrf.mxu1  ;;  %v1128_v7 = vadd.f32 %v1123_v61, %v1075_v62 }
 0x11a   : > { %v5318_v3 = vpop.f32.mrf.mxu0 }
 0x11b   : > { %v5336_v9 = vpop.f32.mrf.mxu1  ;;  %v1190_v19 = vadd.f32 %v1185_v39, %v1128_v7  ;;  %v768_v39 = vrot.slane %v767_v24, 2 }
 0x11c   : > { %v1246_v12 = vpop.f32.mrf.mxu0  ;;  %5616 = vmatmul.mubr.msk.bf16.vlgmr.msra.gmra.mxu0 %vm249_vm2, %v6547_v33  ;;  %v776_v33 = vrot.slane %v6590_v6, 4 }
 0x11d   : > { %v1253_v15 = vadd.f32 %v1246_v12, %v1189_v8  ;;  %5626 = vmatpush3.bf16.msra.mxu0 %v4243_v4  ;;  %v6667_v16 = vpop.f32.mrf.mxu1  ;;  %5634 = vmatmul.mubr.msk.bf16.vlgmr.msra.gmra.mxu1 %vm249_vm2, %v4302_v5  ;;  %v769_v52 = vadd.f32 %v768_v39, %v767_v24  ;;  %v4476_v4 = vor.u32 %v4475_v50, %v4471_v49  ;;  %v4480_v5 = vrot.slane %v4478_v51, 1 }
 0x11e   : > { %v5329_v17 = vpop.f32.mrf.mxu0  ;;  %5627 = vmatprep.mubr.msk.bf16.mxu0 %vm5793_vm1, %v5792_v1  ;;  %5637 = vmatprep.subr.bf16.mxu0 %v5792_v1  ;;  %v777_v32 = vadd.f32 %v776_v33, %v6590_v6 }
 0x11f   : > { %v1306_v18 = vadd.f32 %v1299_v54, %v1253_v15  ;;  %v5347_v20 = vpop.f32.mrf.mxu1  ;;  %5644 = vmatpush3.bf16.msra.mxu1 %v4422_v13  ;;  %5645 = vmatprep.mubr.msk.bf16.mxu1 %vm5793_vm1, %v5792_v1  ;;  %v770_v7 = vrot.slane %v769_v52, 1 }
 0x120   : > { %v1249_v23 = vpop.f32.mrf.mxu0  ;;  %5655 = vmatprep.subr.bf16.mxu1 %v5792_v1  ;;  %v778_v41 = vrot.slane %v777_v32, 2 }
 0x121   : > { %4864 = vst [vmem:[%s6553_s21 + $0x10] sm:$0xff] %v1306_v18  ;;  %v1254_v26 = vadd.f32 %v1249_v23, %v1190_v19  ;;  %v6682_v27 = vpop.f32.mrf.mxu1  ;;  %v1319_v40 = vmul.f32 %v1306_v18, %v1306_v18  ;;  %v4481_v19 = vsel %vm236_vm3, %v4476_v4, %v4480_v5  ;;  %v771_v20 = vadd.f32 %v770_v7, %v769_v52 }
 0x122   : > { %v5330_v10 = vpop.f32.mrf.mxu0  ;;  %v779_v61 = vadd.f32 %v778_v41, %v777_v32 }
 0x123   : > { %v1307_v60 = vadd.f32 %v1302_v63, %v1254_v26  ;;  %v5348_v11 = vpop.f32.mrf.mxu1 }
 0x124   : > { %v6691_v35 = vpop.f32.mrf.mxu0  ;;  %5628 = vmatmul.mubr.msk.bf16.vlgmr.msra.gmra.mxu0 %vm249_vm2, %v6610_v21  ;;  %v4532_v21 = vrot.slane %v5750_v28, 1  ;;  %v780_v14 = vrot.slane %v779_v61, 1 }
 0x125   : > { %4865 = vst [vmem:[%s6553_s21 + $0x18] sm:$0xff] %v1307_v60  ;;  %v1311_v42 = vadd.f32 %v1307_v60, %v1306_v18  ;;  %v1320_v25 = vmul.f32 %v1307_v60, %v1307_v60  ;;  %5638 = vmatpush3.bf16.msra.mxu0 %v4360_v30  ;;  %v6699_v6 = vpop.f32.mrf.mxu1  ;;  %5646 = vmatmul.mubr.msk.bf16.vlgmr.msra.gmra.mxu1 %vm249_vm2, %v5750_v28 }
 0x126   : > { %v5341_v43 = vpop.f32.mrf.mxu0  ;;  %5639 = vmatprep.mubr.msk.bf16.mxu0 %vm5793_vm1, %v5792_v1  ;;  %5649 = vmatprep.subr.bf16.mxu0 %v5792_v1  ;;  %v4534_v59 = vsel %vm346_vm4, %v4532_v21, %v4533_v34  ;;  %v1441_v24 = vadd.f32 %v6667_v16, %v6691_v35  ;;  %v781_v29 = vadd.f32 %v780_v14, %v779_v61 }
 0x127   : > { %v1312_v44 = vrot.slane %v1311_v42, 4  ;;  %v1321_v45 = vadd.f32 %v1320_v25, %v1319_v40  ;;  %v5359_v46 = vpop.f32.mrf.mxu1  ;;  %5656 = vmatpush3.bf16.msra.mxu1 %v4539_v37  ;;  %5657 = vmatprep.mubr.msk.bf16.mxu1 %vm5793_vm1, %v5792_v1 }
 0x128   : > { %v1397_v48 = vpop.f32.mrf.mxu0 }
 0x129   : > { %v1313_v54 = vadd.f32 %v1312_v44, %v1311_v42  ;;  %v1322_v55 = vrot.slane %v1321_v45, 4  ;;  %v1552_v56 = vpop.f32.mrf.mxu1  ;;  %v1444_v60 = vadd.f32 %v6682_v27, %v1397_v48 }
 0x12a   : > { %v5342_v57 = vpop.f32.mrf.mxu0 }
 0x12b   : > { %v1314_v62 = vrot.slane %v1313_v54, 2  ;;  %v1323_v63 = vadd.f32 %v1322_v55, %v1321_v45  ;;  %v5360_v2 = vpop.f32.mrf.mxu1 }
 0x12c   : > { %v1491_v3 = vpop.f32.mrf.mxu0  ;;  %5640 = vmatmul.mubr.msk.bf16.vlgmr.msra.gmra.mxu0 %vm249_vm2, %v4355_v53 }
 0x12d   : > { %v1315_v8 = vadd.f32 %v1314_v62, %v1313_v54  ;;  %v1324_v9 = vrot.slane %v1323_v63, 2  ;;  %5650 = vmatpush3.bf16.msra.mxu0 %v4486_v58  ;;  %v1666_v12 = vpop.f32.mrf.mxu1  ;;  %5658 = vmatmul.mubr.msk.bf16.vlgmr.msra.gmra.mxu1 %vm249_vm2, %v4534_v59  ;;  %v1498_v30 = vadd.f32 %v1491_v3, %v1441_v24 }
 0x12e   : > { %v5353_v13 = vpop.f32.mrf.mxu0  ;;  %5651 = vmatprep.mubr.msk.bf16.mxu0 %vm5793_vm1, %v5792_v1 }
 0x12f   : > { %v1316_v15 = vrot.slane %v1315_v8, 1  ;;  %v1325_v17 = vadd.f32 %v1324_v9, %v1323_v63  ;;  %v5371_v33 = vpop.f32.mrf.mxu1  ;;  %v1556_v16 = vadd.f32 %v6699_v6, %v1498_v30 }
 0x130   : > { %v1494_v18 = vpop.f32.mrf.mxu0 }
 0x131   : > { %v1317_v22 = vadd.f32 %v1316_v15, %v1315_v8  ;;  %v1326_v23 = vrot.slane %v1325_v17, 1  ;;  %v1669_v26 = vpop.f32.mrf.mxu1  ;;  %v1499_v37 = vadd.f32 %v1494_v18, %v1444_v60 }
 0x132   : > { %v5354_v28 = vpop.f32.mrf.mxu0 }
 0x133   : > { %v1327_v10 = vadd.f32 %v1326_v23, %v1325_v17  ;;  %v5372_v31 = vpop.f32.mrf.mxu1  ;;  %v6720_v1 = vadd.f32 %v1317_v22, %v771_v20  ;;  %v1557_v25 = vadd.f32 %v1552_v56, %v1499_v37 }
 0x134   : > { %v1613_v32 = vpop.f32.mrf.mxu0  ;;  %5652 = vmatmul.mubr.msk.bf16.vlgmr.msra.gmra.mxu0 %vm249_vm2, %v4481_v19 }
 0x135   : > { %v1792_v11 = vpop.f32.mrf.mxu1  ;;  %v6724_v0 = vadd.f32 %v1327_v10, %v781_v29  ;;  %v1620_v39 = vadd.f32 %v1613_v32, %v1556_v16 }
 0x136   : > { %v5365_v36 = vpop.f32.mrf.mxu0 }
 0x137   : > { %v5383_v35 = vpop.f32.mrf.mxu1  ;;  %v1673_v41 = vadd.f32 %v1666_v12, %v1620_v39 }
 0x138   : > { %v1616_v38 = vpop.f32.mrf.mxu0 }
 0x139   : > { %v1795_v40 = vpop.f32.mrf.mxu1  ;;  %v1621_v34 = vadd.f32 %v1616_v38, %v1557_v25 }
 0x13a   : > { %v5366_v42 = vpop.f32.mrf.mxu0 }
 0x13b   : > { %v5384_v43 = vpop.f32.mrf.mxu1  ;;  %v1674_v48 = vadd.f32 %v1669_v26, %v1621_v34 }
 0x13c   : > { %v1728_v21 = vpop.f32.mrf.mxu0 }
 0x13d   : > { %v1940_v44 = vpop.f32.mrf.mxu1  ;;  %v1735_v45 = vadd.f32 %v1728_v21, %v1673_v41 }
 0x13e   : > { %v5377_v27 = vpop.f32.mrf.mxu0 }
 0x13f   : > { %v5395_v46 = vpop.f32.mrf.mxu1  ;;  %v1799_v51 = vadd.f32 %v1792_v11, %v1735_v45 }
 0x140   : > { %v1731_v47 = vpop.f32.mrf.mxu0 }
 0x141   : > { %v1943_v49 = vpop.f32.mrf.mxu1  ;;  %v1736_v6 = vadd.f32 %v1731_v47, %v1674_v48 }
 0x142   : > { %v5378_v50 = vpop.f32.mrf.mxu0 }
 0x143   : > { %v5396_v52 = vpop.f32.mrf.mxu1  ;;  %v1800_v57 = vadd.f32 %v1795_v40, %v1736_v6 }
 0x144   : > { %v1845_v54 = vpop.f32.mrf.mxu0 }
 0x145   : > { %v1852_v55 = vadd.f32 %v1845_v54, %v1799_v51  ;;  %v2037_v56 = vpop.f32.mrf.mxu1 }
 0x146   : > { %v5389_v53 = vpop.f32.mrf.mxu0 }
 0x147   : > { %4900 = vst [vmem:[%s6553_s21 + $0x20] sm:$0xff] %v1852_v55  ;;  %v5407_v58 = vpop.f32.mrf.mxu1  ;;  %v1865_v2 = vmul.f32 %v1852_v55, %v1852_v55 }
 0x148   : > { %v1848_v59 = vpop.f32.mrf.mxu0 }
 0x149   : > { %v1853_v61 = vadd.f32 %v1848_v59, %v1800_v57  ;;  %v2040_v62 = vpop.f32.mrf.mxu1 }
 0x14a   : > { %v5390_v63 = vpop.f32.mrf.mxu0 }
 0x14b   : > { %4901 = vst [vmem:[%s6553_s21 + $0x28] sm:$0xff] %v1853_v61  ;;  %v1857_v3 = vadd.f32 %v1853_v61, %v1852_v55  ;;  %v1866_v4 = vmul.f32 %v1853_v61, %v1853_v61  ;;  %v5408_v5 = vpop.f32.mrf.mxu1 }
 0x14c   : > { %v1986_v7 = vpop.f32.mrf.mxu0 }
 0x14d   : > { %v1858_v8 = vrot.slane %v1857_v3, 4  ;;  %v1867_v9 = vadd.f32 %v1866_v4, %v1865_v2  ;;  %v2159_v12 = vpop.f32.mrf.mxu1  ;;  %v1987_v26 = vadd.f32 %v1986_v7, %v1940_v44 }
 0x14e   : > { %v5401_v13 = vpop.f32.mrf.mxu0 }
 0x14f   : > { %v1859_v14 = vadd.f32 %v1858_v8, %v1857_v3  ;;  %v1868_v15 = vrot.slane %v1867_v9, 4  ;;  %v5419_v17 = vpop.f32.mrf.mxu1  ;;  %v2044_v37 = vadd.f32 %v2037_v56, %v1987_v26 }
 0x150   : > { %v1989_v33 = vpop.f32.mrf.mxu0 }
 0x151   : > { %v1860_v18 = vrot.slane %v1859_v14, 2  ;;  %v1869_v19 = vadd.f32 %v1868_v15, %v1867_v9  ;;  %v2162_v20 = vpop.f32.mrf.mxu1  ;;  %v1990_v36 = vadd.f32 %v1989_v33, %v1943_v49 }
 0x152   : > { %v5402_v22 = vpop.f32.mrf.mxu0 }
 0x153   : > { %v1861_v23 = vadd.f32 %v1860_v18, %v1859_v14  ;;  %v1870_v24 = vrot.slane %v1869_v19, 2  ;;  %v5420_v28 = vpop.f32.mrf.mxu1  ;;  %v2045_v21 = vadd.f32 %v2040_v62, %v1990_v36 }
 0x154   : > { %v2095_v29 = vpop.f32.mrf.mxu0 }
 0x155   : > { %v1862_v10 = vrot.slane %v1861_v23, 1  ;;  %v1871_v30 = vadd.f32 %v1870_v24, %v1869_v19  ;;  %v2274_v31 = vpop.f32.mrf.mxu1  ;;  %v2102_v40 = vadd.f32 %v2095_v29, %v2044_v37 }
 0x156   : > { %v5413_v32 = vpop.f32.mrf.mxu0 }
 0x157   : > { %v1863_v60 = vadd.f32 %v1862_v10, %v1861_v23  ;;  %v1872_v11 = vrot.slane %v1871_v30, 1  ;;  %v5431_v16 = vpop.f32.mrf.mxu1  ;;  %v2166_v27 = vadd.f32 %v2159_v12, %v2102_v40 }
 0x158   : > { %v2098_v35 = vpop.f32.mrf.mxu0 }
 0x159   : > { %v6730_v38 = vadd.f32 %v1863_v60, %v6720_v1  ;;  %v1873_v39 = vadd.f32 %v1872_v11, %v1871_v30  ;;  %v2277_v42 = vpop.f32.mrf.mxu1  ;;  %v2103_v44 = vadd.f32 %v2098_v35, %v2045_v21 }
 0x15a   : > { %v5414_v25 = vpop.f32.mrf.mxu0 }
 0x15b   : > { %v6733_v43 = vadd.f32 %v1873_v39, %v6724_v0  ;;  %v5432_v34 = vpop.f32.mrf.mxu1  ;;  %v2167_v1 = vadd.f32 %v2162_v20, %v2103_v44 }
 0x15c   : > { %v2212_v41 = vpop.f32.mrf.mxu0 }
 0x15d   : > { %v2391_v45 = vpop.f32.mrf.mxu1  ;;  %v2219_v47 = vadd.f32 %v2212_v41, %v2166_v27 }
 0x15e   : > { %v5425_v46 = vpop.f32.mrf.mxu0 }
 0x15f   : > { %v5443_v48 = vpop.f32.mrf.mxu1  ;;  %v2281_v52 = vadd.f32 %v2274_v31, %v2219_v47 }
 0x160   : > { %v2215_v49 = vpop.f32.mrf.mxu0 }
 0x161   : > { %v2394_v50 = vpop.f32.mrf.mxu1  ;;  %v2220_v51 = vadd.f32 %v2215_v49, %v2167_v1 }
 0x162   : > { %v5426_v6 = vpop.f32.mrf.mxu0 }
 0x163   : > { %v5444_v54 = vpop.f32.mrf.mxu1  ;;  %v2282_v58 = vadd.f32 %v2277_v42, %v2220_v51 }
 0x164   : > { %v2338_v55 = vpop.f32.mrf.mxu0 }
 0x165   : > { %v2345_v0 = vadd.f32 %v2338_v55, %v2281_v52  ;;  %v2532_v56 = vpop.f32.mrf.mxu1 }
 0x166   : > { %v5437_v53 = vpop.f32.mrf.mxu0 }
 0x167   : > { %v2398_v57 = vadd.f32 %v2391_v45, %v2345_v0  ;;  %v5455_v59 = vpop.f32.mrf.mxu1 }
 0x168   : > { %v2341_v61 = vpop.f32.mrf.mxu0 }
 0x169   : > { %4936 = vst [vmem:[%s6553_s21 + $0x30] sm:$0xff] %v2398_v57  ;;  %v2346_v62 = vadd.f32 %v2341_v61, %v2282_v58  ;;  %v2535_v63 = vpop.f32.mrf.mxu1  ;;  %v2411_v7 = vmul.f32 %v2398_v57, %v2398_v57 }
 0x16a   : > { %v5438_v2 = vpop.f32.mrf.mxu0 }
 0x16b   : > { %v2399_v3 = vadd.f32 %v2394_v50, %v2346_v62  ;;  %v5456_v4 = vpop.f32.mrf.mxu1 }
 0x16c   : > { %v2486_v5 = vpop.f32.mrf.mxu0 }
 0x16d   : > { %4937 = vst [vmem:[%s6553_s21 + $0x38] sm:$0xff] %v2399_v3  ;;  %v2403_v8 = vadd.f32 %v2399_v3, %v2398_v57  ;;  %v2412_v9 = vmul.f32 %v2399_v3, %v2399_v3  ;;  %v2641_v12 = vpop.f32.mrf.mxu1  ;;  %v2533_v35 = vadd.f32 %v2532_v56, %v2486_v5 }
 0x16e   : > { %v5449_v13 = vpop.f32.mrf.mxu0 }
 0x16f   : > { %v2404_v14 = vrot.slane %v2403_v8, 4  ;;  %v2413_v15 = vadd.f32 %v2412_v9, %v2411_v7  ;;  %v5467_v17 = vpop.f32.mrf.mxu1 }
 0x170   : > { %v2489_v33 = vpop.f32.mrf.mxu0 }
 0x171   : > { %v2405_v18 = vadd.f32 %v2404_v14, %v2403_v8  ;;  %v2414_v19 = vrot.slane %v2413_v15, 4  ;;  %v2644_v20 = vpop.f32.mrf.mxu1  ;;  %v2536_v44 = vadd.f32 %v2535_v63, %v2489_v33 }
 0x172   : > { %v5450_v22 = vpop.f32.mrf.mxu0 }
 0x173   : > { %v2406_v23 = vrot.slane %v2405_v18, 2  ;;  %v2415_v24 = vadd.f32 %v2414_v19, %v2413_v15  ;;  %v5468_v26 = vpop.f32.mrf.mxu1 }
 0x174   : > { %v2583_v28 = vpop.f32.mrf.mxu0 }
 0x175   : > { %v2407_v29 = vadd.f32 %v2406_v23, %v2405_v18  ;;  %v2416_v10 = vrot.slane %v2415_v24, 2  ;;  %v2758_v30 = vpop.f32.mrf.mxu1  ;;  %v2590_v25 = vadd.f32 %v2583_v28, %v2533_v35 }
 0x176   : > { %v5461_v31 = vpop.f32.mrf.mxu0 }
 0x177   : > { %v2408_v32 = vrot.slane %v2407_v29, 1  ;;  %v2417_v60 = vadd.f32 %v2416_v10, %v2415_v24  ;;  %v5479_v11 = vpop.f32.mrf.mxu1  ;;  %v2648_v48 = vadd.f32 %v2641_v12, %v2590_v25 }
 0x178   : > { %v2586_v36 = vpop.f32.mrf.mxu0 }
 0x179   : > { %v2409_v37 = vadd.f32 %v2408_v32, %v2407_v29  ;;  %v2418_v16 = vrot.slane %v2417_v60, 1  ;;  %v2761_v39 = vpop.f32.mrf.mxu1  ;;  %v2591_v47 = vadd.f32 %v2586_v36, %v2536_v44 }
 0x17a   : > { %v5462_v40 = vpop.f32.mrf.mxu0 }
 0x17b   : > { %v2419_v42 = vadd.f32 %v2418_v16, %v2417_v60  ;;  %v5480_v21 = vpop.f32.mrf.mxu1  ;;  %v6738_v34 = vadd.f32 %v2409_v37, %v6730_v38  ;;  %v2649_v52 = vadd.f32 %v2644_v20, %v2591_v47 }
 0x17c   : > { %v2705_v41 = vpop.f32.mrf.mxu0 }
 0x17d   : > { %v2884_v27 = vpop.f32.mrf.mxu1  ;;  %v6741_v45 = vadd.f32 %v2419_v42, %v6733_v43  ;;  %v2712_v50 = vadd.f32 %v2705_v41, %v2648_v48 }
 0x17e   : > { %v5473_v46 = vpop.f32.mrf.mxu0 }
 0x17f   : > { %v5491_v49 = vpop.f32.mrf.mxu1  ;;  %v2765_v38 = vadd.f32 %v2758_v30, %v2712_v50 }
 0x180   : > { %v2708_v1 = vpop.f32.mrf.mxu0 }
 0x181   : > { %v2887_v6 = vpop.f32.mrf.mxu1  ;;  %v2713_v0 = vadd.f32 %v2708_v1, %v2649_v52 }
 0x182   : > { %v5474_v51 = vpop.f32.mrf.mxu0 }
 0x183   : > { %v5492_v54 = vpop.f32.mrf.mxu1  ;;  %v2766_v59 = vadd.f32 %v2761_v39, %v2713_v0 }
 0x184   : > { %v2820_v55 = vpop.f32.mrf.mxu0 }
 0x185   : > { %v3032_v56 = vpop.f32.mrf.mxu1  ;;  %v2827_v57 = vadd.f32 %v2820_v55, %v2765_v38 }
 0x186   : > { %v5485_v53 = vpop.f32.mrf.mxu0 }
 0x187   : > { %v5503_v58 = vpop.f32.mrf.mxu1  ;;  %v2891_v2 = vadd.f32 %v2884_v27, %v2827_v57 }
 0x188   : > { %v2823_v43 = vpop.f32.mrf.mxu0 }
 0x189   : > { %v3035_v61 = vpop.f32.mrf.mxu1  ;;  %v2828_v63 = vadd.f32 %v2823_v43, %v2766_v59 }
 0x18a   : > { %v5486_v62 = vpop.f32.mrf.mxu0 }
 0x18b   : > { %v5504_v3 = vpop.f32.mrf.mxu1  ;;  %v2892_v9 = vadd.f32 %v2887_v6, %v2828_v63 }
 0x18c   : > { %v2937_v4 = vpop.f32.mrf.mxu0 }
 0x18d   : > { %v2944_v5 = vadd.f32 %v2937_v4, %v2891_v2  ;;  %v3129_v7 = vpop.f32.mrf.mxu1 }
 0x18e   : > { %v5497_v8 = vpop.f32.mrf.mxu0 }
 0x18f   : > { %4972 = vst [vmem:[%s6553_s21 + $0x40] sm:$0xff] %v2944_v5  ;;  %v5515_v12 = vpop.f32.mrf.mxu1  ;;  %v2957_v33 = vmul.f32 %v2944_v5, %v2944_v5 }
 0x190   : > { %v2940_v13 = vpop.f32.mrf.mxu0 }
 0x191   : > { %v2945_v14 = vadd.f32 %v2940_v13, %v2892_v9  ;;  %v3132_v15 = vpop.f32.mrf.mxu1 }
 0x192   : > { %v5498_v17 = vpop.f32.mrf.mxu0 }
 0x193   : > { %4973 = vst [vmem:[%s6553_s21 + $0x48] sm:$0xff] %v2945_v14  ;;  %v2949_v18 = vadd.f32 %v2945_v14, %v2944_v5  ;;  %v2958_v19 = vmul.f32 %v2945_v14, %v2945_v14  ;;  %v5516_v20 = vpop.f32.mrf.mxu1 }
 0x194   : > { %v3078_v22 = vpop.f32.mrf.mxu0 }
 0x195   : > { %v2950_v23 = vrot.slane %v2949_v18, 4  ;;  %v2959_v24 = vadd.f32 %v2958_v19, %v2957_v33  ;;  %v3251_v26 = vpop.f32.mrf.mxu1  ;;  %v3079_v35 = vadd.f32 %v3078_v22, %v3032_v56 }
 0x196   : > { %v5509_v28 = vpop.f32.mrf.mxu0 }
 0x197   : > { %v2951_v29 = vadd.f32 %v2950_v23, %v2949_v18  ;;  %v2960_v10 = vrot.slane %v2959_v24, 4  ;;  %v5527_v30 = vpop.f32.mrf.mxu1  ;;  %v3136_v47 = vadd.f32 %v3129_v7, %v3079_v35 }
 0x198   : > { %v3081_v31 = vpop.f32.mrf.mxu0 }
 0x199   : > { %v2952_v32 = vrot.slane %v2951_v29, 2  ;;  %v2961_v60 = vadd.f32 %v2960_v10, %v2959_v24  ;;  %v3254_v11 = vpop.f32.mrf.mxu1  ;;  %v3082_v46 = vadd.f32 %v3081_v31, %v3035_v61 }
 0x19a   : > { %v5510_v36 = vpop.f32.mrf.mxu0 }
 0x19b   : > { %v2953_v37 = vadd.f32 %v2952_v32, %v2951_v29  ;;  %v2962_v16 = vrot.slane %v2961_v60, 2  ;;  %v5528_v39 = vpop.f32.mrf.mxu1  ;;  %v3137_v55 = vadd.f32 %v3132_v15, %v3082_v46 }
 0x19c   : > { %v3187_v40 = vpop.f32.mrf.mxu0 }
 0x19d   : > { %v2954_v42 = vrot.slane %v2953_v37, 1  ;;  %v2963_v25 = vadd.f32 %v2962_v16, %v2961_v60  ;;  %v3366_v21 = vpop.f32.mrf.mxu1  ;;  %v3194_v6 = vadd.f32 %v3187_v40, %v3136_v47 }
 0x19e   : > { %v5521_v41 = vpop.f32.mrf.mxu0 }
 0x19f   : > { %v2955_v44 = vadd.f32 %v2954_v42, %v2953_v37  ;;  %v2964_v27 = vrot.slane %v2963_v25, 1  ;;  %v5539_v48 = vpop.f32.mrf.mxu1  ;;  %v3258_v53 = vadd.f32 %v3251_v26, %v3194_v6 }
 0x1a0   : > { %v3190_v49 = vpop.f32.mrf.mxu0 }
 0x1a1   : > { %v6746_v1 = vadd.f32 %v2955_v44, %v6738_v34  ;;  %v2965_v50 = vadd.f32 %v2964_v27, %v2963_v25  ;;  %v3369_v51 = vpop.f32.mrf.mxu1  ;;  %v3195_v56 = vadd.f32 %v3190_v49, %v3137_v55 }
 0x1a2   : > { %v5522_v52 = vpop.f32.mrf.mxu0 }
 0x1a3   : > { %v6749_v54 = vadd.f32 %v2965_v50, %v6741_v45  ;;  %v5540_v0 = vpop.f32.mrf.mxu1  ;;  %v3259_v34 = vadd.f32 %v3254_v11, %v3195_v56 }
 0x1a4   : > { %v3304_v38 = vpop.f32.mrf.mxu0 }
 0x1a5   : > { %v3483_v57 = vpop.f32.mrf.mxu1  ;;  %v3311_v43 = vadd.f32 %v3304_v38, %v3258_v53 }
 0x1a6   : > { %v5533_v58 = vpop.f32.mrf.mxu0 }
 0x1a7   : > { %v5551_v59 = vpop.f32.mrf.mxu1  ;;  %v3373_v3 = vadd.f32 %v3366_v21, %v3311_v43 }
 0x1a8   : > { %v3307_v61 = vpop.f32.mrf.mxu0 }
 0x1a9   : > { %v3486_v62 = vpop.f32.mrf.mxu1  ;;  %v3312_v2 = vadd.f32 %v3307_v61, %v3259_v34 }
 0x1aa   : > { %v5534_v63 = vpop.f32.mrf.mxu0 }
 0x1ab   : > { %v5552_v4 = vpop.f32.mrf.mxu1  ;;  %v3374_v12 = vadd.f32 %v3369_v51, %v3312_v2 }
 0x1ac   : > { %v3430_v5 = vpop.f32.mrf.mxu0 }
 0x1ad   : > { %v3437_v45 = vadd.f32 %v3430_v5, %v3373_v3  ;;  %v3624_v7 = vpop.f32.mrf.mxu1 }
 0x1ae   : > { %v5545_v8 = vpop.f32.mrf.mxu0 }
 0x1af   : > { %v3490_v9 = vadd.f32 %v3483_v57, %v3437_v45  ;;  %v5563_v13 = vpop.f32.mrf.mxu1 }
 0x1b0   : > { %v3433_v14 = vpop.f32.mrf.mxu0 }
 0x1b1   : > { %5008 = vst [vmem:[%s6553_s21 + $0x50] sm:$0xff] %v3490_v9  ;;  %v3438_v15 = vadd.f32 %v3433_v14, %v3374_v12  ;;  %v3627_v17 = vpop.f32.mrf.mxu1  ;;  %v3503_v22 = vmul.f32 %v3490_v9, %v3490_v9 }
 0x1b2   : > { %v5546_v33 = vpop.f32.mrf.mxu0 }
 0x1b3   : > { %v3491_v18 = vadd.f32 %v3486_v62, %v3438_v15  ;;  %v5564_v19 = vpop.f32.mrf.mxu1 }
 0x1b4   : > { %v3578_v20 = vpop.f32.mrf.mxu0 }
 0x1b5   : > { %5009 = vst [vmem:[%s6553_s21 + $0x58] sm:$0xff] %v3491_v18  ;;  %v3495_v23 = vadd.f32 %v3491_v18, %v3490_v9  ;;  %v3504_v24 = vmul.f32 %v3491_v18, %v3491_v18  ;;  %v3733_v26 = vpop.f32.mrf.mxu1  ;;  %v3625_v49 = vadd.f32 %v3624_v7, %v3578_v20 }
 0x1b6   : > { %v5557_v28 = vpop.f32.mrf.mxu0 }
 0x1b7   : > { %v3496_v29 = vrot.slane %v3495_v23, 4  ;;  %v3505_v10 = vadd.f32 %v3504_v24, %v3503_v22  ;;  %v5575_v30 = vpop.f32.mrf.mxu1 }
 0x1b8   : > { %v3581_v31 = vpop.f32.mrf.mxu0 }
 0x1b9   : > { %v3497_v32 = vadd.f32 %v3496_v29, %v3495_v23  ;;  %v3506_v60 = vrot.slane %v3505_v10, 4  ;;  %v3736_v11 = vpop.f32.mrf.mxu1  ;;  %v3628_v56 = vadd.f32 %v3627_v17, %v3581_v31 }
 0x1ba   : > { %v5558_v36 = vpop.f32.mrf.mxu0 }
 0x1bb   : > { %v3498_v37 = vrot.slane %v3497_v32, 2  ;;  %v3507_v16 = vadd.f32 %v3506_v60, %v3505_v10  ;;  %v5576_v35 = vpop.f32.mrf.mxu1 }
 0x1bc   : > { %v3675_v39 = vpop.f32.mrf.mxu0 }
 0x1bd   : > { %v3499_v40 = vadd.f32 %v3498_v37, %v3497_v32  ;;  %v3508_v42 = vrot.slane %v3507_v16, 2  ;;  %v3850_v25 = vpop.f32.mrf.mxu1  ;;  %v3682_v52 = vadd.f32 %v3675_v39, %v3625_v49 }
 0x1be   : > { %v5569_v21 = vpop.f32.mrf.mxu0 }
 0x1bf   : > { %v3500_v41 = vrot.slane %v3499_v40, 1  ;;  %v3509_v44 = vadd.f32 %v3508_v42, %v3507_v16  ;;  %v5587_v27 = vpop.f32.mrf.mxu1  ;;  %v3740_v59 = vadd.f32 %v3733_v26, %v3682_v52 }
 0x1c0   : > { %v3678_v46 = vpop.f32.mrf.mxu0 }
 0x1c1   : > { %v3501_v47 = vadd.f32 %v3500_v41, %v3499_v40  ;;  %v3510_v48 = vrot.slane %v3509_v44, 1  ;;  %v3853_v50 = vpop.f32.mrf.mxu1  ;;  %v3683_v43 = vadd.f32 %v3678_v46, %v3628_v56 }
 0x1c2   : > { %v5570_v6 = vpop.f32.mrf.mxu0 }
 0x1c3   : > { %v3511_v51 = vadd.f32 %v3510_v48, %v3509_v44  ;;  %v5588_v55 = vpop.f32.mrf.mxu1  ;;  %v6754_v0 = vadd.f32 %v3501_v47, %v6746_v1  ;;  %v3741_v3 = vadd.f32 %v3736_v11, %v3683_v43 }
 0x1c4   : > { %v3797_v38 = vpop.f32.mrf.mxu0 }
 0x1c5   : > { %v3976_v53 = vpop.f32.mrf.mxu1  ;;  %v6757_v57 = vadd.f32 %v3511_v51, %v6749_v54  ;;  %v3804_v62 = vadd.f32 %v3797_v38, %v3740_v59 }
 0x1c6   : > { %v5581_v58 = vpop.f32.mrf.mxu0 }
 0x1c7   : > { %v5599_v61 = vpop.f32.mrf.mxu1  ;;  %v3857_v1 = vadd.f32 %v3850_v25, %v3804_v62 }
 0x1c8   : > { %v3800_v34 = vpop.f32.mrf.mxu0 }
 0x1c9   : > { %v3979_v63 = vpop.f32.mrf.mxu1  ;;  %v3805_v45 = vadd.f32 %v3800_v34, %v3741_v3 }
 0x1ca   : > { %v5582_v2 = vpop.f32.mrf.mxu0 }
 0x1cb   : > { %v5600_v4 = vpop.f32.mrf.mxu1  ;;  %v3858_v13 = vadd.f32 %v3853_v50, %v3805_v45 }
 0x1cc   : > { %v3912_v5 = vpop.f32.mrf.mxu0 }
 0x1cd   : > { %v4124_v7 = vpop.f32.mrf.mxu1  ;;  %v3919_v9 = vadd.f32 %v3912_v5, %v3857_v1 }
 0x1ce   : > { %v5593_v8 = vpop.f32.mrf.mxu0 }
 0x1cf   : > { %v5611_v12 = vpop.f32.mrf.mxu1  ;;  %v3983_v33 = vadd.f32 %v3976_v53, %v3919_v9 }
 0x1d0   : > { %v3915_v54 = vpop.f32.mrf.mxu0 }
 0x1d1   : > { %v4127_v14 = vpop.f32.mrf.mxu1  ;;  %v3920_v17 = vadd.f32 %v3915_v54, %v3858_v13 }
 0x1d2   : > { %v5594_v15 = vpop.f32.mrf.mxu0 }
 0x1d3   : > { %v5612_v18 = vpop.f32.mrf.mxu1  ;;  %v3984_v24 = vadd.f32 %v3979_v63, %v3920_v17 }
 0x1d4   : > { %v4029_v19 = vpop.f32.mrf.mxu0 }
 0x1d5   : > { %v4036_v20 = vadd.f32 %v4029_v19, %v3983_v33  ;;  %v4221_v22 = vpop.f32.mrf.mxu1 }
 0x1d6   : > { %v5605_v23 = vpop.f32.mrf.mxu0 }
 0x1d7   : > { %5044 = vst [vmem:[%s6553_s21 + $0x60] sm:$0xff] %v4036_v20  ;;  %v5623_v26 = vpop.f32.mrf.mxu1  ;;  %v4049_v55 = vmul.f32 %v4036_v20, %v4036_v20 }
 0x1d8   : > { %v4032_v28 = vpop.f32.mrf.mxu0 }
 0x1d9   : > { %v4037_v29 = vadd.f32 %v4032_v28, %v3984_v24  ;;  %v4224_v10 = vpop.f32.mrf.mxu1 }
 0x1da   : > { %v5606_v30 = vpop.f32.mrf.mxu0 }
 0x1db   : > { %5045 = vst [vmem:[%s6553_s21 + $0x68] sm:$0xff] %v4037_v29  ;;  %v5624_v31 = vpop.f32.mrf.mxu1  ;;  %v4050_v50 = vmul.f32 %v4037_v29, %v4037_v29  ;;  %v4041_v38 = vadd.f32 %v4037_v29, %v4036_v20 }
 0x1dc   : > { %v4170_v32 = vpop.f32.mrf.mxu0 }
 0x1dd   : > { %v4343_v60 = vpop.f32.mrf.mxu1  ;;  %v4171_v39 = vadd.f32 %v4170_v32, %v4124_v7  ;;  %v4051_v59 = vadd.f32 %v4050_v50, %v4049_v55  ;;  %v4042_v63 = vrot.slane %v4041_v38, 4 }
 0x1de   : > { %v5617_v11 = vpop.f32.mrf.mxu0 }
 0x1df   : > { %v5635_v36 = vpop.f32.mrf.mxu1  ;;  %v4228_v44 = vadd.f32 %v4221_v22, %v4171_v39  ;;  %v4052_v5 = vrot.slane %v4051_v59, 4  ;;  %v4043_v9 = vadd.f32 %v4042_v63, %v4041_v38 }
 0x1e0   : > { %v4173_v37 = vpop.f32.mrf.mxu0 }
 0x1e1   : > { %v4346_v16 = vpop.f32.mrf.mxu1  ;;  %v4174_v41 = vadd.f32 %v4173_v37, %v4127_v14  ;;  %v4053_v13 = vadd.f32 %v4052_v5, %v4051_v59  ;;  %v4044_v33 = vrot.slane %v4043_v9, 2 }
 0x1e2   : > { %v5618_v35 = vpop.f32.mrf.mxu0 }
 0x1e3   : > { %v5636_v40 = vpop.f32.mrf.mxu1  ;;  %v4229_v6 = vadd.f32 %v4224_v10, %v4174_v41  ;;  %v4054_v20 = vrot.slane %v4053_v13, 2  ;;  %v4045_v23 = vadd.f32 %v4044_v33, %v4043_v9 }
 0x1e4   : > { %v4279_v42 = vpop.f32.mrf.mxu0 }
 0x1e5   : > { %v4458_v25 = vpop.f32.mrf.mxu1  ;;  %v4286_v47 = vadd.f32 %v4279_v42, %v4228_v44  ;;  %v4055_v29 = vadd.f32 %v4054_v20, %v4053_v13  ;;  %v4046_v31 = vrot.slane %v4045_v23, 1 }
 0x1e6   : > { %v5629_v21 = vpop.f32.mrf.mxu0 }
 0x1e7   : > { %v5647_v27 = vpop.f32.mrf.mxu1  ;;  %v4350_v53 = vadd.f32 %v4343_v60, %v4286_v47  ;;  %v4056_v11 = vrot.slane %v4055_v29, 1 }
 0x1e8   : > { %v4282_v46 = vpop.f32.mrf.mxu0 }
 0x1e9   : > { %v4461_v48 = vpop.f32.mrf.mxu1  ;;  %v4287_v56 = vadd.f32 %v4282_v46, %v4229_v6  ;;  %v4057_v40 = vadd.f32 %v4056_v11, %v4055_v29 }
 0x1ea   : > { %v5630_v49 = vpop.f32.mrf.mxu0 }
 0x1eb   : > { %v5648_v51 = vpop.f32.mrf.mxu1  ;;  %v4351_v2 = vadd.f32 %v4346_v16, %v4287_v56  ;;  %v4047_v16 = vadd.f32 %v4046_v31, %v4045_v23  ;;  %v4058_v27 = vadd.f32 %v4057_v40, %v6757_v57 }
 0x1ec   : > { %v4396_v52 = vpop.f32.mrf.mxu0 }
 0x1ed   : > { %v4575_v58 = vpop.f32.mrf.mxu1  ;;  %v4403_v61 = vadd.f32 %v4396_v52, %v4350_v53  ;;  %v4048_v21 = vadd.f32 %v4047_v16, %v6754_v0 }
 0x1ee   : > { %v5641_v43 = vpop.f32.mrf.mxu0 }
 0x1ef   : > { %v5659_v34 = vpop.f32.mrf.mxu1  ;;  %v4465_v1 = vadd.f32 %v4458_v25, %v4403_v61 }
 0x1f0   : > { %v4399_v62 = vpop.f32.mrf.mxu0 }
 0x1f1   : > { %v4578_v3 = vpop.f32.mrf.mxu1  ;;  %v4404_v45 = vadd.f32 %v4399_v62, %v4351_v2 }
 0x1f2   : > { %v5642_v4 = vpop.f32.mrf.mxu0 }
 0x1f3   : > { %v5660_v7 = vpop.f32.mrf.mxu1  ;;  %v4466_v15 = vadd.f32 %v4461_v48, %v4404_v45 }
 0x1f4   : > { %v4522_v8 = vpop.f32.mrf.mxu0 }
 0x1f5   : > { %v4529_v12 = vadd.f32 %v4522_v8, %v4465_v1 }
 0x1f6   : > { %v5653_v54 = vpop.f32.mrf.mxu0 }
 0x1f7   : > { %v4582_v14 = vadd.f32 %v4575_v58, %v4529_v12 }
 0x1f8   : > { %v4525_v17 = vpop.f32.mrf.mxu0 }
 0x1f9   : > { %5080 = vst [vmem:[%s6553_s21 + $0x70] sm:$0xff] %v4582_v14  ;;  %v4530_v18 = vadd.f32 %v4525_v17, %v4466_v15  ;;  %v4595_v24 = vmul.f32 %v4582_v14, %v4582_v14 }
 0x1fa   : > { %v5654_v19 = vpop.f32.mrf.mxu0 }
 0x1fb   : > { %v4583_v22 = vadd.f32 %v4578_v3, %v4530_v18 }
 0x1fd   : > { %5081 = vst [vmem:[%s6553_s21 + $0x78] sm:$0xff] %v4583_v22  ;;  %v4587_v26 = vadd.f32 %v4583_v22, %v4582_v14  ;;  %v4596_v28 = vmul.f32 %v4583_v22, %v4583_v22 }
 0x1ff   : > { %v4588_v10 = vrot.slane %v4587_v26, 4  ;;  %v4597_v30 = vadd.f32 %v4596_v28, %v4595_v24 }
 0x201   : > { %v4589_v32 = vadd.f32 %v4588_v10, %v4587_v26  ;;  %v4598_v60 = vrot.slane %v4597_v30, 4 }
 0x203   : > { %v4590_v36 = vrot.slane %v4589_v32, 2  ;;  %v4599_v37 = vadd.f32 %v4598_v60, %v4597_v30 }
 0x205   : > { %v4591_v35 = vadd.f32 %v4590_v36, %v4589_v32  ;;  %v4600_v39 = vrot.slane %v4599_v37, 2 }
 0x207   : > { %v4592_v42 = vrot.slane %v4591_v35, 1  ;;  %v4601_v25 = vadd.f32 %v4600_v39, %v4599_v37 }
 0x209   : > { %v4593_v41 = vadd.f32 %v4592_v42, %v4591_v35  ;;  %v4602_v44 = vrot.slane %v4601_v25, 1 }
 0x20b   : > { %v4594_v46 = vadd.f32 %v4593_v41, %v4048_v21  ;;  %v4603_v47 = vadd.f32 %v4602_v44, %v4601_v25 }
 0x20d   : > { %v4604_v48 = vadd.f32 %v4603_v47, %v4058_v27  ;;  %4605 = vst [vmem:[%s216_s13] sm:$0x1] %v4594_v46 }
 0x20f   : > { %4606 = vst [vmem:[%s216_s13 + $0x1] sm:$0x1] %v4604_v48 }
 0x210 PF: > { %s14_s16 = sadd.s32 1, %s5790_s16   ;;  %s6791_s12 = smov %s5782_s14 }
 0x211   : > { %p11_p8 = scmp.ge.s32.totalorder %s14_s16, 6   ;;  %s6792_s13 = smov %s5786_s15 }
 0x212   : > { %s6793_s14 = smov %s6796_s17  ;;  %s6794_s15 = smov %s6800_s18 }
 0x213   :  { %13 = sbr.rel (!%p11_p8) target bundleno = 3 (0x3), region = 95 }

</bundles_post_ra>
